<compile_context>
chip_gen: v7x
topology: tpu7x:2x2x1
jax: 0.10.0
libtpu: 0.0.40
codegen_flags: <defaults>
</compile_context>

<pallas_src>
import math

import jax
import jax.numpy as jnp
from jax import lax
from jax.experimental import pallas as pl
from jax.experimental.pallas import tpu as pltpu


# ----------------------------- in-kernel helpers -----------------------------
def _reflect_pad_hw(x):
    """1-px ReflectionPad2d on a (H, W, C) value -> (H+2, W+2, C)."""
    xw = jnp.concatenate([x[:, 1:2, :], x, x[:, -2:-1, :]], axis=1)
    return jnp.concatenate([xw[1:2, :, :], xw, xw[-2:-1, :, :]], axis=0)


def _conv3x3(xp, w_ref):
    """3x3 'VALID' conv on an already-padded (Hp, Wp, Cin) bf16 value.

    w_ref is pre-packed as (3, 3*Cin, Cout): w_ref[dj] stacks the three row
    taps di=0,1,2 along K.  The sublane-unaligned column (dj) slice happens
    3x per conv instead of 9x, and each matmul contracts K = 3*Cin.
    Conv bias is intentionally omitted: InstanceNorm's mean subtraction
    cancels it exactly.  Returns (H*W, Cout) float32.
    """
    Hp, Wp, Cin = xp.shape
    H, W = Hp - 2, Wp - 2
    L = H * W
    Cout = w_ref.shape[-1]

    acc = jnp.zeros((L, Cout), jnp.float32)
    for dj in range(3):                             # static unroll over columns
        col = xp[:, dj:dj + W, :]                   # (Hp, W, Cin)
        slab = jnp.concatenate(
            [col[di:di + H] for di in range(3)], axis=-1)   # (H, W, 3*Cin)
        acc = acc + jnp.dot(slab.reshape(L, 3 * Cin), w_ref[dj],
                            preferred_element_type=jnp.float32)
    return acc


def _inst_norm(y, g, be):
    """InstanceNorm2d (eps=1e-5), single-pass stats over the spatial axis."""
    mean = jnp.mean(y, axis=0, keepdims=True)
    msq = jnp.mean(y * y, axis=0, keepdims=True)
    inv = lax.rsqrt(msq - mean * mean + 1e-5)
    return (y - mean) * inv * g + be


# -------------------------------- Pallas kernel -------------------------------
def resnet_block_kernel(x_ref, w1_ref, g1_ref, be1_ref,
                        w2_ref, g2_ref, be2_ref, out_ref):
    """out = x + IN(conv2(pad(relu(IN(conv1(pad(x))))))), one batch element."""
    _, H, W, C = out_ref.shape
    x = x_ref[0]                                            # (H, W, C) bf16

    # ---- stage 1: relu(IN(conv1(reflect_pad(x)))) ----
    y = _conv3x3(_reflect_pad_hw(x), w1_ref)                # (H*W, C) f32
    y = _inst_norm(y, g1_ref[...], be1_ref[...])
    y = jnp.maximum(y, 0.0)
    # TODO(synk): Dropout(0.5) (use_dropout=True) is training-only; eval-mode
    # forward is the identity, so it is intentionally omitted here.

    # ---- stage 2: x + IN(conv2(reflect_pad(y1))); y1 stays resident in VMEM ----
    y1 = y.astype(jnp.bfloat16).reshape(H, W, C)
    y2 = _conv3x3(_reflect_pad_hw(y1), w2_ref)              # (H*W, C) f32
    y2 = _inst_norm(y2, g2_ref[...], be2_ref[...])

    out = x.astype(jnp.float32) + y2.reshape(H, W, C)       # residual add in f32
    out_ref[0] = out.astype(out_ref.dtype)


# ------------------------------ wrapper / glue ------------------------------
def _pack_conv_w(w9):
    """(9, Cin, Cout), tap k = di*3+dj  ->  (3, 3*Cin, Cout), di stacked on K."""
    return jnp.stack(
        [jnp.concatenate([w9[di * 3 + dj] for di in range(3)], axis=0)
         for dj in range(3)], axis=0)


def resnet_block_pallas(x_nchw, p, padding_type="reflect"):
    # TODO(synk): only padding_type='reflect' wired up; 'replicate'/'zero' would
    # only change the in-kernel halo construction.
    assert padding_type == "reflect"
    B, C, H, W = x_nchw.shape

    # NCHW -> NHWC bf16 (lane-dense channels-last). Kept only to preserve the
    # torch interface; a fully-NHWC model would skip both transposes.
    x_bhwc = jnp.transpose(x_nchw, (0, 2, 3, 1)).astype(jnp.bfloat16)

    w1 = _pack_conv_w(p["w1"]).astype(jnp.bfloat16)         # (3, 3C, C)
    w2 = _pack_conv_w(p["w2"]).astype(jnp.bfloat16)

    def full_spec(a):
        nd = a.ndim
        return pl.BlockSpec(a.shape, lambda b, _nd=nd: (0,) * _nd)

    out = pl.pallas_call(
        resnet_block_kernel,
        out_shape=jax.ShapeDtypeStruct((B, H, W, C), jnp.float32),
        grid=(B,),
        in_specs=[pl.BlockSpec((1, H, W, C), lambda b: (b, 0, 0, 0)),
                  full_spec(w1), full_spec(p["g1"]), full_spec(p["be1"]),
                  full_spec(w2), full_spec(p["g2"]), full_spec(p["be2"])],
        out_specs=pl.BlockSpec((1, H, W, C), lambda b: (b, 0, 0, 0)),
        compiler_params=pltpu.CompilerParams(
            dimension_semantics=("parallel",),
            vmem_limit_bytes=48 * 1024 * 1024),
        # TODO(synk): for large H*W*C add an H-tile grid axis (1-row halo +
        # two-pass InstanceNorm) so whole-image blocks fit v7x's 64 MiB VMEM.
    )(x_bhwc, w1, p["g1"], p["be1"], w2, p["g2"], p["be2"])

    return jnp.transpose(out, (0, 3, 1, 2))                  # back to NCHW


# --------------------------- pure-JAX reference ---------------------------
def resnet_block_ref(x_nchw, p):
    x = jnp.transpose(x_nchw.astype(jnp.float32), (0, 2, 3, 1))

    def conv_in(inp, w9, b, g, be, relu):
        cin, cout = w9.shape[1], w9.shape[2]
        xpad = jnp.pad(inp, ((0, 0), (1, 1), (1, 1), (0, 0)), mode="reflect")
        w = w9.reshape(3, 3, cin, cout)                      # HWIO, tap k = (di, dj)
        y = lax.conv_general_dilated(
            xpad, w, window_strides=(1, 1), padding="VALID",
            dimension_numbers=("NHWC", "HWIO", "NHWC"),
            precision=lax.Precision.HIGHEST)
        y = y + b.reshape(1, 1, 1, cout)                     # bias (cancelled by IN)
        mean = jnp.mean(y, axis=(1, 2), keepdims=True)
        var = jnp.mean((y - mean) ** 2, axis=(1, 2), keepdims=True)
        y = (y - mean) * lax.rsqrt(var + 1e-5) * g.reshape(1, 1, 1, cout) \
            + be.reshape(1, 1, 1, cout)
        return jnp.maximum(y, 0.0) if relu else y

    y1 = conv_in(x, p["w1"], p["b1"], p["g1"], p["be1"], True)
    y2 = conv_in(y1, p["w2"], p["b2"], p["g2"], p["be2"], False)
    return jnp.transpose(x + y2, (0, 3, 1, 2))


# --------------------------- parameter init ---------------------------
def init_params(key, dim):
    # Conv weights stored as (9, C_in, C_out), tap k = di*3 + dj (cross-correlation,
    # matching nn.Conv2d).  norm_layer = InstanceNorm2d (CycleGAN default); affine
    # params kept (ones/zeros == affine=False).  use_bias=True.
    k1, k2, k3, k4 = jax.random.split(key, 4)
    scale = 1.0 / math.sqrt(9 * dim)
    return {
        "w1": jax.random.normal(k1, (9, dim, dim), jnp.float32) * scale,
        "b1": jax.random.normal(k2, (1, dim), jnp.float32) * 0.1,
        "g1": jnp.ones((1, dim), jnp.float32),
        "be1": jnp.zeros((1, dim), jnp.float32),
        "w2": jax.random.normal(k3, (9, dim, dim), jnp.float32) * scale,
        "b2": jax.random.normal(k4, (1, dim), jnp.float32) * 0.1,
        "g2": jnp.ones((1, dim), jnp.float32),
        "be2": jnp.zeros((1, dim), jnp.float32),
    }


# --------------------------------- main ---------------------------------
if __name__ == "__main__":
    B, dim, H, W = 2, 128, 16, 16          # lane-dense channels-last layout
    key = jax.random.PRNGKey(0)
    kx, kp = jax.random.split(key)
    x = jax.random.normal(kx, (B, dim, H, W), jnp.float32)
    params = init_params(kp, dim)

    out = jax.block_until_ready(resnet_block_pallas(x, params))
    ref = jax.block_until_ready(resnet_block_ref(x, params))

    rel_err = float(jnp.max(jnp.abs(out - ref)) / (jnp.max(jnp.abs(ref)) + 1e-6))
    assert out.shape == (B, dim, H, W)
    assert bool(jnp.all(jnp.isfinite(out)))
    assert rel_err < 2e-2, f"mismatch vs reference: rel_err={rel_err}"

    print("KERNEL_OK")
</pallas_src>

<mosaic_0001>
module attributes {stable_mosaic.version = 11 : i64} {
  func.func @resnet_block_kernel(%arg0: i32, %arg1: memref<1x16x16x128xbf16, #tpu.memory_space<vmem>>, %arg2: memref<3x384x128xbf16, #tpu.memory_space<vmem>>, %arg3: memref<1x128xf32, #tpu.memory_space<vmem>>, %arg4: memref<1x128xf32, #tpu.memory_space<vmem>>, %arg5: memref<3x384x128xbf16, #tpu.memory_space<vmem>>, %arg6: memref<1x128xf32, #tpu.memory_space<vmem>>, %arg7: memref<1x128xf32, #tpu.memory_space<vmem>>, %arg8: memref<1x16x16x128xf32, #tpu.memory_space<vmem>>) attributes {dimension_semantics = [#tpu.dimension_semantics<parallel>], iteration_bounds = array<i64: 2>, scalar_prefetch = 0 : i64, scratch_operands = 0 : i64, tpu.core_type = #tpu.core_type<tc>, window_params = [{transform_indices = @transform_0, window_bounds = array<i64: 1, 16, 16, 128>}, {pipeline_mode = #tpu.pipeline_mode<synchronous>, transform_indices = @transform_1, window_bounds = array<i64: 3, 384, 128>}, {pipeline_mode = #tpu.pipeline_mode<synchronous>, transform_indices = @transform_2, window_bounds = array<i64: 1, 128>}, {pipeline_mode = #tpu.pipeline_mode<synchronous>, transform_indices = @transform_3, window_bounds = array<i64: 1, 128>}, {pipeline_mode = #tpu.pipeline_mode<synchronous>, transform_indices = @transform_4, window_bounds = array<i64: 3, 384, 128>}, {pipeline_mode = #tpu.pipeline_mode<synchronous>, transform_indices = @transform_5, window_bounds = array<i64: 1, 128>}, {pipeline_mode = #tpu.pipeline_mode<synchronous>, transform_indices = @transform_6, window_bounds = array<i64: 1, 128>}, {transform_indices = @transform_7, window_bounds = array<i64: 1, 16, 16, 128>}]} {
    %c0 = arith.constant 0 : index
    %c0_0 = arith.constant 0 : index
    %c0_1 = arith.constant 0 : index
    %c0_2 = arith.constant 0 : index
    %0 = vector.load %arg1[%c0, %c0_0, %c0_1, %c0_2] : memref<1x16x16x128xbf16, #tpu.memory_space<vmem>>, vector<1x16x16x128xbf16>
    %1 = vector.shape_cast %0 : vector<1x16x16x128xbf16> to vector<16x16x128xbf16>
    %2 = vector.extract_strided_slice %1 {offsets = [0, 1, 0], sizes = [16, 1, 128], strides = [1, 1, 1]} : vector<16x16x128xbf16> to vector<16x1x128xbf16>
    %3 = vector.extract_strided_slice %1 {offsets = [0, 14, 0], sizes = [16, 1, 128], strides = [1, 1, 1]} : vector<16x16x128xbf16> to vector<16x1x128xbf16>
    %4 = tpu.concatenate %2, %1, %3 in 1 : vector<16x1x128xbf16>, vector<16x16x128xbf16>, vector<16x1x128xbf16> -> vector<16x18x128xbf16>
    %5 = vector.extract_strided_slice %4 {offsets = [1, 0, 0], sizes = [1, 18, 128], strides = [1, 1, 1]} : vector<16x18x128xbf16> to vector<1x18x128xbf16>
    %6 = vector.extract_strided_slice %4 {offsets = [14, 0, 0], sizes = [1, 18, 128], strides = [1, 1, 1]} : vector<16x18x128xbf16> to vector<1x18x128xbf16>
    %7 = tpu.concatenate %5, %4, %6 in 0 : vector<1x18x128xbf16>, vector<16x18x128xbf16>, vector<1x18x128xbf16> -> vector<18x18x128xbf16>
    %cst = arith.constant 0.000000e+00 : f32
    %8 = vector.broadcast %cst : f32 to vector<256x128xf32>
    %9 = vector.extract_strided_slice %7 {offsets = [0, 0, 0], sizes = [18, 16, 128], strides = [1, 1, 1]} : vector<18x18x128xbf16> to vector<18x16x128xbf16>
    %10 = vector.extract_strided_slice %9 {offsets = [0, 0, 0], sizes = [16, 16, 128], strides = [1, 1, 1]} : vector<18x16x128xbf16> to vector<16x16x128xbf16>
    %11 = vector.extract_strided_slice %9 {offsets = [1, 0, 0], sizes = [16, 16, 128], strides = [1, 1, 1]} : vector<18x16x128xbf16> to vector<16x16x128xbf16>
    %12 = vector.extract_strided_slice %9 {offsets = [2, 0, 0], sizes = [16, 16, 128], strides = [1, 1, 1]} : vector<18x16x128xbf16> to vector<16x16x128xbf16>
    %13 = tpu.concatenate %10, %11, %12 in 2 : vector<16x16x128xbf16>, vector<16x16x128xbf16>, vector<16x16x128xbf16> -> vector<16x16x384xbf16>
    %14 = vector.shape_cast %13 : vector<16x16x384xbf16> to vector<256x384xbf16>
    %c0_3 = arith.constant 0 : index
    %c0_4 = arith.constant 0 : index
    %c0_5 = arith.constant 0 : index
    %15 = vector.load %arg2[%c0_3, %c0_4, %c0_5] : memref<3x384x128xbf16, #tpu.memory_space<vmem>>, vector<1x384x128xbf16>
    %16 = vector.shape_cast %15 : vector<1x384x128xbf16> to vector<384x128xbf16>
    %cst_6 = arith.constant dense<0.000000e+00> : vector<256x128xf32>
    %17 = tpu.matmul %14, %16, %cst_6 {dimension_numbers = #tpu.dot_dimension_numbers<[1], [0], [0], [1], [0, 0, 1, 1], [], []>} : vector<256x384xbf16>, vector<384x128xbf16>, vector<256x128xf32> -> vector<256x128xf32>
    %18 = arith.addf %8, %17 : vector<256x128xf32>
    %19 = vector.extract_strided_slice %7 {offsets = [0, 1, 0], sizes = [18, 16, 128], strides = [1, 1, 1]} : vector<18x18x128xbf16> to vector<18x16x128xbf16>
    %20 = vector.extract_strided_slice %19 {offsets = [0, 0, 0], sizes = [16, 16, 128], strides = [1, 1, 1]} : vector<18x16x128xbf16> to vector<16x16x128xbf16>
    %21 = vector.extract_strided_slice %19 {offsets = [1, 0, 0], sizes = [16, 16, 128], strides = [1, 1, 1]} : vector<18x16x128xbf16> to vector<16x16x128xbf16>
    %22 = vector.extract_strided_slice %19 {offsets = [2, 0, 0], sizes = [16, 16, 128], strides = [1, 1, 1]} : vector<18x16x128xbf16> to vector<16x16x128xbf16>
    %23 = tpu.concatenate %20, %21, %22 in 2 : vector<16x16x128xbf16>, vector<16x16x128xbf16>, vector<16x16x128xbf16> -> vector<16x16x384xbf16>
    %24 = vector.shape_cast %23 : vector<16x16x384xbf16> to vector<256x384xbf16>
    %c1 = arith.constant 1 : index
    %c0_7 = arith.constant 0 : index
    %c0_8 = arith.constant 0 : index
    %25 = vector.load %arg2[%c1, %c0_7, %c0_8] : memref<3x384x128xbf16, #tpu.memory_space<vmem>>, vector<1x384x128xbf16>
    %26 = vector.shape_cast %25 : vector<1x384x128xbf16> to vector<384x128xbf16>
    %cst_9 = arith.constant dense<0.000000e+00> : vector<256x128xf32>
    %27 = tpu.matmul %24, %26, %cst_9 {dimension_numbers = #tpu.dot_dimension_numbers<[1], [0], [0], [1], [0, 0, 1, 1], [], []>} : vector<256x384xbf16>, vector<384x128xbf16>, vector<256x128xf32> -> vector<256x128xf32>
    %28 = arith.addf %18, %27 : vector<256x128xf32>
    %29 = vector.extract_strided_slice %7 {offsets = [0, 2, 0], sizes = [18, 16, 128], strides = [1, 1, 1]} : vector<18x18x128xbf16> to vector<18x16x128xbf16>
    %30 = vector.extract_strided_slice %29 {offsets = [0, 0, 0], sizes = [16, 16, 128], strides = [1, 1, 1]} : vector<18x16x128xbf16> to vector<16x16x128xbf16>
    %31 = vector.extract_strided_slice %29 {offsets = [1, 0, 0], sizes = [16, 16, 128], strides = [1, 1, 1]} : vector<18x16x128xbf16> to vector<16x16x128xbf16>
    %32 = vector.extract_strided_slice %29 {offsets = [2, 0, 0], sizes = [16, 16, 128], strides = [1, 1, 1]} : vector<18x16x128xbf16> to vector<16x16x128xbf16>
    %33 = tpu.concatenate %30, %31, %32 in 2 : vector<16x16x128xbf16>, vector<16x16x128xbf16>, vector<16x16x128xbf16> -> vector<16x16x384xbf16>
    %34 = vector.shape_cast %33 : vector<16x16x384xbf16> to vector<256x384xbf16>
    %c2 = arith.constant 2 : index
    %c0_10 = arith.constant 0 : index
    %c0_11 = arith.constant 0 : index
    %35 = vector.load %arg2[%c2, %c0_10, %c0_11] : memref<3x384x128xbf16, #tpu.memory_space<vmem>>, vector<1x384x128xbf16>
    %36 = vector.shape_cast %35 : vector<1x384x128xbf16> to vector<384x128xbf16>
    %cst_12 = arith.constant dense<0.000000e+00> : vector<256x128xf32>
    %37 = tpu.matmul %34, %36, %cst_12 {dimension_numbers = #tpu.dot_dimension_numbers<[1], [0], [0], [1], [0, 0, 1, 1], [], []>} : vector<256x384xbf16>, vector<384x128xbf16>, vector<256x128xf32> -> vector<256x128xf32>
    %38 = arith.addf %28, %37 : vector<256x128xf32>
    %c0_13 = arith.constant 0 : index
    %c0_14 = arith.constant 0 : index
    %39 = vector.load %arg3[%c0_13, %c0_14] : memref<1x128xf32, #tpu.memory_space<vmem>>, vector<1x128xf32>
    %c0_15 = arith.constant 0 : index
    %c0_16 = arith.constant 0 : index
    %40 = vector.load %arg4[%c0_15, %c0_16] : memref<1x128xf32, #tpu.memory_space<vmem>>, vector<1x128xf32>
    %cst_17 = arith.constant dense<0.000000e+00> : vector<128xf32>
    %41 = vector.multi_reduction <add>, %38, %cst_17 [0] : vector<256x128xf32> to vector<128xf32>
    %42 = vector.shape_cast %41 : vector<128xf32> to vector<1x128xf32>
    %cst_18 = arith.constant 2.560000e+02 : f32
    %43 = vector.broadcast %cst_18 : f32 to vector<1x128xf32>
    %44 = arith.divf %42, %43 : vector<1x128xf32>
    %45 = arith.mulf %38, %38 : vector<256x128xf32>
    %cst_19 = arith.constant dense<0.000000e+00> : vector<128xf32>
    %46 = vector.multi_reduction <add>, %45, %cst_19 [0] : vector<256x128xf32> to vector<128xf32>
    %47 = vector.shape_cast %46 : vector<128xf32> to vector<1x128xf32>
    %cst_20 = arith.constant 2.560000e+02 : f32
    %48 = vector.broadcast %cst_20 : f32 to vector<1x128xf32>
    %49 = arith.divf %47, %48 : vector<1x128xf32>
    %50 = arith.mulf %44, %44 : vector<1x128xf32>
    %51 = arith.subf %49, %50 : vector<1x128xf32>
    %cst_21 = arith.constant 9.99999974E-6 : f32
    %52 = vector.broadcast %cst_21 : f32 to vector<1x128xf32>
    %53 = arith.addf %51, %52 : vector<1x128xf32>
    %54 = math.rsqrt %53 : vector<1x128xf32>
    %55 = vector.broadcast %44 : vector<1x128xf32> to vector<256x128xf32>
    %56 = arith.subf %38, %55 : vector<256x128xf32>
    %57 = vector.broadcast %54 : vector<1x128xf32> to vector<256x128xf32>
    %58 = arith.mulf %56, %57 : vector<256x128xf32>
    %59 = vector.broadcast %39 : vector<1x128xf32> to vector<256x128xf32>
    %60 = arith.mulf %58, %59 : vector<256x128xf32>
    %61 = vector.broadcast %40 : vector<1x128xf32> to vector<256x128xf32>
    %62 = arith.addf %60, %61 : vector<256x128xf32>
    %cst_22 = arith.constant 0.000000e+00 : f32
    %63 = vector.broadcast %cst_22 : f32 to vector<256x128xf32>
    %64 = arith.maximumf %62, %63 : vector<256x128xf32>
    %65 = arith.truncf %64 : vector<256x128xf32> to vector<256x128xbf16>
    %66 = vector.shape_cast %65 : vector<256x128xbf16> to vector<16x16x128xbf16>
    %67 = vector.extract_strided_slice %66 {offsets = [0, 1, 0], sizes = [16, 1, 128], strides = [1, 1, 1]} : vector<16x16x128xbf16> to vector<16x1x128xbf16>
    %68 = vector.extract_strided_slice %66 {offsets = [0, 14, 0], sizes = [16, 1, 128], strides = [1, 1, 1]} : vector<16x16x128xbf16> to vector<16x1x128xbf16>
    %69 = tpu.concatenate %67, %66, %68 in 1 : vector<16x1x128xbf16>, vector<16x16x128xbf16>, vector<16x1x128xbf16> -> vector<16x18x128xbf16>
    %70 = vector.extract_strided_slice %69 {offsets = [1, 0, 0], sizes = [1, 18, 128], strides = [1, 1, 1]} : vector<16x18x128xbf16> to vector<1x18x128xbf16>
    %71 = vector.extract_strided_slice %69 {offsets = [14, 0, 0], sizes = [1, 18, 128], strides = [1, 1, 1]} : vector<16x18x128xbf16> to vector<1x18x128xbf16>
    %72 = tpu.concatenate %70, %69, %71 in 0 : vector<1x18x128xbf16>, vector<16x18x128xbf16>, vector<1x18x128xbf16> -> vector<18x18x128xbf16>
    %cst_23 = arith.constant 0.000000e+00 : f32
    %73 = vector.broadcast %cst_23 : f32 to vector<256x128xf32>
    %74 = vector.extract_strided_slice %72 {offsets = [0, 0, 0], sizes = [18, 16, 128], strides = [1, 1, 1]} : vector<18x18x128xbf16> to vector<18x16x128xbf16>
    %75 = vector.extract_strided_slice %74 {offsets = [0, 0, 0], sizes = [16, 16, 128], strides = [1, 1, 1]} : vector<18x16x128xbf16> to vector<16x16x128xbf16>
    %76 = vector.extract_strided_slice %74 {offsets = [1, 0, 0], sizes = [16, 16, 128], strides = [1, 1, 1]} : vector<18x16x128xbf16> to vector<16x16x128xbf16>
    %77 = vector.extract_strided_slice %74 {offsets = [2, 0, 0], sizes = [16, 16, 128], strides = [1, 1, 1]} : vector<18x16x128xbf16> to vector<16x16x128xbf16>
    %78 = tpu.concatenate %75, %76, %77 in 2 : vector<16x16x128xbf16>, vector<16x16x128xbf16>, vector<16x16x128xbf16> -> vector<16x16x384xbf16>
    %79 = vector.shape_cast %78 : vector<16x16x384xbf16> to vector<256x384xbf16>
    %c0_24 = arith.constant 0 : index
    %c0_25 = arith.constant 0 : index
    %c0_26 = arith.constant 0 : index
    %80 = vector.load %arg5[%c0_24, %c0_25, %c0_26] : memref<3x384x128xbf16, #tpu.memory_space<vmem>>, vector<1x384x128xbf16>
    %81 = vector.shape_cast %80 : vector<1x384x128xbf16> to vector<384x128xbf16>
    %cst_27 = arith.constant dense<0.000000e+00> : vector<256x128xf32>
    %82 = tpu.matmul %79, %81, %cst_27 {dimension_numbers = #tpu.dot_dimension_numbers<[1], [0], [0], [1], [0, 0, 1, 1], [], []>} : vector<256x384xbf16>, vector<384x128xbf16>, vector<256x128xf32> -> vector<256x128xf32>
    %83 = arith.addf %73, %82 : vector<256x128xf32>
    %84 = vector.extract_strided_slice %72 {offsets = [0, 1, 0], sizes = [18, 16, 128], strides = [1, 1, 1]} : vector<18x18x128xbf16> to vector<18x16x128xbf16>
    %85 = vector.extract_strided_slice %84 {offsets = [0, 0, 0], sizes = [16, 16, 128], strides = [1, 1, 1]} : vector<18x16x128xbf16> to vector<16x16x128xbf16>
    %86 = vector.extract_strided_slice %84 {offsets = [1, 0, 0], sizes = [16, 16, 128], strides = [1, 1, 1]} : vector<18x16x128xbf16> to vector<16x16x128xbf16>
    %87 = vector.extract_strided_slice %84 {offsets = [2, 0, 0], sizes = [16, 16, 128], strides = [1, 1, 1]} : vector<18x16x128xbf16> to vector<16x16x128xbf16>
    %88 = tpu.concatenate %85, %86, %87 in 2 : vector<16x16x128xbf16>, vector<16x16x128xbf16>, vector<16x16x128xbf16> -> vector<16x16x384xbf16>
    %89 = vector.shape_cast %88 : vector<16x16x384xbf16> to vector<256x384xbf16>
    %c1_28 = arith.constant 1 : index
    %c0_29 = arith.constant 0 : index
    %c0_30 = arith.constant 0 : index
    %90 = vector.load %arg5[%c1_28, %c0_29, %c0_30] : memref<3x384x128xbf16, #tpu.memory_space<vmem>>, vector<1x384x128xbf16>
    %91 = vector.shape_cast %90 : vector<1x384x128xbf16> to vector<384x128xbf16>
    %cst_31 = arith.constant dense<0.000000e+00> : vector<256x128xf32>
    %92 = tpu.matmul %89, %91, %cst_31 {dimension_numbers = #tpu.dot_dimension_numbers<[1], [0], [0], [1], [0, 0, 1, 1], [], []>} : vector<256x384xbf16>, vector<384x128xbf16>, vector<256x128xf32> -> vector<256x128xf32>
    %93 = arith.addf %83, %92 : vector<256x128xf32>
    %94 = vector.extract_strided_slice %72 {offsets = [0, 2, 0], sizes = [18, 16, 128], strides = [1, 1, 1]} : vector<18x18x128xbf16> to vector<18x16x128xbf16>
    %95 = vector.extract_strided_slice %94 {offsets = [0, 0, 0], sizes = [16, 16, 128], strides = [1, 1, 1]} : vector<18x16x128xbf16> to vector<16x16x128xbf16>
    %96 = vector.extract_strided_slice %94 {offsets = [1, 0, 0], sizes = [16, 16, 128], strides = [1, 1, 1]} : vector<18x16x128xbf16> to vector<16x16x128xbf16>
    %97 = vector.extract_strided_slice %94 {offsets = [2, 0, 0], sizes = [16, 16, 128], strides = [1, 1, 1]} : vector<18x16x128xbf16> to vector<16x16x128xbf16>
    %98 = tpu.concatenate %95, %96, %97 in 2 : vector<16x16x128xbf16>, vector<16x16x128xbf16>, vector<16x16x128xbf16> -> vector<16x16x384xbf16>
    %99 = vector.shape_cast %98 : vector<16x16x384xbf16> to vector<256x384xbf16>
    %c2_32 = arith.constant 2 : index
    %c0_33 = arith.constant 0 : index
    %c0_34 = arith.constant 0 : index
    %100 = vector.load %arg5[%c2_32, %c0_33, %c0_34] : memref<3x384x128xbf16, #tpu.memory_space<vmem>>, vector<1x384x128xbf16>
    %101 = vector.shape_cast %100 : vector<1x384x128xbf16> to vector<384x128xbf16>
    %cst_35 = arith.constant dense<0.000000e+00> : vector<256x128xf32>
    %102 = tpu.matmul %99, %101, %cst_35 {dimension_numbers = #tpu.dot_dimension_numbers<[1], [0], [0], [1], [0, 0, 1, 1], [], []>} : vector<256x384xbf16>, vector<384x128xbf16>, vector<256x128xf32> -> vector<256x128xf32>
    %103 = arith.addf %93, %102 : vector<256x128xf32>
    %c0_36 = arith.constant 0 : index
    %c0_37 = arith.constant 0 : index
    %104 = vector.load %arg6[%c0_36, %c0_37] : memref<1x128xf32, #tpu.memory_space<vmem>>, vector<1x128xf32>
    %c0_38 = arith.constant 0 : index
    %c0_39 = arith.constant 0 : index
    %105 = vector.load %arg7[%c0_38, %c0_39] : memref<1x128xf32, #tpu.memory_space<vmem>>, vector<1x128xf32>
    %cst_40 = arith.constant dense<0.000000e+00> : vector<128xf32>
    %106 = vector.multi_reduction <add>, %103, %cst_40 [0] : vector<256x128xf32> to vector<128xf32>
    %107 = vector.shape_cast %106 : vector<128xf32> to vector<1x128xf32>
    %cst_41 = arith.constant 2.560000e+02 : f32
    %108 = vector.broadcast %cst_41 : f32 to vector<1x128xf32>
    %109 = arith.divf %107, %108 : vector<1x128xf32>
    %110 = arith.mulf %103, %103 : vector<256x128xf32>
    %cst_42 = arith.constant dense<0.000000e+00> : vector<128xf32>
    %111 = vector.multi_reduction <add>, %110, %cst_42 [0] : vector<256x128xf32> to vector<128xf32>
    %112 = vector.shape_cast %111 : vector<128xf32> to vector<1x128xf32>
    %cst_43 = arith.constant 2.560000e+02 : f32
    %113 = vector.broadcast %cst_43 : f32 to vector<1x128xf32>
    %114 = arith.divf %112, %113 : vector<1x128xf32>
    %115 = arith.mulf %109, %109 : vector<1x128xf32>
    %116 = arith.subf %114, %115 : vector<1x128xf32>
    %cst_44 = arith.constant 9.99999974E-6 : f32
    %117 = vector.broadcast %cst_44 : f32 to vector<1x128xf32>
    %118 = arith.addf %116, %117 : vector<1x128xf32>
    %119 = math.rsqrt %118 : vector<1x128xf32>
    %120 = vector.broadcast %109 : vector<1x128xf32> to vector<256x128xf32>
    %121 = arith.subf %103, %120 : vector<256x128xf32>
    %122 = vector.broadcast %119 : vector<1x128xf32> to vector<256x128xf32>
    %123 = arith.mulf %121, %122 : vector<256x128xf32>
    %124 = vector.broadcast %104 : vector<1x128xf32> to vector<256x128xf32>
    %125 = arith.mulf %123, %124 : vector<256x128xf32>
    %126 = vector.broadcast %105 : vector<1x128xf32> to vector<256x128xf32>
    %127 = arith.addf %125, %126 : vector<256x128xf32>
    %128 = arith.extf %1 : vector<16x16x128xbf16> to vector<16x16x128xf32>
    %129 = vector.shape_cast %127 : vector<256x128xf32> to vector<16x16x128xf32>
    %130 = arith.addf %128, %129 : vector<16x16x128xf32>
    %c0_45 = arith.constant 0 : index
    %c0_46 = arith.constant 0 : index
    %c0_47 = arith.constant 0 : index
    %c0_48 = arith.constant 0 : index
    %131 = vector.load %arg8[%c0_45, %c0_46, %c0_47, %c0_48] : memref<1x16x16x128xf32, #tpu.memory_space<vmem>>, vector<1x16x16x128xf32>
    %132 = vector.shape_cast %131 : vector<1x16x16x128xf32> to vector<16x16x128xf32>
    %133 = vector.shape_cast %130 : vector<16x16x128xf32> to vector<1x16x16x128xf32>
    tpu.vector_store %arg8[%c0_45, %c0_46, %c0_47, %c0_48], %133 {strides = array<i32>} : memref<1x16x16x128xf32, #tpu.memory_space<vmem>>, vector<1x16x16x128xf32>,
    return
  }
  func.func @transform_0(%arg0: i32) -> (i32, i32, i32, i32) {
    %c0_i32 = arith.constant 0 : i32
    %c0_i32_0 = arith.constant 0 : i32
    %c0_i32_1 = arith.constant 0 : i32
    %c0_i32_2 = arith.constant 0 : i32
    return %arg0, %c0_i32, %c0_i32_0, %c0_i32_1 : i32, i32, i32, i32
  }
  func.func @transform_1(%arg0: i32) -> (i32, i32, i32) {
    %c0_i32 = arith.constant 0 : i32
    %c0_i32_0 = arith.constant 0 : i32
    %c0_i32_1 = arith.constant 0 : i32
    %c0_i32_2 = arith.constant 0 : i32
    return %c0_i32, %c0_i32_0, %c0_i32_1 : i32, i32, i32
  }
  func.func @transform_2(%arg0: i32) -> (i32, i32) {
    %c0_i32 = arith.constant 0 : i32
    %c0_i32_0 = arith.constant 0 : i32
    %c0_i32_1 = arith.constant 0 : i32
    return %c0_i32, %c0_i32_0 : i32, i32
  }
  func.func @transform_3(%arg0: i32) -> (i32, i32) {
    %c0_i32 = arith.constant 0 : i32
    %c0_i32_0 = arith.constant 0 : i32
    %c0_i32_1 = arith.constant 0 : i32
    return %c0_i32, %c0_i32_0 : i32, i32
  }
  func.func @transform_4(%arg0: i32) -> (i32, i32, i32) {
    %c0_i32 = arith.constant 0 : i32
    %c0_i32_0 = arith.constant 0 : i32
    %c0_i32_1 = arith.constant 0 : i32
    %c0_i32_2 = arith.constant 0 : i32
    return %c0_i32, %c0_i32_0, %c0_i32_1 : i32, i32, i32
  }
  func.func @transform_5(%arg0: i32) -> (i32, i32) {
    %c0_i32 = arith.constant 0 : i32
    %c0_i32_0 = arith.constant 0 : i32
    %c0_i32_1 = arith.constant 0 : i32
    return %c0_i32, %c0_i32_0 : i32, i32
  }
  func.func @transform_6(%arg0: i32) -> (i32, i32) {
    %c0_i32 = arith.constant 0 : i32
    %c0_i32_0 = arith.constant 0 : i32
    %c0_i32_1 = arith.constant 0 : i32
    return %c0_i32, %c0_i32_0 : i32, i32
  }
  func.func @transform_7(%arg0: i32) -> (i32, i32, i32, i32) {
    %c0_i32 = arith.constant 0 : i32
    %c0_i32_0 = arith.constant 0 : i32
    %c0_i32_1 = arith.constant 0 : i32
    %c0_i32_2 = arith.constant 0 : i32
    return %arg0, %c0_i32, %c0_i32_0, %c0_i32_1 : i32, i32, i32, i32
  }
}

</mosaic_0001>

<bundles_post_ra>
// kernel: tpu_custom_call.1
= control target key start
LH: loop header
LB: loop body
LE: loop exit
PB: predicated region body
PF: predicated region fallthrough
CT: control target
= control target key end

     0   :  { %12 = vsyncpa [#allocation3], 0  ;;  %s10441_s0 = inlined_call_operand.hbm [shape: bf16[2,16,16,128], index: 0, kind: input, shape index: {}]   ;;  %s10442_s1 = inlined_call_operand.hbm [shape: bf16[3,384,128], index: 1, kind: input, shape index: {}]   ;;  %s10443_s2 = inlined_call_operand.vmem [shape: f32[1,128], index: 2, kind: input, shape index: {}]   ;;  %s10444_s3 = inlined_call_operand.vmem [shape: f32[1,128], index: 3, kind: input, shape index: {}]   ;;  %s10445_s4 = inlined_call_operand.hbm [shape: bf16[3,384,128], index: 4, kind: input, shape index: {}]   ;;  %s10446_s5 = inlined_call_operand.vmem [shape: f32[1,128], index: 5, kind: input, shape index: {}]   ;;  %s10447_s6 = inlined_call_operand.vmem [shape: f32[1,128], index: 6, kind: input, shape index: {}]   ;;  %s10448_s7 = inlined_call_operand.hbm [shape: f32[2,16,16,128], index: 7, kind: output, shape index: {}]  }
   0x1   :  { %14 = vsyncpa [#allocation3 + $0x1], 0 }
   0x2   :  { %15 = vsyncpa [#allocation6], 0 }
   0x3   :  { %16 = vsyncpa [#allocation4], 0 }
   0x4   :  { %18 = vsyncpa [#allocation4 + $0x1], 0  ;;  %s7684_s24 = smov 0   ;;  %s7686_s25 = smov 0  }
   0x5   :  { %s7688_s26 = smov 0   ;;  %s7690_s27 = smov 0  }
   0x6 LB: > { %s7705_s28 = sadd.s32 4294967295, %s7634_s27   ;;  %s5539_s29 = sadd.s32 4294967294, %s7634_s27   ;;  %s7634_s27 = sphi %s7690_s27, %s10638_s27   ;;  %s7630_s26 = sphi %s7688_s26, %s10637_s26   ;;  %s7626_s25 = sphi %s7686_s25, %s10636_s25   ;;  %s7622_s24 = sphi %s7684_s24, %s10635_s24  }
   0x7   : > { %p44_p0 = scmp.ne.s32.totalorder %s7626_s25, %s7622_s24  ;;  %p10449_p1 = scmp.eq.s32.totalorder %s7705_s28, 0 }
   0x8   : > { %p200_p3 = scmp.eq.s32.totalorder %s5539_s29, 1  ;;  %p5540_p5 = scmp.ge.s32.totalorder %s7634_s27, 1 }
   0x9   : > { %p7714_p4 = por %p10449_p1, %p44_p0  ;;  %p207_p7 = scmp.lt.s32.totalorder %s7634_s27, 3 }
   0xa   : > { %p7719_p6 = por %p200_p3, %p44_p0  ;;  %s7636_s10 = smov [#allocation5]  }
   0xb   : > { %s10481_s30 = scalar_select %p7714_p4, 1, 0 }
   0xc   : > { %s10482_s8 = scalar_select %p7719_p6, 1, 0 }
   0xd   : > { %p7724_p8 = pnand %p5540_p5, %p207_p7  ;;  %s219_s11 = sshll.u32 %s7636_s10, 4  ;;  %s7728_s11 = int_to_ptr.vmem [resolvable:$true] %s219_s11 }
   0xe   : > { %s7637_s13 = smov [#allocation7]   ;;  %s7478_s17 = scalar_lea.hbm %s10442_s1, 9216 }
   0xf   : > { %p7191_p9 = pneg %p7724_p8  ;;  %s238_s14 = sshll.u32 %s7637_s13, 4  ;;  %s7739_s14 = int_to_ptr.vmem [resolvable:$true] %s238_s14 }
  0x10   : > { %p7479_p12 = scmp.ne.s32.totalorder %s10442_s1, %s7478_s17  ;;  %p7485_p5 = scmp.lt.u32.totalorder %s7478_s17, %s10442_s1 }
  0x11   : > { %p7735_p11 = pnand %p7191_p9, %p10449_p1 }
  0x13   : > { %p7480_p13 = pneg %p7735_p11 }
  0x15   : > { %p7481_p0 = pnand %p7480_p13, %p7479_p12 }
  0x17   : > { %p7482_p3 = pneg %p7481_p0 }
  0x19   : > { %p7487_p7 = pnand %p7485_p5, %p7482_p3 }
  0x1b   : > { %7490 = shalt.err (!%p7487_p7)
}
  0x1c   : > { %s7491_s22 = scalar_lea.vmem %s7728_s11, 9216  ;;  %p7499_p2 = scmp.lt.s32.totalorder %s7728_s11, %s7728_s11 }
  0x1d   : > { %p7492_p9 = scmp.ne.s32.totalorder %s7728_s11, %s7491_s22  ;;  %p7500_p12 = scmp.lt.s32.totalorder %s7491_s22, %s7491_s22 }
  0x1f   : > { %p7494_p10 = pnand %p7492_p9, %p7480_p13  ;;  %p7501_p0 = por %p7500_p12, %p7499_p2 }
  0x21   : > { %p7495_p1 = pneg %p7494_p10 }
  0x23   : > { %p7502_p6 = pnand %p7501_p0, %p7495_p1 }
  0x25   : > { %7505 = shalt.err (!%p7502_p6)
}
  0x26   : > { %s10450_s23 = smov 64   ;;  %s7639_s29 = smov 4  }
  0x27   : > { %7194 = dma.hbm_to_vmem [thread:$0]  (!%p7735_p11), %s10442_s1, 9216, %s7728_s11, [#allocation6], %s10450_s23, %s10450_s23, %s7639_s29  }
  0x28   : > { %s7506_s17 = scalar_lea.hbm %s10445_s4, 9216 }
  0x29   : > { %p7507_p1 = scmp.ne.s32.totalorder %s10445_s4, %s7506_s17  ;;  %p7513_p10 = scmp.lt.u32.totalorder %s7506_s17, %s10445_s4 }
  0x2b   : > { %p7509_p2 = pnand %p7507_p1, %p7480_p13 }
  0x2d   : > { %p7510_p6 = pneg %p7509_p2 }
  0x2f   : > { %p7515_p3 = pnand %p7513_p10, %p7510_p6 }
  0x31   : > { %7518 = shalt.err (!%p7515_p3)
}
  0x32   : > { %s7519_s11 = scalar_lea.vmem %s7739_s14, 9216  ;;  %p7527_p12 = scmp.lt.s32.totalorder %s7739_s14, %s7739_s14 }
  0x33   : > { %p7520_p5 = scmp.ne.s32.totalorder %s7739_s14, %s7519_s11  ;;  %p7528_p0 = scmp.lt.s32.totalorder %s7519_s11, %s7519_s11 }
  0x35   : > { %p7522_p7 = pnand %p7520_p5, %p7480_p13  ;;  %p7529_p1 = por %p7528_p0, %p7527_p12 }
  0x37   : > { %p7523_p9 = pneg %p7522_p7 }
  0x39   : > { %p7530_p2 = pnand %p7529_p1, %p7523_p9 }
  0x3b   : > { %7533 = shalt.err (!%p7530_p2)
}
  0x3c   : > { %7197 = dma.hbm_to_vmem [thread:$0]  (!%p7735_p11), %s10445_s4, 9216, %s7739_s14, [#allocation6], %s10450_s23, %s10450_s23, %s7639_s29  }
  0x3d   : > { %s7800_s12 = sadd.s32 1, %s7634_s27   ;;  %s31_s13 = sadd.s32 1, %s7630_s26 }
  0x3e   : > { %s28_s15 = ssub.s32 %s7634_s27, %s7800_s12  ;;  %p38_p13 = scmp.ne.s32.totalorder %s7630_s26, %s7626_s25 }
  0x3f   : > { %p29_p6 = scmp.eq.s32.totalorder %s28_s15, 0  ;;  %p39_p10 = scmp.eq.s32.totalorder %s7634_s27, 0 }
  0x40   : > { %p10485_p3 = scmp.eq.s32.totalorder %s7705_s28, 1  ;;  %p7208_p7 = scmp.lt.s32.totalorder %s7634_s27, 2 }
  0x41   : > { %s7816_s17 = scalar_select %p29_p6, %s7630_s26, %s31_s13  }
  0x42   : > { %p7810_p5 = por %p10485_p3, %p38_p13  ;;  %p40_p9 = por %p39_p10, %p38_p13 }
  0x43   : > { %s258_s18 = sand.u32 1, %s7630_s26   ;;  %s5753_s14 = sshll.u32 %s7634_s27, 11 }
  0x44   : > { %s10486_s16 = scalar_select %p7810_p5, 1, 0 }
  0x45   : > { %s5544_s19 = sshll.u32 %s258_s18, 7  ;;  %s7823_s11 = scalar_lea.hbm %s10441_s0, %s5753_s14 }
  0x46   : > { %s262_s22 = scalar_lea.vmem [#allocation2], %s5544_s19  ;;  %p7827_p11 = pnand %p7208_p7, %p40_p9 }
  0x47   : > { %s269_s10 = sshll.u32 %s262_s22, 4  ;;  %s7831_s15 = scalar_lea.sflag [#allocation3], %s258_s18  ;;  %s7825_s10 = int_to_ptr.vmem [resolvable:$true] %s269_s10 }
  0x48   : > { %s7534_s23 = scalar_lea.hbm %s7823_s11, 2048  ;;  %p7536_p0 = pneg %p7827_p11 }
  0x49   : > { %p7535_p12 = scmp.ne.s32.totalorder %s7823_s11, %s7534_s23  ;;  %s7539_s20 = scalar_lea.hbm %s10441_s0, 4096 }
  0x4a   : > { %p7540_p13 = scmp.lt.u32.totalorder %s7823_s11, %s10441_s0  ;;  %p7541_p6 = scmp.lt.u32.totalorder %s7539_s20, %s7534_s23 }
  0x4b   : > { %p7537_p1 = pnand %p7536_p0, %p7535_p12  ;;  %p7543_p3 = scmp.lt.u32.totalorder %s7534_s23, %s7823_s11 }
  0x4c   : > { %p7542_p10 = por %p7541_p6, %p7540_p13 }
  0x4d   : > { %p7538_p2 = pneg %p7537_p1 }
  0x4e   : > { %p7544_p7 = por %p7543_p3, %p7542_p10 }
  0x50   : > { %p7545_p9 = pnand %p7544_p7, %p7538_p2 }
  0x52   : > { %7548 = shalt.err (!%p7545_p9)
}
  0x53   : > { %s7549_s18 = scalar_lea.vmem %s7825_s10, 2048  ;;  %s7640_s19 = smov [#allocation2]  }
  0x54   : > { %p7550_p12 = scmp.ne.s32.totalorder %s7825_s10, %s7549_s18  ;;  %s7554_s14 = sshll.u32 %s7640_s19, 4  ;;  %s7555_s14 = int_to_ptr.vmem [resolvable:$false] %s7554_s14 }
  0x55   : > { %s7556_s21 = scalar_lea.vmem %s7555_s14, 4096  ;;  %p7557_p4 = scmp.lt.s32.totalorder %s7825_s10, %s7555_s14 }
  0x56   : > { %p7552_p1 = pnand %p7550_p12, %p7536_p0  ;;  %p7558_p13 = scmp.lt.s32.totalorder %s7556_s21, %s7549_s18 }
  0x58   : > { %p7553_p5 = pneg %p7552_p1  ;;  %p7559_p6 = por %p7558_p13, %p7557_p4 }
  0x5a   : > { %p7560_p10 = pnand %p7559_p6, %p7553_p5 }
  0x5c   : > { %7563 = shalt.err (!%p7560_p10)
}
  0x5d   : > { %s10488_s23 = smov 64   ;;  %281 = sbr.rel (%p7724_p8) target bundleno = 1387 (0x56b), region = 48 }
  0x5e   : > { %7201 = dma.hbm_to_vmem [thread:$0]  (!%p7827_p11), %s7823_s11, 2048, %s7825_s10, %s7831_s15, %s10488_s23, %s10488_s23, %s7639_s29  }
  0x64   : > { %s7865_s20 = sand.u32 1, %s7626_s25   ;;  %p10489_p4 = scmp.ne.s32.totalorder %s10481_s30, 0 }
  0x65   : > { %s5548_s22 = sshll.u32 %s7865_s20, 7  ;;  %s284_s18 = scalar_lea.sflag [#allocation3], %s7865_s20 }
  0x66   : > { %s7869_s19 = scalar_lea.vmem [#allocation2], %s5548_s22 }
  0x67   : > { %7609 = dma.done.wait (%p10489_p4), %s284_s18, 2048  }
  0x68   : > { %7611 = vsyncadd (%p10489_p4), %s284_s18, 4294965248  ;;  %p10490_p5 = scmp.eq.s32.totalorder %s7705_s28, 0 }
  0x6a   : > { %7613 = dma.done.wait (%p10490_p5), [#allocation6], 18432   ;;  %p10491_p8 = pmov %p10490_p5 }
  0x6b   : > { %v7250_v0 = vld [vmem:[#allocation5 + $0x100] sm:$0xff]   ;;  %v7254_v4 = vld [vmem:[#allocation5 + $0x108] sm:$0xff]   ;;  %v7258_v8 = vld [vmem:[#allocation5 + $0x110] sm:$0xff]   ;;  %vm760_vm0 = vsmask.f32 256  ;;  %vm759_vm1 = vcmask 1040384  }
  0x6c   : > { %7615 = vsyncadd (%p10491_p8), [#allocation6], 4294948864  ;;  %v7251_v1 = vld [vmem:[#allocation5 + $0x40] sm:$0xff]   ;;  %5755 = vmatprep.subr.bf16.mxu0 %v7250_v0  ;;  %v7255_v5 = vld [vmem:[#allocation5 + $0x48] sm:$0xff]   ;;  %v10492_v56 = vmov 0  ;;  %vm2064_vm4 = vcmask 1046528  }
  0x6d   : > { %v7252_v2 = vld [vmem:[#allocation5 + $0xc0] sm:$0xff]   ;;  %5891 = vmatprep.subr.bf16.mxu1 %v7251_v1  ;;  %v7256_v6 = vld [vmem:[#allocation5 + $0xc8] sm:$0xff]   ;;  %v7259_v9 = vld [vmem:[#allocation5 + $0x50] sm:$0xff]   ;;  %vm842_vm3 = vsmask.f32 7424  ;;  %s5551_s21 = sshll.u32 %s7865_s20, 8 }
  0x6e   : > { %v7253_v3 = vld [vmem:[#allocation5] sm:$0xff]   ;;  %5756 = vmatpush3.bf16.msra.mxu0 %v7252_v2  ;;  %v7257_v7 = vld [vmem:[#allocation5 + $0x8] sm:$0xff]   ;;  %v7260_v10 = vld [vmem:[#allocation5 + $0xd0] sm:$0xff]   ;;  %s10223_s23 = scalar_lea.vmem [#allocation8], %s5551_s21  ;;  %s5754_s22 = sshll.u32 %s7705_s28, 12 }
  0x6f   : > { %5892 = vmatpush3.bf16.msra.mxu1 %v7253_v3  ;;  %5757 = vmatprep.subr.bf16.mxu0 %v7254_v4  ;;  %v7261_v11 = vld [vmem:[#allocation5 + $0x10] sm:$0xff]   ;;  %v7262_v12 = vld [vmem:[#allocation5 + $0x118] sm:$0xff]   ;;  %v7266_v16 = vld [vmem:[#allocation5 + $0x120] sm:$0xff]   ;;  %s5447_s18 = sshll.u32 %s10223_s23, 4  ;;  %s10375_s30 = scalar_lea.hbm %s10448_s7, %s5754_s22  ;;  %s10377_s18 = int_to_ptr.vmem [resolvable:$true] %s5447_s18 }
  0x70   : > { %5893 = vmatprep.subr.bf16.mxu1 %v7255_v5  ;;  %v7263_v13 = vld [vmem:[#allocation5 + $0x58] sm:$0xff]   ;;  %v7267_v17 = vld [vmem:[#allocation5 + $0x60] sm:$0xff]   ;;  %v7270_v20 = vld [vmem:[#allocation5 + $0x128] sm:$0xff]   ;;  %s5434_s9 = scalar_lea.sflag [#allocation4], %s7865_s20  ;;  %s7564_s29 = scalar_lea.vmem %s10377_s18, 4096 }
  0x71   : > { %v7264_v14 = vld [vmem:[#allocation5 + $0xd8] sm:$0xff]   ;;  %v7268_v18 = vld [vmem:[#allocation5 + $0xe0] sm:$0xff]   ;;  %v7271_v21 = vld [vmem:[#allocation5 + $0x68] sm:$0xff]   ;;  %p7565_p11 = scmp.ne.s32.totalorder %s10377_s18, %s7564_s29  ;;  %p10632_p0 = scmp.ne.s32.totalorder %s10486_s16, 0 }
  0x72   : > { %5758 = vmatpush3.bf16.msra.mxu0 %v7256_v6  ;;  %v7265_v15 = vld [vmem:[#allocation5 + $0x18] sm:$0xff]   ;;  %v7269_v19 = vld [vmem:[#allocation5 + $0x20] sm:$0xff]   ;;  %v7272_v22 = vld [vmem:[#allocation5 + $0xe8] sm:$0xff]   ;;  %s7641_s11 = smov [#allocation8]  }
  0x73   : > { %5894 = vmatpush3.bf16.msra.mxu1 %v7257_v7  ;;  %5759 = vmatprep.subr.bf16.mxu0 %v7258_v8  ;;  %v7273_v23 = vld [vmem:[#allocation5 + $0x28] sm:$0xff]   ;;  %v7274_v24 = vld [vmem:[#allocation5 + $0x130] sm:$0xff]   ;;  %v7278_v28 = vld [vmem:[#allocation5 + $0x138] sm:$0xff]   ;;  %p7566_p2 = pnand %p7565_p11, %p10632_p0  ;;  %s7568_s10 = sshll.u32 %s7641_s11, 4  ;;  %s7569_s10 = int_to_ptr.vmem [resolvable:$false] %s7568_s10 }
  0x74   : > { %5895 = vmatprep.subr.bf16.mxu1 %v7259_v9  ;;  %v7275_v25 = vld [vmem:[#allocation5 + $0x70] sm:$0xff]   ;;  %v7279_v29 = vld [vmem:[#allocation5 + $0x78] sm:$0xff]   ;;  %v327_v32 = vld [vmem:[%s7869_s19] sm:$0xf]  ;;  %s7570_s13 = scalar_lea.vmem %s7569_s10, 8192  ;;  %p7571_p7 = scmp.lt.s32.totalorder %s10377_s18, %s7569_s10 }
  0x75   : > { %v7276_v26 = vld [vmem:[#allocation5 + $0xf0] sm:$0xff]   ;;  %v7280_v30 = vld [vmem:[#allocation5 + $0xf8] sm:$0xff]   ;;  %v328_v33 = vld [vmem:[%s7869_s19 + $0x4] sm:$0xf]  ;;  %v5552_v35 = vcombine.low %v327_v32, %v327_v32  ;;  %p7567_p3 = pneg %p7566_p2  ;;  %p7572_p9 = scmp.lt.s32.totalorder %s7570_s13, %s7564_s29 }
  0x76   : > { %5760 = vmatpush3.bf16.msra.mxu0 %v7260_v10  ;;  %v7277_v27 = vld [vmem:[#allocation5 + $0x30] sm:$0xff]   ;;  %v7281_v31 = vld [vmem:[#allocation5 + $0x38] sm:$0xff]   ;;  %v329_v34 = vld [vmem:[%s7869_s19 + $0x8] sm:$0xf]  ;;  %v5568_v36 = vcombine.low %v327_v32, %v328_v33  ;;  %v5584_v37 = vcombine.low %v328_v33, %v328_v33 }
  0x77   : > { %5896 = vmatpush3.bf16.msra.mxu1 %v7261_v11  ;;  %5761 = vmatprep.subr.bf16.mxu0 %v7262_v12  ;;  %v330_v38 = vld [vmem:[%s7869_s19 + $0xc] sm:$0xf]  ;;  %v5553_v39 = vcombine.low %v329_v34, %v329_v34  ;;  %v7883_v42 = vld [vmem:[#allocation5 + $0x140] sm:$0xff]   ;;  %v331_v43 = vld [vmem:[%s7869_s19 + $0x10] sm:$0xf]  ;;  %v408_v48 = vshrl.u32 %v5552_v35, 16  ;;  %p7573_p12 = por %p7572_p9, %p7571_p7 }
  0x78   : > { %5897 = vmatprep.subr.bf16.mxu1 %v7263_v13  ;;  %v5569_v40 = vcombine.low %v329_v34, %v330_v38  ;;  %v5585_v41 = vcombine.low %v330_v38, %v330_v38  ;;  %v332_v44 = vld [vmem:[%s7869_s19 + $0x14] sm:$0xf]  ;;  %v520_v45 = vshrl.u32 %v5568_v36, 16  ;;  %v523_v46 = vshll.u32 %v5568_v36, 16  ;;  %vm7889_vm2 = vmand %vm759_vm1, %vm760_vm0  ;;  %v333_v5 = vld [vmem:[%s7869_s19 + $0x18] sm:$0xf] }
  0x79   : > { %v680_v47 = vshll.u32 %v5584_v37, 16  ;;  %v5554_v54 = vcombine.low %v331_v43, %v331_v43  ;;  %v5570_v55 = vcombine.low %v331_v43, %v332_v44  ;;  %v10493_v56 = vsel %vm7889_vm2, 4294967295, %v10492_v56  ;;  %v334_v10 = vld [vmem:[%s7869_s19 + $0x1c] sm:$0xf]  ;;  %v336_v32 = vld [vmem:[%s7869_s19 + $0x24] sm:$0xf]  ;;  %p7574_p1 = pnand %p7573_p12, %p7567_p3 }
  0x7a   : > { %5762 = vmatpush3.bf16.msra.mxu0 %v7264_v14  ;;  %v527_v49 = vshrl.u32 %v5569_v40, 16  ;;  %v530_v50 = vshll.u32 %v5569_v40, 16  ;;  %v684_v51 = vshll.u32 %v5585_v41, 16  ;;  %v522_v52 = vrot.slane %v520_v45, 7  ;;  %10494 = vst [vmem:[#allocation12_spill] sm:$0xff] %v10493_v56  ;;  %v7292_v41 = vld [vmem:[#allocation5 + $0x148] sm:$0xff]  }
  0x7b   : > { %5898 = vmatpush3.bf16.msra.mxu1 %v7265_v15  ;;  %5763 = vmatprep.subr.bf16.mxu0 %v7266_v16  ;;  %v682_v53 = vrot.slane %v680_v47, 3  ;;  %v411_v57 = vshrl.u32 %v5553_v39, 16  ;;  %v5586_v60 = vcombine.low %v332_v44, %v332_v44  ;;  %v414_v63 = vshrl.u32 %v5554_v54, 16  ;;  %v7932_v33 = vld [vmem:[%s7869_s19 + $0x28] sm:$0xf] }
  0x7c   : > { %5899 = vmatprep.subr.bf16.mxu1 %v7267_v17  ;;  %v529_v58 = vrot.slane %v527_v49, 7  ;;  %v686_v59 = vrot.slane %v684_v51, 3  ;;  %v525_v61 = vor.u32 %v523_v46, %v522_v52  ;;  %v534_v0 = vshrl.u32 %v5570_v55, 16  ;;  %v7937_v38 = vld [vmem:[%s7869_s19 + $0x2c] sm:$0xf] }
  0x7d   : > { %v7895_v62 = vsel %vm7889_vm2, %v522_v52, %v682_v53  ;;  %v537_v4 = vshll.u32 %v5570_v55, 16  ;;  %v688_v9 = vshll.u32 %v5586_v60, 16  ;;  %v5555_v17 = vcombine.low %v333_v5, %v333_v5 }
  0x7e   : > { %5764 = vmatpush3.bf16.msra.mxu0 %v7268_v18  ;;  %v863_v1 = vshll.u32 %v7895_v62, 16  ;;  %v532_v2 = vor.u32 %v530_v50, %v529_v58  ;;  %v7900_v3 = vsel %vm7889_vm2, %v529_v58, %v686_v59  ;;  %v7905_v6 = vsel %vm7889_vm2, %v408_v48, %v525_v61  ;;  %v7314_v18 = vld [vmem:[#allocation5 + $0x80] sm:$0xff]   ;;  %v7330_v48 = vld [vmem:[#allocation5 + $0x90] sm:$0xff]   ;;  %v7334_v59 = vld [vmem:[#allocation5 + $0x98] sm:$0xff]  }
  0x7f   : > { %5900 = vmatpush3.bf16.msra.mxu1 %v7269_v19  ;;  %5765 = vmatprep.subr.bf16.mxu0 %v7270_v20  ;;  %v851_v7 = vshll.u32 %v7900_v3, 16  ;;  %v536_v8 = vrot.slane %v534_v0, 7  ;;  %v856_v11 = vshrl.u32 %v7905_v6, 16  ;;  %v858_v12 = vshll.u32 %v7905_v6, 16 }
  0x80   : > { %5901 = vmatprep.subr.bf16.mxu1 %v7271_v21  ;;  %1742 = vmatprep.mubr.bf16.mxu1 %v7905_v6  ;;  %v7914_v13 = vsel %vm7889_vm2, %v411_v57, %v532_v2  ;;  %v865_v20 = vrot.slane %v863_v1, 1  ;;  %v690_v21 = vrot.slane %v688_v9, 3  ;;  %v417_v46 = vshrl.u32 %v5555_v17, 16  ;;  %v7299_v57 = vld [vmem:[#allocation5 + $0x150] sm:$0xff]   ;;  %v7306_v17 = vld [vmem:[#allocation5 + $0x158] sm:$0xff]  }
  0x81   : > { %v844_v14 = vshrl.u32 %v7914_v13, 16  ;;  %v846_v15 = vshll.u32 %v7914_v13, 16  ;;  %v539_v16 = vor.u32 %v537_v4, %v536_v8  ;;  %v860_v19 = vrot.slane %v858_v12, 1  ;;  %v340_v2 = vld [vmem:[%s7869_s19 + $0x34] sm:$0xf] }
  0x82   : > { %5766 = vmatpush3.bf16.msra.mxu0 %v7272_v22  ;;  %v5571_v22 = vcombine.low %v333_v5, %v334_v10  ;;  %v5588_v52 = vcombine.low %v336_v32, %v336_v32  ;;  %v5573_v58 = vcombine.low %v7932_v33, %v7937_v38 }
  0x83   : > { %5902 = vmatpush3.bf16.msra.mxu1 %v7273_v23  ;;  %5767 = vmatprep.subr.bf16.mxu0 %v7274_v24  ;;  %v848_v23 = vrot.slane %v846_v15, 1  ;;  %v853_v24 = vrot.slane %v851_v7, 1 }
  0x84   : > { %5903 = vmatprep.subr.bf16.mxu1 %v7275_v25  ;;  %v7922_v25 = vsel %vm7889_vm2, %v414_v63, %v539_v16  ;;  %v541_v37 = vshrl.u32 %v5571_v22, 16  ;;  %v544_v43 = vshll.u32 %v5571_v22, 16  ;;  %v7954_v63 = vld [vmem:[%s7869_s19 + $0x30] sm:$0xf]  ;;  %v696_v1 = vshll.u32 %v5588_v52, 16  ;;  %v7339_v22 = vld [vmem:[#allocation5 + $0xa0] sm:$0xff]  }
  0x85   : > { %v849_v34 = vor.u32 %v848_v23, %v844_v14  ;;  %v868_v35 = vshrl.u32 %v7922_v25, 16 }
  0x86   : > { %5768 = vmatpush3.bf16.msra.mxu0 %v7276_v26  ;;  %v5587_v26 = vcombine.low %v334_v10, %v334_v10  ;;  %v543_v47 = vrot.slane %v541_v37, 7  ;;  %v698_v16 = vrot.slane %v696_v1, 3 }
  0x87   : > { %5904 = vmatpush3.bf16.msra.mxu1 %v7277_v27  ;;  %5769 = vmatprep.subr.bf16.mxu0 %v7278_v28  ;;  %v335_v27 = vld [vmem:[%s7869_s19 + $0x20] sm:$0xf]  ;;  %v7322_v28 = vld [vmem:[#allocation5 + $0x88] sm:$0xff]   ;;  %v7941_v45 = vsel %vm842_vm3, %v849_v34, %v853_v24  ;;  %v7980_v24 = vld [vmem:[%s7869_s19 + $0x38] sm:$0xf] }
  0x88   : > { %5905 = vmatprep.subr.bf16.mxu1 %v7279_v29  ;;  %v861_v29 = vor.u32 %v860_v19, %v856_v11  ;;  %v692_v44 = vshll.u32 %v5587_v26, 16  ;;  %v5556_v50 = vcombine.low %v335_v27, %v335_v27  ;;  %v5572_v51 = vcombine.low %v335_v27, %v336_v32  ;;  %v342_v27 = vld [vmem:[%s7869_s19 + $0x3c] sm:$0xf]  ;;  %v7313_v34 = vld [vmem:[#allocation5 + $0x160] sm:$0xff]  }
  0x89   : > { %v546_v55 = vor.u32 %v544_v43, %v543_v47  ;;  %v5557_v11 = vcombine.low %v7932_v33, %v7932_v33  ;;  %v558_v19 = vshll.u32 %v5573_v58, 16  ;;  %v5575_v43 = vcombine.low %v7980_v24, %v342_v27 }
  0x8a   : > { %5770 = vmatpush3.bf16.msra.mxu0 %v7280_v30  ;;  %v7927_v30 = vsel %vm7889_vm2, %v536_v8, %v690_v21  ;;  %v866_v39 = vsel %vm842_vm3, %v861_v29, %v865_v20  ;;  %v694_v49 = vrot.slane %v692_v44, 3  ;;  %v548_v61 = vshrl.u32 %v5572_v51, 16  ;;  %v7321_v44 = vld [vmem:[#allocation5 + $0x168] sm:$0xff]  }
  0x8b   : > { %5906 = vmatpush3.bf16.msra.mxu1 %v7281_v31  ;;  %6571 = vmatprep.subr.bf16.mxu0 %v7883_v42  ;;  %v870_v31 = vshll.u32 %v7922_v25, 16  ;;  %v875_v36 = vshll.u32 %v7927_v30, 16  ;;  %v7959_v0 = vsel %vm7889_vm2, %v417_v46, %v546_v55  ;;  %v420_v5 = vshrl.u32 %v5556_v50, 16  ;;  %v7344_v50 = vld [vmem:[#allocation5 + $0xb0] sm:$0xff]  }
  0x8c   : > { %6619 = vmatprep.subr.bf16.mxu1 %v7314_v18  ;;  %1276 = vmatprep.mubr.bf16.mxu0 %v866_v39  ;;  %v7951_v60 = vsel %vm7889_vm2, %v543_v47, %v694_v49  ;;  %v882_v4 = vshll.u32 %v7959_v0, 16  ;;  %v550_v7 = vrot.slane %v548_v61, 7  ;;  %v555_v8 = vshrl.u32 %v5573_v58, 16  ;;  %v344_v61 = vld [vmem:[%s7869_s19 + $0x44] sm:$0xf] }
  0x8d   : > { %v872_v40 = vrot.slane %v870_v31, 1  ;;  %1277 = vmatmul.mubr.bf16.vlgmr.msra.gmra.mrb[0].mxu0 %v7941_v45  ;;  %v877_v54 = vrot.slane %v875_v36, 1  ;;  %v887_v10 = vshll.u32 %v7951_v60, 16  ;;  %v880_v12 = vshrl.u32 %v7959_v0, 16 }
  0x8e   : > { %1743 = vmatmul.mubr.bf16.vlgmr.msra.gmra.mrb[0].mxu1 %v7914_v13  ;;  %6572 = vmatpush3.bf16.msra.mxu0 %v7883_v42  ;;  %v551_v42 = vshll.u32 %v5572_v51, 16  ;;  %v884_v14 = vrot.slane %v882_v4, 1  ;;  %v5589_v20 = vcombine.low %v7937_v38, %v7937_v38  ;;  %v5574_v21 = vcombine.low %v7954_v63, %v340_v2  ;;  %v7329_v4 = vld [vmem:[#allocation5 + $0x170] sm:$0xff]  }
  0x8f   : > { %1750 = vmatprep.mubr.bf16.mxu1 %v7914_v13  ;;  %6620 = vmatpush3.bf16.msra.mxu1 %v7314_v18  ;;  %v873_v53 = vor.u32 %v872_v40, %v868_v35  ;;  %v7970_v18 = vrot.slane %v555_v8, 7  ;;  %v423_v26 = vshrl.u32 %v5557_v11, 16  ;;  %v889_v31 = vrot.slane %v887_v10, 1 }
  0x90   : > { %6621 = vmatprep.subr.bf16.mxu1 %v7322_v28  ;;  %1284 = vmatprep.mubr.bf16.mxu0 %v7941_v45  ;;  %v553_v15 = vor.u32 %v551_v42, %v550_v7  ;;  %v885_v29 = vor.u32 %v884_v14, %v880_v12  ;;  %v562_v33 = vshrl.u32 %v5574_v21, 16  ;;  %v7989_v35 = vsel %vm7889_vm2, %v550_v7, %v698_v16  ;;  %v7345_v42 = vld [vmem:[#allocation5 + $0xb8] sm:$0xff]   ;;  %v8024_v12 = vld [vmem:[%s7869_s19 + $0x48] sm:$0xf]  ;;  %v8027_v14 = vld [vmem:[%s7869_s19 + $0x4c] sm:$0xf] }
  0x91   : > { %6573 = vmatprep.subr.bf16.mxu0 %v7292_v41  ;;  %v7964_v9 = vsel %vm842_vm3, %v873_v53, %v877_v54  ;;  %v560_v36 = vor.u32 %v558_v19, %v7970_v18  ;;  %v700_v37 = vshll.u32 %v5589_v20, 16  ;;  %v5590_v38 = vcombine.low %v340_v2, %v340_v2  ;;  %v8005_v54 = vld [vmem:[%s7869_s19 + $0x40] sm:$0xf]  ;;  %v7338_v19 = vld [vmem:[#allocation5 + $0x178] sm:$0xff]  }
  0x92   : > { %6574 = vmatpush3.bf16.msra.mxu0 %v7292_v41  ;;  %v7977_v23 = vsel %vm7889_vm2, %v420_v5, %v553_v15  ;;  %v564_v40 = vrot.slane %v562_v33, 7  ;;  %v565_v41 = vshll.u32 %v5574_v21, 16  ;;  %v7996_v46 = vsel %vm842_vm3, %v885_v29, %v889_v31 }
  0x93   : > { %6622 = vmatpush3.bf16.msra.mxu1 %v7322_v28  ;;  %6575 = vmatprep.subr.bf16.mxu0 %v7299_v57  ;;  %v7340_v28 = vld [vmem:[#allocation5 + $0xa8] sm:$0xff]   ;;  %v894_v32 = vshll.u32 %v7977_v23, 16  ;;  %v892_v47 = vshrl.u32 %v7977_v23, 16  ;;  %v899_v49 = vshll.u32 %v7989_v35, 16  ;;  %v702_v51 = vrot.slane %v700_v37, 3 }
  0x94   : > { %6623 = vmatprep.subr.bf16.mxu1 %v7330_v48  ;;  %v8002_v52 = vsel %vm7889_vm2, %v423_v26, %v560_v36  ;;  %v704_v53 = vshll.u32 %v5590_v38, 16  ;;  %v5591_v58 = vcombine.low %v342_v27, %v342_v27  ;;  %v5576_v11 = vcombine.low %v8005_v54, %v344_v61 }
  0x95   : > { %1285 = vmatmul.mubr.bf16.gmra.mrb[4].mxu0 %v866_v39  ;;  %v5558_v39 = vcombine.low %v7954_v63, %v7954_v63  ;;  %v901_v1 = vrot.slane %v899_v49, 1  ;;  %v906_v2 = vshll.u32 %v8002_v52, 16  ;;  %v8016_v5 = vsel %vm7889_vm2, %v7970_v18, %v702_v51  ;;  %v8056_v49 = vld [vmem:[%s7869_s19 + $0x50] sm:$0xf] }
  0x96   : > { %1751 = vmatmul.mubr.bf16.gmra.mrb[4].mxu1 %v7905_v6  ;;  %1292 = vmatprep.mubr.bf16.mxu0 %v7964_v9  ;;  %v706_v7 = vrot.slane %v704_v53, 3  ;;  %v708_v10 = vshll.u32 %v5591_v58, 16  ;;  %v904_v15 = vshrl.u32 %v8002_v52, 16  ;;  %v5559_v16 = vcombine.low %v7980_v24, %v7980_v24  ;;  %v350_v58 = vld [vmem:[%s7869_s19 + $0x5c] sm:$0xf] }
  0x97   : > { %1758 = vmatprep.mubr.bf16.mxu1 %v7922_v25  ;;  %6624 = vmatpush3.bf16.msra.mxu1 %v7330_v48  ;;  %v896_v48 = vrot.slane %v894_v32, 1  ;;  %v426_v55 = vshrl.u32 %v5558_v39, 16  ;;  %v572_v18 = vshll.u32 %v5575_v43, 16  ;;  %v908_v21 = vrot.slane %v906_v2, 1 }
  0x98   : > { %6625 = vmatprep.subr.bf16.mxu1 %v7334_v59  ;;  %6576 = vmatpush3.bf16.msra.mxu0 %v7299_v57  ;;  %v567_v57 = vor.u32 %v565_v41, %v564_v40  ;;  %v8038_v26 = vsel %vm7889_vm2, %v564_v40, %v706_v7  ;;  %v710_v24 = vrot.slane %v708_v10, 3  ;;  %v5592_v29 = vcombine.low %v344_v61, %v344_v61 }
  0x99   : > { %6577 = vmatprep.subr.bf16.mxu0 %v7306_v17  ;;  %v897_v63 = vor.u32 %v896_v48, %v892_v47  ;;  %v429_v31 = vshrl.u32 %v5559_v16, 16  ;;  %v5577_v33 = vcombine.low %v8024_v12, %v8027_v14  ;;  %v909_v36 = vor.u32 %v908_v21, %v904_v15  ;;  %v8083_v16 = vld [vmem:[%s7869_s19 + $0x60] sm:$0xf] }
  0x9a   : > { %v8020_v8 = vsel %vm7889_vm2, %v426_v55, %v567_v57  ;;  %v923_v38 = vshll.u32 %v8038_v26, 16  ;;  %v5560_v41 = vcombine.low %v8005_v54, %v8005_v54  ;;  %v579_v47 = vshll.u32 %v5576_v11, 16  ;;  %v8064_v55 = vld [vmem:[%s7869_s19 + $0x58] sm:$0xf] }
  0x9b   : > { %6626 = vmatpush3.bf16.msra.mxu1 %v7334_v59  ;;  %v569_v59 = vshrl.u32 %v5575_v43, 16  ;;  %v8033_v20 = vsel %vm842_vm3, %v897_v63, %v901_v1  ;;  %v918_v27 = vshll.u32 %v8020_v8, 16  ;;  %v916_v39 = vshrl.u32 %v8020_v8, 16 }
  0x9c   : > { %6627 = vmatprep.subr.bf16.mxu1 %v7339_v22  ;;  %6578 = vmatpush3.bf16.msra.mxu0 %v7306_v17  ;;  %v712_v48 = vshll.u32 %v5592_v29, 16  ;;  %v583_v53 = vshrl.u32 %v5577_v33, 16  ;;  %v925_v57 = vrot.slane %v923_v38, 1  ;;  %v432_v63 = vshrl.u32 %v5560_v41, 16 }
  0x9d   : > { %6579 = vmatprep.subr.bf16.mxu0 %v7313_v34  ;;  %1293 = vmatmul.mubr.bf16.gmra.mrb[8].mxu0 %v7941_v45  ;;  %v571_v17 = vrot.slane %v569_v59, 7  ;;  %v920_v40 = vrot.slane %v918_v27, 1  ;;  %v8070_v59 = vld [vmem:[#allocation5 + $0x200] sm:$0xff]   ;;  %v5561_v1 = vcombine.low %v8024_v12, %v8024_v12  ;;  %v5579_v12 = vcombine.low %v8064_v55, %v350_v58  ;;  %v8096_v27 = vld [vmem:[%s7869_s19 + $0x68] sm:$0xf] }
  0x9e   : > { %1759 = vmatmul.mubr.bf16.gmra.mrb[8].mxu1 %v7914_v13  ;;  %1300 = vmatprep.mubr.bf16.mxu0 %v7996_v46  ;;  %v714_v7 = vrot.slane %v712_v48, 3  ;;  %v8079_v10 = vrot.slane %v583_v53, 7 }
  0x9f   : > { %1766 = vmatprep.mubr.bf16.mxu1 %v7959_v0  ;;  %6628 = vmatpush3.bf16.msra.mxu1 %v7339_v22  ;;  %v911_v22 = vshll.u32 %v8016_v5, 16  ;;  %v574_v32 = vor.u32 %v572_v18, %v571_v17  ;;  %v8053_v43 = vsel %vm7889_vm2, %v571_v17, %v710_v24  ;;  %v921_v61 = vor.u32 %v920_v40, %v916_v39  ;;  %v352_v17 = vld [vmem:[%s7869_s19 + $0x64] sm:$0xf]  ;;  %v8099_v24 = vld [vmem:[%s7869_s19 + $0x6c] sm:$0xf] }
  0xa0   : > { %6629 = vmatprep.subr.bf16.mxu1 %v7340_v28  ;;  %6580 = vmatpush3.bf16.msra.mxu0 %v7313_v34  ;;  %v7346_v34 = vld [vmem:[#allocation5 + $0x1c0] sm:$0xff]   ;;  %v435_v21 = vshrl.u32 %v5561_v1, 16  ;;  %v597_v38 = vshrl.u32 %v5579_v12, 16  ;;  %v5595_v39 = vcombine.low %v350_v58, %v350_v58  ;;  %v5596_v40 = vcombine.low %v352_v17, %v352_v17 }
  0xa1   : > { %6581 = vmatprep.subr.bf16.mxu0 %v7321_v44  ;;  %v913_v37 = vrot.slane %v911_v22, 1  ;;  %v8061_v51 = vsel %vm7889_vm2, %v429_v31, %v574_v32  ;;  %v8089_v18 = vsel %vm842_vm3, %v921_v61, %v925_v57  ;;  %v5593_v22 = vcombine.low %v8027_v14, %v8027_v14 }
  0xa2   : > { %v930_v2 = vshll.u32 %v8061_v51, 16  ;;  %v5580_v14 = vcombine.low %v8083_v16, %v352_v17  ;;  %v5581_v61 = vcombine.low %v8096_v27, %v8099_v24  ;;  %v599_v1 = vrot.slane %v597_v38, 7 }
  0xa3   : > { %6630 = vmatpush3.bf16.msra.mxu1 %v7340_v28  ;;  %v576_v28 = vshrl.u32 %v5576_v11, 16  ;;  %v8067_v54 = vsel %vm842_vm3, %v909_v36, %v913_v37  ;;  %v586_v11 = vshll.u32 %v5577_v33, 16  ;;  %v5562_v37 = vcombine.low %v8056_v49, %v8056_v49 }
  0xa4   : > { %6631 = vmatprep.subr.bf16.mxu1 %v7344_v50  ;;  %6582 = vmatpush3.bf16.msra.mxu0 %v7321_v44 }
  0xa5   : > { %6583 = vmatprep.subr.bf16.mxu0 %v7329_v4  ;;  %1301 = vmatmul.mubr.bf16.gmra.mrb[12].mxu0 %v7964_v9  ;;  %v578_v44 = vrot.slane %v576_v28, 7  ;;  %v932_v28 = vrot.slane %v930_v2, 1  ;;  %v588_v33 = vor.u32 %v586_v11, %v8079_v10  ;;  %v600_v2 = vshll.u32 %v5579_v12, 16 }
  0xa6   : > { %1767 = vmatmul.mubr.bf16.gmra.mrb[12].mxu1 %v7922_v25  ;;  %1308 = vmatprep.mubr.bf16.mxu0 %v8033_v20  ;;  %v438_v17 = vshrl.u32 %v5562_v37, 16  ;;  %v5565_v37 = vcombine.low %v8096_v27, %v8096_v27 }
  0xa7   : > { %1774 = vmatprep.mubr.bf16.mxu1 %v7977_v23  ;;  %6632 = vmatpush3.bf16.msra.mxu1 %v7344_v50  ;;  %v348_v50 = vld [vmem:[%s7869_s19 + $0x54] sm:$0xf]  ;;  %v8107_v32 = vsel %vm7889_vm2, %v578_v44, %v714_v7  ;;  %v728_v7 = vshll.u32 %v5596_v40, 16  ;;  %v602_v38 = vor.u32 %v600_v2, %v599_v1 }
  0xa8   : > { %6633 = vmatprep.subr.bf16.mxu1 %v7345_v42  ;;  %6584 = vmatpush3.bf16.msra.mxu0 %v7329_v4  ;;  %v581_v4 = vor.u32 %v579_v47, %v578_v44  ;;  %v5578_v15 = vcombine.low %v8056_v49, %v348_v50  ;;  %v5594_v36 = vcombine.low %v348_v50, %v348_v50  ;;  %v947_v48 = vshll.u32 %v8107_v32, 16 }
  0xa9   : > { %6585 = vmatprep.subr.bf16.mxu0 %v7338_v19  ;;  %v716_v44 = vshll.u32 %v5593_v22, 16  ;;  %v604_v50 = vshrl.u32 %v5580_v14, 16  ;;  %v8122_v49 = vsel %vm7889_vm2, %v435_v21, %v588_v33  ;;  %v5564_v21 = vcombine.low %v8083_v16, %v8083_v16 }
  0xaa   : > { %v8103_v31 = vsel %vm7889_vm2, %v432_v63, %v581_v4  ;;  %v593_v57 = vshll.u32 %v5578_v15, 16  ;;  %v5563_v63 = vcombine.low %v8064_v55, %v8064_v55  ;;  %v724_v4 = vshll.u32 %v5595_v39, 16 }
  0xab   : > { %6634 = vmatpush3.bf16.msra.mxu1 %v7345_v42  ;;  %v935_v42 = vshll.u32 %v8053_v43, 16  ;;  %v940_v41 = vshrl.u32 %v8103_v31, 16  ;;  %v942_v47 = vshll.u32 %v8103_v31, 16  ;;  %v606_v22 = vrot.slane %v604_v50, 7 }
  0xac   : > { %6586 = vmatpush3.bf16.msra.mxu0 %v7338_v19  ;;  %6667 = vmatprep.subr.bf16.mxu1 %v8070_v59  ;;  %v928_v19 = vshrl.u32 %v8061_v51, 16  ;;  %v954_v55 = vshll.u32 %v8122_v49, 16  ;;  %v726_v39 = vrot.slane %v724_v4, 3  ;;  %v730_v40 = vrot.slane %v728_v7, 3  ;;  %v355_v7 = vld [vmem:[%s7869_s19 + $0x70] sm:$0xf] }
  0xad   : > { %6027 = vmatprep.subr.bf16.mxu0 %v7346_v34  ;;  %1309 = vmatmul.mubr.bf16.gmra.mrb[16].mxu0 %v7996_v46  ;;  %v937_v29 = vrot.slane %v935_v42, 1  ;;  %v590_v34 = vshrl.u32 %v5578_v15, 16  ;;  %v720_v42 = vshll.u32 %v5594_v36, 16  ;;  %v944_v11 = vrot.slane %v942_v47, 1 }
  0xae   : > { %1775 = vmatmul.mubr.bf16.gmra.mrb[16].mxu1 %v7959_v0  ;;  %1316 = vmatprep.mubr.bf16.mxu0 %v8067_v54  ;;  %v933_v53 = vor.u32 %v932_v28, %v928_v19  ;;  %v718_v15 = vrot.slane %v716_v44, 3  ;;  %v611_v19 = vshrl.u32 %v5581_v61, 16  ;;  %v607_v28 = vshll.u32 %v5580_v14, 16 }
  0xaf   : > { %1782 = vmatprep.mubr.bf16.mxu1 %v8002_v52  ;;  %v592_v58 = vrot.slane %v590_v34, 7  ;;  %v722_v12 = vrot.slane %v720_v42, 3  ;;  %v441_v36 = vshrl.u32 %v5563_v63, 16  ;;  %v614_v44 = vshll.u32 %v5581_v61, 16 }
  0xb0   : > { %v8131_v33 = vsel %vm842_vm3, %v933_v53, %v937_v29  ;;  %v613_v47 = vrot.slane %v611_v19, 7  ;;  %v5597_v16 = vcombine.low %v8099_v24, %v8099_v24  ;;  %v949_v29 = vrot.slane %v947_v48, 1 }
  0xb1   : > { %v595_v34 = vor.u32 %v593_v57, %v592_v58  ;;  %v444_v14 = vshrl.u32 %v5564_v21, 16  ;;  %v609_v53 = vor.u32 %v607_v28, %v606_v22  ;;  %v945_v57 = vor.u32 %v944_v11, %v940_v41 }
  0xb2   : > { %v8143_v50 = vsel %vm7889_vm2, %v8079_v10, %v718_v15  ;;  %v952_v27 = vshrl.u32 %v8122_v49, 16  ;;  %v956_v48 = vrot.slane %v954_v55, 1  ;;  %v8153_v61 = vsel %vm7889_vm2, %v592_v58, %v722_v12  ;;  %v356_v58 = vld [vmem:[%s7869_s19 + $0x74] sm:$0xf] }
  0xb3   : > { %v8148_v24 = vsel %vm7889_vm2, %v438_v17, %v595_v34  ;;  %v8157_v41 = vsel %vm7889_vm2, %v441_v36, %v602_v38  ;;  %v8161_v10 = vsel %vm7889_vm2, %v599_v1, %v726_v39  ;;  %v8166_v42 = vsel %vm7889_vm2, %v606_v22, %v730_v40 }
  0xb4   : > { %10495 = vst [vmem:[#allocation13_spill] sm:$0xff] %v8161_v10  ;;  %10496 = vst [vmem:[#allocation14_spill] sm:$0xff] %v8166_v42  ;;  %v447_v63 = vshrl.u32 %v5565_v37, 16  ;;  %v616_v2 = vor.u32 %v614_v44, %v613_v47  ;;  %v732_v4 = vshll.u32 %v5597_v16, 16  ;;  %v959_v11 = vshll.u32 %v8143_v50, 16 }
  0xb5   : > { %1317 = vmatmul.mubr.bf16.gmra.mrb[20].mxu0 %v8033_v20  ;;  %v966_v15 = vshll.u32 %v8148_v24, 16  ;;  %v8174_v17 = vsel %vm7889_vm2, %v444_v14, %v609_v53  ;;  %v971_v1 = vshll.u32 %v8153_v61, 16  ;;  %v978_v19 = vshll.u32 %v8157_v41, 16 }
  0xb6   : > { %1783 = vmatmul.mubr.bf16.gmra.mrb[20].mxu1 %v7977_v23  ;;  %1324 = vmatprep.mubr.bf16.mxu0 %v8089_v18  ;;  %v8179_v21 = vsel %vm842_vm3, %v945_v57, %v949_v29  ;;  %v957_v22 = vor.u32 %v956_v48, %v952_v27  ;;  %v983_v28 = vshll.u32 %v8161_v10, 16  ;;  %v995_v55 = vshll.u32 %v8166_v42, 16  ;;  %v357_v42 = vld [vmem:[%s7869_s19 + $0x78] sm:$0xf] }
  0xb7   : > { %1790 = vmatprep.mubr.bf16.mxu1 %v8020_v8  ;;  %v990_v34 = vshll.u32 %v8174_v17, 16  ;;  %v734_v12 = vrot.slane %v732_v4, 3  ;;  %v8186_v36 = vsel %vm7889_vm2, %v447_v63, %v616_v2  ;;  %v5566_v38 = vcombine.low %v355_v7, %v355_v7 }
  0xb8   : > { %v961_v39 = vrot.slane %v959_v11, 1  ;;  %v964_v40 = vshrl.u32 %v8148_v24, 16  ;;  %v968_v37 = vrot.slane %v966_v15, 1  ;;  %v5582_v44 = vcombine.low %v355_v7, %v356_v58 }
  0xb9   : > { %v973_v16 = vrot.slane %v971_v1, 1  ;;  %v976_v29 = vshrl.u32 %v8157_v41, 16  ;;  %v980_v14 = vrot.slane %v978_v19, 1  ;;  %v5598_v53 = vcombine.low %v356_v58, %v356_v58 }
  0xba   : > { %v985_v57 = vrot.slane %v983_v28, 1  ;;  %v988_v27 = vshrl.u32 %v8174_v17, 16  ;;  %v997_v48 = vrot.slane %v995_v55, 1  ;;  %v1002_v63 = vshll.u32 %v8186_v36, 16 }
  0xbb   : > { %v992_v2 = vrot.slane %v990_v34, 1  ;;  %v8198_v4 = vsel %vm7889_vm2, %v613_v47, %v734_v12  ;;  %v450_v7 = vshrl.u32 %v5566_v38, 16  ;;  %v1000_v58 = vshrl.u32 %v8186_v36, 16  ;;  %v358_v34 = vld [vmem:[%s7869_s19 + $0x7c] sm:$0xf] }
  0xbc   : > { %10497 = vst [vmem:[#allocation15_spill] sm:$0xff] %v8198_v4  ;;  %v618_v11 = vshrl.u32 %v5582_v44, 16  ;;  %v621_v15 = vshll.u32 %v5582_v44, 16  ;;  %v736_v1 = vshll.u32 %v5598_v53, 16  ;;  %v8202_v19 = vsel %vm842_vm3, %v957_v22, %v961_v39 }
  0xbd   : > { %1325 = vmatmul.mubr.bf16.gmra.mrb[24].mxu0 %v8067_v54  ;;  %v1004_v28 = vrot.slane %v1002_v63, 1  ;;  %v1007_v55 = vshll.u32 %v8198_v4, 16  ;;  %v5567_v38 = vcombine.low %v357_v42, %v357_v42  ;;  %v969_v10 = vor.u32 %v968_v37, %v964_v40 }
  0xbe   : > { %1791 = vmatmul.mubr.bf16.gmra.mrb[24].mxu1 %v8002_v52  ;;  %1332 = vmatprep.mubr.bf16.mxu0 %v8131_v33  ;;  %v620_v47 = vrot.slane %v618_v11, 7  ;;  %v738_v12 = vrot.slane %v736_v1, 3  ;;  %v5583_v39 = vcombine.low %v357_v42, %v358_v34  ;;  %v5599_v11 = vcombine.low %v358_v34, %v358_v34 }
  0xbf   : > { %1798 = vmatprep.mubr.bf16.mxu1 %v8061_v51  ;;  %v1009_v44 = vrot.slane %v1007_v55, 1  ;;  %v453_v22 = vshrl.u32 %v5567_v38, 16  ;;  %v8212_v53 = vsel %vm842_vm3, %v969_v10, %v973_v16  ;;  %v981_v1 = vor.u32 %v980_v14, %v976_v29 }
  0xc0   : > { %v625_v63 = vshrl.u32 %v5583_v39, 16  ;;  %v628_v4 = vshll.u32 %v5583_v39, 16  ;;  %v740_v37 = vshll.u32 %v5599_v11, 16  ;;  %v623_v42 = vor.u32 %v621_v15, %v620_v47 }
  0xc1   : > { %v8219_v55 = vsel %vm842_vm3, %v981_v1, %v985_v57  ;;  %v8225_v10 = vsel %vm7889_vm2, %v620_v47, %v738_v12  ;;  %v993_v16 = vor.u32 %v992_v2, %v988_v27  ;;  %v1005_v27 = vor.u32 %v1004_v28, %v1000_v58 }
  0xc2   : > { %v627_v40 = vrot.slane %v625_v63, 7  ;;  %v8230_v29 = vsel %vm7889_vm2, %v450_v7, %v623_v42  ;;  %v1019_v57 = vshll.u32 %v8225_v10, 16  ;;  %v742_v34 = vrot.slane %v740_v37, 3  ;;  %v7357_v37 = vld [vmem:[#allocation5 + $0x208] sm:$0xff]   ;;  %v7359_v42 = vld [vmem:[#allocation5 + $0x210] sm:$0xff]  }
  0xc3   : > { %v1012_v14 = vshrl.u32 %v8230_v29, 16  ;;  %v1014_v15 = vshll.u32 %v8230_v29, 16  ;;  %v8237_v38 = vsel %vm842_vm3, %v993_v16, %v997_v48  ;;  %v8254_v63 = vsel %vm842_vm3, %v1005_v27, %v1009_v44  ;;  %v7347_v16 = vld [vmem:[#allocation5 + $0x180] sm:$0xff]  }
  0xc4   : > { %v630_v47 = vor.u32 %v628_v4, %v627_v40  ;;  %v8248_v7 = vsel %vm7889_vm2, %v627_v40, %v742_v34  ;;  %v1021_v12 = vrot.slane %v1019_v57, 1  ;;  %v7361_v57 = vld [vmem:[#allocation5 + $0x218] sm:$0xff]   ;;  %v7351_v34 = vld [vmem:[#allocation5 + $0x190] sm:$0xff]   ;;  %v7354_v27 = vld [vmem:[#allocation5 + $0x1e0] sm:$0xff]  }
  0xc5   : > { %1333 = vmatmul.mubr.bf16.gmra.mrb[28].mxu0 %v8089_v18  ;;  %v1016_v48 = vrot.slane %v1014_v15, 1  ;;  %v1031_v39 = vshll.u32 %v8248_v7, 16  ;;  %v7349_v15 = vld [vmem:[#allocation5 + $0x188] sm:$0xff]  }
  0xc6   : > { %1799 = vmatmul.mubr.bf16.gmra.mrb[28].mxu1 %v8020_v8  ;;  %1340 = vmatprep.mubr.bf16.mxu0 %v8179_v21  ;;  %v8244_v2 = vsel %vm7889_vm2, %v453_v22, %v630_v47  ;;  %v7352_v47 = vld [vmem:[#allocation5 + $0x1d8] sm:$0xff]  }
  0xc7   : > { %1806 = vmatprep.mubr.bf16.mxu1 %v8103_v31  ;;  %v1026_v4 = vshll.u32 %v8244_v2, 16  ;;  %v1017_v58 = vor.u32 %v1016_v48, %v1012_v14  ;;  %v1024_v28 = vshrl.u32 %v8244_v2, 16  ;;  %v1033_v11 = vrot.slane %v1031_v39, 1  ;;  %v7348_v14 = vld [vmem:[#allocation5 + $0x1c8] sm:$0xff]   ;;  %v7367_v48 = vld [vmem:[#allocation5 + $0x230] sm:$0xff]  }
  0xc8   : > { %v7362_v39 = vld [vmem:[#allocation5 + $0x1f0] sm:$0xff]  }
  0xc9   : > { %v1028_v22 = vrot.slane %v1026_v4, 1  ;;  %v8262_v1 = vsel %vm842_vm3, %v1017_v58, %v1021_v12  ;;  %v7356_v12 = vld [vmem:[#allocation5 + $0x1a0] sm:$0xff]   ;;  %v7358_v4 = vld [vmem:[#allocation5 + $0x1e8] sm:$0xff]   ;;  %v7364_v58 = vld [vmem:[#allocation5 + $0x1b0] sm:$0xff]  }
  0xcb   : > { %v1029_v44 = vor.u32 %v1028_v22, %v1024_v28  ;;  %v7366_v28 = vld [vmem:[#allocation5 + $0x1f8] sm:$0xff]  }
  0xcd   : > { %1341 = vmatmul.mubr.bf16.gmra.mrb[32].mxu0 %v8131_v33  ;;  %v8269_v40 = vsel %vm842_vm3, %v1029_v44, %v1033_v11 }
  0xce   : > { %1807 = vmatmul.mubr.bf16.gmra.mrb[32].mxu1 %v8061_v51  ;;  %1348 = vmatprep.mubr.bf16.mxu0 %v8202_v19 }
  0xcf   : > { %1814 = vmatprep.mubr.bf16.mxu1 %v8122_v49 }
  0xd5   : > { %1349 = vmatmul.mubr.bf16.gmra.mrb[36].mxu0 %v8179_v21 }
  0xd6   : > { %1815 = vmatmul.mubr.bf16.gmra.mrb[36].mxu1 %v8103_v31  ;;  %1356 = vmatprep.mubr.bf16.mxu0 %v8212_v53 }
  0xd7   : > { %1822 = vmatprep.mubr.bf16.mxu1 %v8148_v24 }
  0xdd   : > { %1357 = vmatmul.mubr.bf16.gmra.mrb[40].mxu0 %v8202_v19 }
  0xde   : > { %1823 = vmatmul.mubr.bf16.gmra.mrb[40].mxu1 %v8122_v49  ;;  %1364 = vmatprep.mubr.bf16.mxu0 %v8219_v55 }
  0xdf   : > { %1830 = vmatprep.mubr.bf16.mxu1 %v8157_v41 }
  0xe5   : > { %1365 = vmatmul.mubr.bf16.gmra.mrb[44].mxu0 %v8212_v53 }
  0xe6   : > { %1831 = vmatmul.mubr.bf16.gmra.mrb[44].mxu1 %v8148_v24  ;;  %1372 = vmatprep.mubr.bf16.mxu0 %v8237_v38 }
  0xe7   : > { %1838 = vmatprep.mubr.bf16.mxu1 %v8174_v17 }
  0xed   : > { %1373 = vmatmul.mubr.bf16.gmra.mrb[48].mxu0 %v8219_v55 }
  0xee   : > { %1839 = vmatmul.mubr.bf16.gmra.mrb[48].mxu1 %v8157_v41  ;;  %1380 = vmatprep.mubr.bf16.mxu0 %v8254_v63 }
  0xef   : > { %1846 = vmatprep.mubr.bf16.mxu1 %v8186_v36 }
  0xf5   : > { %1381 = vmatmul.mubr.bf16.gmra.mrb[52].mxu0 %v8237_v38 }
  0xf6   : > { %1847 = vmatmul.mubr.bf16.gmra.mrb[52].mxu1 %v8174_v17  ;;  %1388 = vmatprep.mubr.bf16.mxu0 %v8262_v1 }
  0xf7   : > { %1854 = vmatprep.mubr.bf16.mxu1 %v8230_v29 }
  0xfd   : > { %1389 = vmatmul.mubr.bf16.gmra.mrb[56].mxu0 %v8254_v63 }
  0xfe   : > { %1855 = vmatmul.mubr.bf16.gmra.mrb[56].mxu1 %v8186_v36  ;;  %1396 = vmatprep.mubr.bf16.mxu0 %v8269_v40 }
  0xff   : > { %1862 = vmatprep.mubr.bf16.mxu1 %v8244_v2 }
 0x105   : > { %1397 = vmatmul.mubr.bf16.gmra.mrb[60].mxu0 %v8262_v1 }
 0x106   : > { %1863 = vmatmul.mubr.bf16.gmra.mrb[60].mxu1 %v8230_v29  ;;  %6587 = vmatprep.mubr.bf16.mxu0 %v7941_v45  ;;  %v7350_v45 = vld [vmem:[#allocation5 + $0x1d0] sm:$0xff]  }
 0x107   : > { %6635 = vmatprep.mubr.bf16.mxu1 %v7914_v13 }
 0x10d   : > { %6588 = vmatmul.mubr.bf16.vlgmr.msra.gmra.mrb[64].mxu0 %v7964_v9  ;;  %v7365_v9 = vld [vmem:[#allocation5 + $0x228] sm:$0xff]  }
 0x10e   : > { %6636 = vmatmul.mubr.bf16.vlgmr.msra.gmra.mrb[64].mxu1 %v7922_v25  ;;  %6028 = vmatpush3.bf16.msra.mxu0 %v7347_v16 }
 0x10f   : > { %6639 = vmatprep.mubr.bf16.mxu1 %v7959_v0  ;;  %6668 = vmatpush3.bf16.msra.mxu1 %v8070_v59  ;;  %v7363_v59 = vld [vmem:[#allocation5 + $0x220] sm:$0xff]  }
 0x110   : > { %6669 = vmatprep.subr.bf16.mxu1 %v7357_v37  ;;  %6591 = vmatprep.mubr.bf16.mxu0 %v7996_v46  ;;  %v7353_v46 = vld [vmem:[#allocation5 + $0x198] sm:$0xff]  }
 0x111   : > { %6029 = vmatprep.subr.bf16.mxu0 %v7348_v14 }
 0x112   : > { %6030 = vmatpush3.bf16.msra.mxu0 %v7349_v15 }
 0x113   : > { %6670 = vmatpush3.bf16.msra.mxu1 %v7357_v37  ;;  %6031 = vmatprep.subr.bf16.mxu0 %v7350_v45 }
 0x114   : > { %6671 = vmatprep.subr.bf16.mxu1 %v7359_v42 }
 0x115   : > { %6592 = vmatmul.mubr.bf16.gmra.mrb[68].mxu0 %v8033_v20  ;;  %v7369_v20 = vld [vmem:[#allocation5 + $0x238] sm:$0xff]  }
 0x116   : > { %6640 = vmatmul.mubr.bf16.gmra.mrb[68].mxu1 %v7977_v23  ;;  %6595 = vmatprep.mubr.bf16.mxu0 %v8067_v54  ;;  %v7360_v54 = vld [vmem:[#allocation5 + $0x1a8] sm:$0xff]  }
 0x117   : > { %6643 = vmatprep.mubr.bf16.mxu1 %v8002_v52  ;;  %6672 = vmatpush3.bf16.msra.mxu1 %v7359_v42 }
 0x118   : > { %6673 = vmatprep.subr.bf16.mxu1 %v7361_v57  ;;  %6032 = vmatpush3.bf16.msra.mxu0 %v7351_v34  ;;  %v2098_v34 = vrot.slane %v8157_v41, 1 }
 0x119   : > { %6033 = vmatprep.subr.bf16.mxu0 %v7352_v47  ;;  %v10498_v47 = vld [vmem:[#allocation13_spill] sm:$0xff] }
 0x11b   : > { %6674 = vmatpush3.bf16.msra.mxu1 %v7361_v57 }
 0x11c   : > { %6675 = vmatprep.subr.bf16.mxu1 %v7363_v59  ;;  %6034 = vmatpush3.bf16.msra.mxu0 %v7353_v46 }
 0x11d   : > { %6035 = vmatprep.subr.bf16.mxu0 %v7354_v27  ;;  %6596 = vmatmul.mubr.bf16.gmra.mrb[72].mxu0 %v8089_v18  ;;  %v7368_v18 = vld [vmem:[#allocation5 + $0x1b8] sm:$0xff]  }
 0x11e   : > { %6644 = vmatmul.mubr.bf16.gmra.mrb[72].mxu1 %v8020_v8  ;;  %6599 = vmatprep.mubr.bf16.mxu0 %v8131_v33  ;;  %v2065_v33 = vrot.slane %v7914_v13, 1  ;;  %v2071_v13 = vrot.slane %v7922_v25, 1  ;;  %v2080_v25 = vrot.slane %v8002_v52, 1  ;;  %v2086_v52 = vrot.slane %v8061_v51, 1 }
 0x11f   : > { %6647 = vmatprep.mubr.bf16.mxu1 %v8061_v51  ;;  %6676 = vmatpush3.bf16.msra.mxu1 %v7363_v59  ;;  %v2092_v51 = vrot.slane %v8122_v49, 1 }
 0x120   : > { %6677 = vmatprep.subr.bf16.mxu1 %v7365_v9  ;;  %6036 = vmatpush3.bf16.msra.mxu0 %v7356_v12 }
 0x121   : > { %6037 = vmatprep.subr.bf16.mxu0 %v7358_v4 }
 0x123   : > { %6678 = vmatpush3.bf16.msra.mxu1 %v7365_v9  ;;  %v2099_v9 = vrot.slane %v10498_v47, 1 }
 0x124   : > { %6679 = vmatprep.subr.bf16.mxu1 %v7367_v48  ;;  %6038 = vmatpush3.bf16.msra.mxu0 %v7360_v54 }
 0x125   : > { %6039 = vmatprep.subr.bf16.mxu0 %v7362_v39  ;;  %6600 = vmatmul.mubr.bf16.gmra.mrb[76].mxu0 %v8179_v21  ;;  %v2066_v21 = vrot.slane %v7900_v3, 1  ;;  %v2074_v3 = vrot.slane %v7959_v0, 1 }
 0x126   : > { %6648 = vmatmul.mubr.bf16.gmra.mrb[76].mxu1 %v8103_v31  ;;  %6603 = vmatprep.mubr.bf16.mxu0 %v8202_v19 }
 0x127   : > { %6651 = vmatprep.mubr.bf16.mxu1 %v8122_v49  ;;  %6680 = vmatpush3.bf16.msra.mxu1 %v7367_v48  ;;  %v2067_v19 = vsel %vm2064_vm4, %v2065_v33, %v2066_v21  ;;  %v2095_v49 = vrot.slane %v8148_v24, 1  ;;  %v10499_v33 = vld [vmem:[#allocation14_spill] sm:$0xff] }
 0x128   : > { %6681 = vmatprep.subr.bf16.mxu1 %v7369_v20  ;;  %6040 = vmatpush3.bf16.msra.mxu0 %v7364_v58  ;;  %v2102_v21 = vrot.slane %v10499_v33, 1 }
 0x129   : > { %6041 = vmatprep.subr.bf16.mxu0 %v7366_v28 }
 0x12b   : > { %6682 = vmatpush3.bf16.msra.mxu1 %v7369_v20 }
 0x12c   : > { %6042 = vmatpush3.bf16.msra.mxu0 %v7368_v18  ;;  %v2101_v18 = vrot.slane %v8174_v17, 1 }
 0x12d   : > { %6604 = vmatmul.mubr.bf16.gmra.mrb[80].mxu0 %v8212_v53  ;;  %v2068_v53 = vrot.slane %v7905_v6, 1  ;;  %v2078_v6 = vrot.slane %v7989_v35, 1  ;;  %v2084_v35 = vrot.slane %v8038_v26, 1  ;;  %v2090_v26 = vrot.slane %v8107_v32, 1 }
 0x12e   : > { %6652 = vmatmul.mubr.bf16.gmra.mrb[80].mxu1 %v8148_v24  ;;  %6607 = vmatprep.mubr.bf16.mxu0 %v8219_v55  ;;  %v2069_v55 = vrot.slane %v7895_v62, 1  ;;  %v2077_v62 = vrot.slane %v7977_v23, 1  ;;  %v2083_v23 = vrot.slane %v8020_v8, 1  ;;  %v2089_v8 = vrot.slane %v8103_v31, 1 }
 0x12f   : > { %6655 = vmatprep.mubr.bf16.mxu1 %v8157_v41 }
 0x130   : > { %v2070_v22 = vsel %vm2064_vm4, %v2068_v53, %v2069_v55  ;;  %v8354_v57 = vsel %vm2064_vm4, %v2089_v8, %v2090_v26  ;;  %v2104_v53 = vrot.slane %v8186_v36, 1  ;;  %v10500_v55 = vld [vmem:[#allocation15_spill] sm:$0xff]  ;;  %v2111_v26 = vrot.slane %v8248_v7, 1 }
 0x135   : > { %6608 = vmatmul.mubr.bf16.gmra.mrb[84].mxu0 %v8237_v38  ;;  %v2072_v38 = vrot.slane %v7927_v30, 1  ;;  %v2081_v30 = vrot.slane %v8016_v5, 1  ;;  %v2087_v5 = vrot.slane %v8053_v43, 1  ;;  %v2093_v43 = vrot.slane %v8143_v50, 1 }
 0x136   : > { %6656 = vmatmul.mubr.bf16.gmra.mrb[84].mxu1 %v8174_v17  ;;  %6611 = vmatprep.mubr.bf16.mxu0 %v8254_v63  ;;  %v2075_v63 = vrot.slane %v7951_v60, 1  ;;  %v8328_v60 = vsel %vm2064_vm4, %v2077_v62, %v2078_v6  ;;  %v2096_v50 = vrot.slane %v8153_v61, 1  ;;  %v8378_v61 = vsel %vm2064_vm4, %v2098_v34, %v2099_v9 }
 0x137   : > { %6659 = vmatprep.mubr.bf16.mxu1 %v8186_v36  ;;  %v2073_v11 = vsel %vm2064_vm4, %v2071_v13, %v2072_v38  ;;  %v8331_v0 = vsel %vm2064_vm4, %v2080_v25, %v2081_v30  ;;  %v8357_v45 = vsel %vm2064_vm4, %v2092_v51, %v2093_v43  ;;  %v2105_v38 = vrot.slane %v10500_v55, 1 }
 0x138   : > { %v8320_v44 = vsel %vm2064_vm4, %v2074_v3, %v2075_v63  ;;  %v8371_v20 = vsel %vm2064_vm4, %v2095_v49, %v2096_v50  ;;  %v8392_v62 = vsel %vm2064_vm4, %v2101_v18, %v2102_v21 }
 0x139   : > { %v8400_v36 = vsel %vm2064_vm4, %v2104_v53, %v2105_v38 }
 0x13d   : > { %6612 = vmatmul.mubr.bf16.gmra.mrb[88].mxu0 %v8262_v1 }
 0x13e   : > { %6660 = vmatmul.mubr.bf16.gmra.mrb[88].mxu1 %v8230_v29  ;;  %6615 = vmatprep.mubr.bf16.mxu0 %v8269_v40  ;;  %v8343_v40 = vsel %vm2064_vm4, %v2086_v52, %v2087_v5  ;;  %v2107_v52 = vrot.slane %v8230_v29, 1  ;;  %v2108_v5 = vrot.slane %v8225_v10, 1 }
 0x13f   : > { %6663 = vmatprep.mubr.bf16.mxu1 %v8244_v2 }
 0x145   : > { %6616 = vmatmul.mubr.bf16.gmra.mrb[92].mxu0 %v8262_v1  ;;  %v8340_v1 = vsel %vm2064_vm4, %v2083_v23, %v2084_v35 }
 0x146   : > { %6664 = vmatmul.mubr.bf16.gmra.mrb[92].mxu1 %v8230_v29  ;;  %2354 = vmatprep.mubr.bf16.mxu0 %v2070_v22 }
 0x147   : > { %6683 = vmatprep.mubr.bf16.mxu1 %v2067_v19 }
 0x14d   : > { %2355 = vmatmul.mubr.bf16.vlgmr.msra.gmra.mrb[96].mxu0 %v2067_v19 }
 0x14e   : > { %6684 = vmatmul.mubr.bf16.vlgmr.msra.gmra.mrb[64].mxu1 %v2073_v11  ;;  %2362 = vmatprep.mubr.bf16.mxu0 %v2067_v19 }
 0x14f   : > { %6687 = vmatprep.mubr.bf16.mxu1 %v8320_v44 }
 0x155   : > { %2363 = vmatmul.mubr.bf16.gmra.mrb[100].mxu0 %v2070_v22 }
 0x156   : > { %6688 = vmatmul.mubr.bf16.gmra.mrb[68].mxu1 %v8328_v60  ;;  %2370 = vmatprep.mubr.bf16.mxu0 %v2073_v11 }
 0x157   : > { %6691 = vmatprep.mubr.bf16.mxu1 %v8331_v0 }
 0x15d   : > { %2371 = vmatmul.mubr.bf16.gmra.mrb[104].mxu0 %v2067_v19 }
 0x15e   : > { %6692 = vmatmul.mubr.bf16.gmra.mrb[72].mxu1 %v8340_v1  ;;  %2378 = vmatprep.mubr.bf16.mxu0 %v8320_v44 }
 0x15f   : > { %6695 = vmatprep.mubr.bf16.mxu1 %v8343_v40 }
 0x160   : > { %v5771_v32 = vpop.f32.mrb[0].mxu0 }
 0x161   : > { %v5907_v37 = vpop.f32.mrb[0].mxu1  ;;  %v5772_v59 = vpop.f32.mrb[1].mxu0 }
 0x162   : > { %v5908_v42 = vpop.f32.mrb[1].mxu1  ;;  %v5774_v46 = vpop.f32.mrb[2].mxu0  ;;  %v8368_v48 = vadd.f32 %v5772_v59, %v5771_v32 }
 0x163   : > { %v8351_v16 = vadd.f32 %v5908_v42, %v5907_v37  ;;  %v5910_v14 = vpop.f32.mrb[2].mxu1  ;;  %v5775_v12 = vpop.f32.mrb[3].mxu0 }
 0x164   : > { %v5911_v15 = vpop.f32.mrb[3].mxu1  ;;  %v8375_v24 = vadd.f32 %v5775_v12, %v5774_v46 }
 0x165   : > { %v8359_v31 = vadd.f32 %v5911_v15, %v5910_v14  ;;  %2379 = vmatmul.mubr.bf16.gmra.mrb[108].mxu0 %v2073_v11  ;;  %v8414_v15 = vsel %vm2064_vm4, %v2107_v52, %v2108_v5 }
 0x166   : > { %6696 = vmatmul.mubr.bf16.gmra.mrb[76].mxu1 %v8354_v57  ;;  %2386 = vmatprep.mubr.bf16.mxu0 %v8328_v60 }
 0x167   : > { %6699 = vmatprep.mubr.bf16.mxu1 %v8357_v45 }
 0x168   : > { %v5777_v28 = vpop.f32.mrb[4].mxu0 }
 0x169   : > { %v5913_v27 = vpop.f32.mrb[4].mxu1  ;;  %v5778_v19 = vpop.f32.mrb[5].mxu0 }
 0x16a   : > { %v5914_v4 = vpop.f32.mrb[5].mxu1  ;;  %v5780_v13 = vpop.f32.mrb[6].mxu0  ;;  %v8389_v63 = vadd.f32 %v5778_v19, %v5777_v28 }
 0x16b   : > { %v8373_v54 = vadd.f32 %v5914_v4, %v5913_v27  ;;  %v5916_v39 = vpop.f32.mrb[6].mxu1  ;;  %v5781_v22 = vpop.f32.mrb[7].mxu0 }
 0x16c   : > { %v5917_v41 = vpop.f32.mrb[7].mxu1  ;;  %v8396_v17 = vadd.f32 %v5781_v22, %v5780_v13 }
 0x16d   : > { %v8381_v58 = vadd.f32 %v5917_v41, %v5916_v39  ;;  %2387 = vmatmul.mubr.bf16.gmra.mrb[112].mxu0 %v8320_v44  ;;  %v2110_v44 = vrot.slane %v8244_v2, 1 }
 0x16e   : > { %6700 = vmatmul.mubr.bf16.gmra.mrb[80].mxu1 %v8371_v20  ;;  %2394 = vmatprep.mubr.bf16.mxu0 %v8331_v0 }
 0x16f   : > { %6703 = vmatprep.mubr.bf16.mxu1 %v8378_v61  ;;  %v8422_v10 = vsel %vm2064_vm4, %v2110_v44, %v2111_v26 }
 0x170   : > { %v5783_v35 = vpop.f32.mrb[8].mxu0 }
 0x171   : > { %v5919_v3 = vpop.f32.mrb[8].mxu1  ;;  %v5784_v8 = vpop.f32.mrb[9].mxu0 }
 0x172   : > { %v5920_v11 = vpop.f32.mrb[9].mxu1  ;;  %v5786_v51 = vpop.f32.mrb[10].mxu0  ;;  %v8411_v37 = vadd.f32 %v5784_v8, %v5783_v35 }
 0x173   : > { %v8394_v6 = vadd.f32 %v5920_v11, %v5919_v3  ;;  %v5922_v25 = vpop.f32.mrb[10].mxu1  ;;  %v5787_v42 = vpop.f32.mrb[11].mxu0 }
 0x174   : > { %v5923_v30 = vpop.f32.mrb[11].mxu1  ;;  %v8418_v29 = vadd.f32 %v5787_v42, %v5786_v51 }
 0x175   : > { %v8403_v23 = vadd.f32 %v5923_v30, %v5922_v25  ;;  %2395 = vmatmul.mubr.bf16.gmra.mrb[116].mxu0 %v8328_v60 }
 0x176   : > { %6704 = vmatmul.mubr.bf16.gmra.mrb[84].mxu1 %v8392_v62  ;;  %2402 = vmatprep.mubr.bf16.mxu0 %v8340_v1 }
 0x177   : > { %6707 = vmatprep.mubr.bf16.mxu1 %v8400_v36 }
 0x178   : > { %v5789_v50 = vpop.f32.mrb[12].mxu0 }
 0x179   : > { %v5925_v43 = vpop.f32.mrb[12].mxu1  ;;  %v5790_v59 = vpop.f32.mrb[13].mxu0 }
 0x17a   : > { %v5926_v14 = vpop.f32.mrb[13].mxu1  ;;  %v5792_v34 = vpop.f32.mrb[14].mxu0  ;;  %v8429_v9 = vadd.f32 %v5790_v59, %v5789_v50 }
 0x17b   : > { %v8416_v32 = vadd.f32 %v5926_v14, %v5925_v43  ;;  %v5928_v49 = vpop.f32.mrb[14].mxu1  ;;  %v5793_v46 = vpop.f32.mrb[15].mxu0 }
 0x17c   : > { %v5929_v2 = vpop.f32.mrb[15].mxu1  ;;  %v8433_v4 = vadd.f32 %v5793_v46, %v5792_v34 }
 0x17d   : > { %v8425_v7 = vadd.f32 %v5929_v2, %v5928_v49  ;;  %2403 = vmatmul.mubr.bf16.gmra.mrb[120].mxu0 %v8331_v0 }
 0x17e   : > { %6708 = vmatmul.mubr.bf16.gmra.mrb[88].mxu1 %v8414_v15  ;;  %2410 = vmatprep.mubr.bf16.mxu0 %v8343_v40 }
 0x17f   : > { %6711 = vmatprep.mubr.bf16.mxu1 %v8422_v10 }
 0x180   : > { %v5795_v28 = vpop.f32.mrb[16].mxu0 }
 0x181   : > { %v5931_v47 = vpop.f32.mrb[16].mxu1  ;;  %v5796_v18 = vpop.f32.mrb[17].mxu0 }
 0x182   : > { %v5932_v60 = vpop.f32.mrb[17].mxu1  ;;  %v5798_v33 = vpop.f32.mrb[18].mxu0  ;;  %v8440_v19 = vadd.f32 %v5796_v18, %v5795_v28 }
 0x183   : > { %v8431_v27 = vadd.f32 %v5932_v60, %v5931_v47  ;;  %v5934_v12 = vpop.f32.mrb[18].mxu1  ;;  %v5799_v53 = vpop.f32.mrb[19].mxu0 }
 0x184   : > { %v5935_v39 = vpop.f32.mrb[19].mxu1  ;;  %v8444_v3 = vadd.f32 %v5799_v53, %v5798_v33 }
 0x185   : > { %v8437_v41 = vadd.f32 %v5935_v39, %v5934_v12  ;;  %2411 = vmatmul.mubr.bf16.gmra.mrb[124].mxu0 %v8340_v1 }
 0x186   : > { %6712 = vmatmul.mubr.bf16.gmra.mrb[92].mxu1 %v8414_v15  ;;  %2418 = vmatprep.mubr.bf16.mxu0 %v8354_v57 }
 0x188   : > { %v5801_v11 = vpop.f32.mrb[20].mxu0 }
 0x189   : > { %v5937_v21 = vpop.f32.mrb[20].mxu1  ;;  %v5802_v25 = vpop.f32.mrb[21].mxu0 }
 0x18a   : > { %v5938_v55 = vpop.f32.mrb[21].mxu1  ;;  %v5804_v30 = vpop.f32.mrb[22].mxu0  ;;  %v8450_v52 = vadd.f32 %v5802_v25, %v5801_v11 }
 0x18b   : > { %v8442_v38 = vadd.f32 %v5938_v55, %v5937_v21  ;;  %v5940_v13 = vpop.f32.mrb[22].mxu1  ;;  %v5805_v5 = vpop.f32.mrb[23].mxu0 }
 0x18c   : > { %v5941_v0 = vpop.f32.mrb[23].mxu1  ;;  %v8454_v51 = vadd.f32 %v5805_v5, %v5804_v30 }
 0x18d   : > { %v8448_v22 = vadd.f32 %v5941_v0, %v5940_v13  ;;  %2419 = vmatmul.mubr.bf16.gmra.mrb[128].mxu0 %v8343_v40 }
 0x18e   : > { %2426 = vmatprep.mubr.bf16.mxu0 %v8357_v45 }
 0x190   : > { %v5807_v42 = vpop.f32.mrb[24].mxu0 }
 0x191   : > { %v5943_v35 = vpop.f32.mrb[24].mxu1  ;;  %v5808_v14 = vpop.f32.mrb[25].mxu0 }
 0x192   : > { %v5944_v8 = vpop.f32.mrb[25].mxu1  ;;  %v5810_v49 = vpop.f32.mrb[26].mxu0  ;;  %v8460_v50 = vadd.f32 %v5808_v14, %v5807_v42 }
 0x193   : > { %v8452_v44 = vadd.f32 %v5944_v8, %v5943_v35  ;;  %v5946_v26 = vpop.f32.mrb[26].mxu1  ;;  %v5811_v59 = vpop.f32.mrb[27].mxu0 }
 0x194   : > { %v5947_v1 = vpop.f32.mrb[27].mxu1  ;;  %v8464_v60 = vadd.f32 %v5811_v59, %v5810_v49 }
 0x195   : > { %v8458_v43 = vadd.f32 %v5947_v1, %v5946_v26  ;;  %2427 = vmatmul.mubr.bf16.gmra.mrb[132].mxu0 %v8354_v57 }
 0x196   : > { %2434 = vmatprep.mubr.bf16.mxu0 %v8371_v20 }
 0x198   : > { %v5813_v39 = vpop.f32.mrb[28].mxu0 }
 0x199   : > { %v5949_v2 = vpop.f32.mrb[28].mxu1  ;;  %v5814_v28 = vpop.f32.mrb[29].mxu0 }
 0x19a   : > { %v5950_v34 = vpop.f32.mrb[29].mxu1  ;;  %v5816_v18 = vpop.f32.mrb[30].mxu0  ;;  %v8470_v21 = vadd.f32 %v5814_v28, %v5813_v39 }
 0x19b   : > { %v8462_v47 = vadd.f32 %v5950_v34, %v5949_v2  ;;  %v5952_v46 = vpop.f32.mrb[30].mxu1  ;;  %v5817_v53 = vpop.f32.mrb[31].mxu0 }
 0x19c   : > { %v5953_v40 = vpop.f32.mrb[31].mxu1  ;;  %v8474_v11 = vadd.f32 %v5817_v53, %v5816_v18 }
 0x19d   : > { %v8468_v12 = vadd.f32 %v5953_v40, %v5952_v46  ;;  %2435 = vmatmul.mubr.bf16.gmra.mrb[136].mxu0 %v8357_v45 }
 0x19e   : > { %2442 = vmatprep.mubr.bf16.mxu0 %v8378_v61 }
 0x1a0   : > { %v5819_v30 = vpop.f32.mrb[32].mxu0 }
 0x1a1   : > { %v5955_v33 = vpop.f32.mrb[32].mxu1  ;;  %v5820_v35 = vpop.f32.mrb[33].mxu0 }
 0x1a2   : > { %v5956_v55 = vpop.f32.mrb[33].mxu1  ;;  %v8480_v5 = vadd.f32 %v5820_v35, %v5819_v30  ;;  %v5822_v8 = vpop.f32.mrb[34].mxu0 }
 0x1a3   : > { %v8472_v13 = vadd.f32 %v5956_v55, %v5955_v33  ;;  %v5958_v0 = vpop.f32.mrb[34].mxu1  ;;  %v5823_v1 = vpop.f32.mrb[35].mxu0 }
 0x1a4   : > { %v5959_v57 = vpop.f32.mrb[35].mxu1  ;;  %v8482_v14 = vadd.f32 %v5823_v1, %v5822_v8 }
 0x1a5   : > { %v8478_v25 = vadd.f32 %v5959_v57, %v5958_v0  ;;  %2443 = vmatmul.mubr.bf16.gmra.mrb[140].mxu0 %v8371_v20 }
 0x1a6   : > { %2450 = vmatprep.mubr.bf16.mxu0 %v8392_v62 }
 0x1a8   : > { %v5825_v34 = vpop.f32.mrb[36].mxu0 }
 0x1a9   : > { %v5961_v26 = vpop.f32.mrb[36].mxu1  ;;  %v5826_v46 = vpop.f32.mrb[37].mxu0 }
 0x1aa   : > { %v5962_v42 = vpop.f32.mrb[37].mxu1  ;;  %v8490_v40 = vadd.f32 %v5826_v46, %v5825_v34  ;;  %v5828_v39 = vpop.f32.mrb[38].mxu0 }
 0x1ab   : > { %v8484_v49 = vadd.f32 %v5962_v42, %v5961_v26  ;;  %v5964_v2 = vpop.f32.mrb[38].mxu1  ;;  %v5829_v18 = vpop.f32.mrb[39].mxu0 }
 0x1ac   : > { %v5965_v45 = vpop.f32.mrb[39].mxu1  ;;  %v8492_v53 = vadd.f32 %v5829_v18, %v5828_v39 }
 0x1ad   : > { %v8488_v59 = vadd.f32 %v5965_v45, %v5964_v2  ;;  %2451 = vmatmul.mubr.bf16.gmra.mrb[144].mxu0 %v8378_v61 }
 0x1ae   : > { %2458 = vmatprep.mubr.bf16.mxu0 %v8400_v36 }
 0x1b0   : > { %v5831_v30 = vpop.f32.mrb[40].mxu0 }
 0x1b1   : > { %v5967_v28 = vpop.f32.mrb[40].mxu1  ;;  %v5832_v35 = vpop.f32.mrb[41].mxu0 }
 0x1b2   : > { %v5968_v33 = vpop.f32.mrb[41].mxu1  ;;  %v8500_v8 = vadd.f32 %v5832_v35, %v5831_v30  ;;  %v5834_v26 = vpop.f32.mrb[42].mxu0 }
 0x1b3   : > { %v8494_v55 = vadd.f32 %v5968_v33, %v5967_v28  ;;  %v5970_v0 = vpop.f32.mrb[42].mxu1  ;;  %v5835_v42 = vpop.f32.mrb[43].mxu0 }
 0x1b4   : > { %v5971_v20 = vpop.f32.mrb[43].mxu1  ;;  %v8502_v45 = vadd.f32 %v5835_v42, %v5834_v26 }
 0x1b5   : > { %v8498_v57 = vadd.f32 %v5971_v20, %v5970_v0  ;;  %2459 = vmatmul.mubr.bf16.gmra.mrb[148].mxu0 %v8392_v62 }
 0x1b6   : > { %2466 = vmatprep.mubr.bf16.mxu0 %v8414_v15 }
 0x1b7   : > { %10501 = vst [vmem:[#allocation13_spill] sm:$0xff] %v8498_v57 }
 0x1b8   : > { %v5837_v28 = vpop.f32.mrb[44].mxu0 }
 0x1b9   : > { %v5973_v1 = vpop.f32.mrb[44].mxu1  ;;  %v5838_v18 = vpop.f32.mrb[45].mxu0 }
 0x1ba   : > { %v5974_v2 = vpop.f32.mrb[45].mxu1  ;;  %v8510_v33 = vadd.f32 %v5838_v18, %v5837_v28  ;;  %v5840_v0 = vpop.f32.mrb[46].mxu0 }
 0x1bb   : > { %v8504_v34 = vadd.f32 %v5974_v2, %v5973_v1  ;;  %v5976_v46 = vpop.f32.mrb[46].mxu1  ;;  %v5841_v30 = vpop.f32.mrb[47].mxu0 }
 0x1bc   : > { %v5977_v61 = vpop.f32.mrb[47].mxu1  ;;  %v8512_v26 = vadd.f32 %v5841_v30, %v5840_v0 }
 0x1bd   : > { %v8508_v39 = vadd.f32 %v5977_v61, %v5976_v46  ;;  %2467 = vmatmul.mubr.bf16.gmra.mrb[152].mxu0 %v8400_v36 }
 0x1be   : > { %2474 = vmatprep.mubr.bf16.mxu0 %v8422_v10 }
 0x1bf   : > { %10502 = vst [vmem:[#allocation14_spill] sm:$0xff] %v8508_v39 }
 0x1c0   : > { %v5843_v46 = vpop.f32.mrb[48].mxu0 }
 0x1c1   : > { %v5979_v20 = vpop.f32.mrb[48].mxu1  ;;  %v5844_v61 = vpop.f32.mrb[49].mxu0 }
 0x1c2   : > { %v5980_v35 = vpop.f32.mrb[49].mxu1  ;;  %v8520_v28 = vadd.f32 %v5844_v61, %v5843_v46  ;;  %v5846_v18 = vpop.f32.mrb[50].mxu0 }
 0x1c3   : > { %v8514_v1 = vadd.f32 %v5980_v35, %v5979_v20  ;;  %v5982_v42 = vpop.f32.mrb[50].mxu1  ;;  %v5847_v57 = vpop.f32.mrb[51].mxu0 }
 0x1c4   : > { %v5983_v62 = vpop.f32.mrb[51].mxu1  ;;  %10505 = vst [vmem:[#allocation17_spill] sm:$0xff] %v8520_v28  ;;  %v8522_v0 = vadd.f32 %v5847_v57, %v5846_v18 }
 0x1c5   : > { %10503 = vst [vmem:[#allocation15_spill] sm:$0xff] %v8514_v1  ;;  %v8518_v2 = vadd.f32 %v5983_v62, %v5982_v42  ;;  %2475 = vmatmul.mubr.bf16.gmra.mrb[156].mxu0 %v8414_v15 }
 0x1c6   : > { %10506 = vst [vmem:[#allocation18_spill] sm:$0xff] %v8522_v0 }
 0x1c7   : > { %10504 = vst [vmem:[#allocation16_spill] sm:$0xff] %v8518_v2 }
 0x1c8   : > { %v5849_v10 = vpop.f32.mrb[52].mxu0 }
 0x1c9   : > { %v5985_v56 = vpop.f32.mrb[52].mxu1  ;;  %v5850_v42 = vpop.f32.mrb[53].mxu0 }
 0x1ca   : > { %v5986_v39 = vpop.f32.mrb[53].mxu1  ;;  %v8529_v62 = vadd.f32 %v5850_v42, %v5849_v10  ;;  %v5852_v46 = vpop.f32.mrb[54].mxu0 }
 0x1cb   : > { %v8524_v20 = vadd.f32 %v5986_v39, %v5985_v56  ;;  %v5988_v30 = vpop.f32.mrb[54].mxu1  ;;  %v5853_v2 = vpop.f32.mrb[55].mxu0 }
 0x1cc   : > { %v5989_v36 = vpop.f32.mrb[55].mxu1  ;;  %10509 = vst [vmem:[#allocation21_spill] sm:$0xff] %v8529_v62  ;;  %v8531_v28 = vadd.f32 %v5853_v2, %v5852_v46 }
 0x1cd   : > { %10507 = vst [vmem:[#allocation19_spill] sm:$0xff] %v8524_v20  ;;  %v8527_v35 = vadd.f32 %v5989_v36, %v5988_v30 }
 0x1ce   : > { %10510 = vst [vmem:[#allocation22_spill] sm:$0xff] %v8531_v28 }
 0x1cf   : > { %10508 = vst [vmem:[#allocation20_spill] sm:$0xff] %v8527_v35 }
 0x1d0   : > { %v5855_v15 = vpop.f32.mrb[56].mxu0 }
 0x1d1   : > { %v5991_v61 = vpop.f32.mrb[56].mxu1  ;;  %v5856_v0 = vpop.f32.mrb[57].mxu0 }
 0x1d2   : > { %v5992_v1 = vpop.f32.mrb[57].mxu1  ;;  %v8537_v30 = vadd.f32 %v5856_v0, %v5855_v15  ;;  %v5858_v36 = vpop.f32.mrb[58].mxu0 }
 0x1d3   : > { %v8533_v57 = vadd.f32 %v5992_v1, %v5991_v61  ;;  %v5994_v56 = vpop.f32.mrb[58].mxu1  ;;  %v5859_v10 = vpop.f32.mrb[59].mxu0 }
 0x1d4   : > { %v5995_v39 = vpop.f32.mrb[59].mxu1  ;;  %10513 = vst [vmem:[#allocation25_spill] sm:$0xff] %v8537_v30  ;;  %v8539_v20 = vadd.f32 %v5859_v10, %v5858_v36 }
 0x1d5   : > { %10511 = vst [vmem:[#allocation23_spill] sm:$0xff] %v8533_v57  ;;  %v8535_v18 = vadd.f32 %v5995_v39, %v5994_v56 }
 0x1d7   : > { %10512 = vst [vmem:[#allocation24_spill] sm:$0xff] %v8535_v18 }
 0x1d8   : > { %v5861_v61 = vpop.f32.mrb[60].mxu0 }
 0x1d9   : > { %v5997_v35 = vpop.f32.mrb[60].mxu1  ;;  %v5862_v57 = vpop.f32.mrb[61].mxu0 }
 0x1da   : > { %v5998_v42 = vpop.f32.mrb[61].mxu1  ;;  %v8545_v56 = vadd.f32 %v5862_v57, %v5861_v61  ;;  %v5864_v39 = vpop.f32.mrb[62].mxu0 }
 0x1db   : > { %v8541_v62 = vadd.f32 %v5998_v42, %v5997_v35  ;;  %v6000_v2 = vpop.f32.mrb[62].mxu1  ;;  %v5865_v18 = vpop.f32.mrb[63].mxu0 }
 0x1dc   : > { %v6001_v46 = vpop.f32.mrb[63].mxu1  ;;  %v8547_v0 = vadd.f32 %v5865_v18, %v5864_v39 }
 0x1dd   : > { %v8543_v1 = vadd.f32 %v6001_v46, %v6000_v2 }
 0x1e0   : > { %v6589_v15 = vpop.f32.mrb[64].mxu0 }
 0x1e1   : > { %v1448_v30 = vadd.f32 %v6589_v15, %v8389_v63  ;;  %v1439_v28 = vpop.f32.mrb[65].mxu0 }
 0x1e2   : > { %v1440_v36 = vadd.f32 %v8368_v48, %v1439_v28  ;;  %v6590_v35 = vpop.f32.mrb[66].mxu0 }
 0x1e3   : > { %v8552_v10 = vadd.f32 %v8373_v54, %v1448_v30  ;;  %v1451_v42 = vadd.f32 %v6590_v35, %v8396_v17  ;;  %v1442_v2 = vpop.f32.mrb[67].mxu0 }
 0x1e4   : > { %v8556_v57 = vadd.f32 %v8351_v16, %v1440_v36  ;;  %v1443_v46 = vadd.f32 %v8375_v24, %v1442_v2 }
 0x1e5   : > { %v8560_v18 = vadd.f32 %v8381_v58, %v1451_v42 }
 0x1e6   : > { %v8563_v63 = vadd.f32 %v8359_v31, %v1443_v46 }
 0x1e8   : > { %v6593_v61 = vpop.f32.mrb[68].mxu0 }
 0x1e9   : > { %v1464_v48 = vadd.f32 %v6593_v61, %v8429_v9  ;;  %v1455_v28 = vpop.f32.mrb[69].mxu0 }
 0x1ea   : > { %v1456_v54 = vadd.f32 %v8411_v37, %v1455_v28  ;;  %v6594_v30 = vpop.f32.mrb[70].mxu0 }
 0x1eb   : > { %v8568_v17 = vadd.f32 %v8416_v32, %v1464_v48  ;;  %v1467_v16 = vadd.f32 %v6594_v30, %v8433_v4  ;;  %v1458_v39 = vpop.f32.mrb[71].mxu0 }
 0x1ec   : > { %v8572_v24 = vadd.f32 %v8394_v6, %v1456_v54  ;;  %v1459_v58 = vadd.f32 %v8418_v29, %v1458_v39 }
 0x1ed   : > { %v8576_v31 = vadd.f32 %v8425_v7, %v1467_v16 }
 0x1ee   : > { %v8579_v9 = vadd.f32 %v8403_v23, %v1459_v58 }
 0x1f0   : > { %v6597_v15 = vpop.f32.mrb[72].mxu0 }
 0x1f1   : > { %v1480_v37 = vadd.f32 %v6597_v15, %v8450_v52  ;;  %v1471_v36 = vpop.f32.mrb[73].mxu0 }
 0x1f2   : > { %v1472_v32 = vadd.f32 %v8440_v19, %v1471_v36  ;;  %v6598_v35 = vpop.f32.mrb[74].mxu0 }
 0x1f3   : > { %v8584_v4 = vadd.f32 %v8442_v38, %v1480_v37  ;;  %v1483_v6 = vadd.f32 %v6598_v35, %v8454_v51  ;;  %v1474_v42 = vpop.f32.mrb[75].mxu0 }
 0x1f4   : > { %v8588_v29 = vadd.f32 %v8431_v27, %v1472_v32  ;;  %v1475_v7 = vadd.f32 %v8444_v3, %v1474_v42  ;;  %v10515_v32 = vld [vmem:[#allocation13_spill] sm:$0xff] }
 0x1f5   : > { %v8592_v23 = vadd.f32 %v8448_v22, %v1483_v6 }
 0x1f6   : > { %v8595_v52 = vadd.f32 %v8437_v41, %v1475_v7 }
 0x1f8   : > { %v6601_v2 = vpop.f32.mrb[76].mxu0 }
 0x1f9   : > { %v1496_v19 = vadd.f32 %v6601_v2, %v8470_v21  ;;  %v1487_v46 = vpop.f32.mrb[77].mxu0 }
 0x1fa   : > { %v1488_v38 = vadd.f32 %v8460_v50, %v1487_v46  ;;  %v6602_v61 = vpop.f32.mrb[78].mxu0 }
 0x1fb   : > { %v8600_v51 = vadd.f32 %v8462_v47, %v1496_v19  ;;  %v1499_v27 = vadd.f32 %v6602_v61, %v8474_v11  ;;  %v1490_v48 = vpop.f32.mrb[79].mxu0 }
 0x1fc   : > { %v8604_v3 = vadd.f32 %v8452_v44, %v1488_v38  ;;  %v1491_v22 = vadd.f32 %v8464_v60, %v1490_v48 }
 0x1fd   : > { %v8608_v41 = vadd.f32 %v8468_v12, %v1499_v27  ;;  %v10521_v27 = vld [vmem:[#allocation18_spill] sm:$0xff] }
 0x1fe   : > { %v8611_v21 = vadd.f32 %v8458_v43, %v1491_v22  ;;  %v10522_v22 = vld [vmem:[#allocation20_spill] sm:$0xff] }
 0x200   : > { %v6605_v28 = vpop.f32.mrb[80].mxu0 }
 0x201   : > { %v1512_v50 = vadd.f32 %v6605_v28, %v8490_v40  ;;  %v1503_v54 = vpop.f32.mrb[81].mxu0 }
 0x202   : > { %v1504_v47 = vadd.f32 %v8480_v5, %v1503_v54  ;;  %v6606_v30 = vpop.f32.mrb[82].mxu0 }
 0x203   : > { %v8616_v11 = vadd.f32 %v8484_v49, %v1512_v50  ;;  %v1515_v44 = vadd.f32 %v6606_v30, %v8492_v53  ;;  %v1506_v16 = vpop.f32.mrb[83].mxu0  ;;  %v10523_v50 = vld [vmem:[#allocation16_spill] sm:$0xff] }
 0x204   : > { %v8620_v60 = vadd.f32 %v8472_v13, %v1504_v47  ;;  %v1507_v12 = vadd.f32 %v8482_v14, %v1506_v16  ;;  %v10524_v16 = vld [vmem:[#allocation25_spill] sm:$0xff] }
 0x205   : > { %v8624_v43 = vadd.f32 %v8488_v59, %v1515_v44 }
 0x206   : > { %v8627_v40 = vadd.f32 %v8478_v25, %v1507_v12  ;;  %v10514_v25 = vld [vmem:[#allocation14_spill] sm:$0xff] }
 0x208   : > { %v6609_v39 = vpop.f32.mrb[84].mxu0 }
 0x209   : > { %v1528_v5 = vadd.f32 %v6609_v39, %v8510_v33  ;;  %v1519_v58 = vpop.f32.mrb[85].mxu0 }
 0x20a   : > { %v1520_v49 = vadd.f32 %v8500_v8, %v1519_v58  ;;  %v6610_v15 = vpop.f32.mrb[86].mxu0  ;;  %v10516_v8 = vld [vmem:[#allocation21_spill] sm:$0xff] }
 0x20b   : > { %v8632_v53 = vadd.f32 %v8504_v34, %v1528_v5  ;;  %v1531_v13 = vadd.f32 %v6610_v15, %v8512_v26  ;;  %v1522_v37 = vpop.f32.mrb[87].mxu0  ;;  %v10517_v34 = vld [vmem:[#allocation17_spill] sm:$0xff]  ;;  %v10518_v26 = vld [vmem:[#allocation19_spill] sm:$0xff] }
 0x20c   : > { %v8636_v14 = vadd.f32 %v8494_v55, %v1520_v49  ;;  %v1523_v59 = vadd.f32 %v8502_v45, %v1522_v37  ;;  %v10519_v55 = vld [vmem:[#allocation22_spill] sm:$0xff]  ;;  %v10520_v45 = vld [vmem:[#allocation15_spill] sm:$0xff] }
 0x20d   : > { %v8640_v36 = vadd.f32 %v10514_v25, %v1531_v13  ;;  %v10525_v37 = vld [vmem:[#allocation23_spill] sm:$0xff] }
 0x20e   : > { %v8643_v33 = vadd.f32 %v10515_v32, %v1523_v59 }
 0x210   : > { %v6613_v35 = vpop.f32.mrb[88].mxu0 }
 0x211   : > { %v1544_v6 = vadd.f32 %v6613_v35, %v10516_v8  ;;  %v1535_v42 = vpop.f32.mrb[89].mxu0  ;;  %v10526_v8 = vld [vmem:[#allocation24_spill] sm:$0xff] }
 0x212   : > { %v1536_v7 = vadd.f32 %v10517_v34, %v1535_v42  ;;  %v6614_v2 = vpop.f32.mrb[90].mxu0 }
 0x213   : > { %v8648_v19 = vadd.f32 %v10518_v26, %v1544_v6  ;;  %v1547_v46 = vadd.f32 %v6614_v2, %v10519_v55  ;;  %v1538_v38 = vpop.f32.mrb[91].mxu0  ;;  %v7370_v2 = vld [vmem:[#allocation7 + $0x100] sm:$0xff]  }
 0x214   : > { %v8652_v61 = vadd.f32 %v10520_v45, %v1536_v7  ;;  %v1539_v48 = vadd.f32 %v10521_v27, %v1538_v38  ;;  %6163 = vmatprep.subr.bf16.mxu0 %v7370_v2 }
 0x215   : > { %v8656_v28 = vadd.f32 %v10522_v22, %v1547_v46 }
 0x216   : > { %v8659_v54 = vadd.f32 %v10523_v50, %v1539_v48 }
 0x218   : > { %v6617_v47 = vpop.f32.mrb[92].mxu0 }
 0x219   : > { %v1560_v30 = vadd.f32 %v6617_v47, %v8545_v56  ;;  %v1551_v44 = vpop.f32.mrb[93].mxu0 }
 0x21a   : > { %v1552_v12 = vadd.f32 %v10524_v16, %v1551_v44  ;;  %v6618_v39 = vpop.f32.mrb[94].mxu0 }
 0x21b   : > { %v8664_v58 = vadd.f32 %v8541_v62, %v1560_v30  ;;  %v1563_v49 = vadd.f32 %v6618_v39, %v8547_v0  ;;  %v1554_v15 = vpop.f32.mrb[95].mxu0 }
 0x21c   : > { %v8668_v59 = vadd.f32 %v10525_v37, %v1552_v12  ;;  %v1555_v25 = vadd.f32 %v8539_v20, %v1554_v15 }
 0x21d   : > { %v8672_v56 = vadd.f32 %v8543_v1, %v1563_v49 }
 0x21e   : > { %v8675_v6 = vadd.f32 %v10526_v8, %v1555_v25 }
 0x220   : > { %v6043_v42 = vpop.f32.mrb[96].mxu0 }
 0x221   : > { %v6685_v5 = vpop.f32.mrb[64].mxu1  ;;  %v6044_v62 = vpop.f32.mrb[97].mxu0 }
 0x222   : > { %v2517_v13 = vpop.f32.mrb[65].mxu1  ;;  %v6045_v34 = vadd.f32 %v6044_v62, %v6043_v42  ;;  %v6046_v7 = vpop.f32.mrb[98].mxu0 }
 0x223   : > { %v6686_v32 = vpop.f32.mrb[66].mxu1  ;;  %v6047_v26 = vpop.f32.mrb[99].mxu0 }
 0x224   : > { %v2520_v35 = vpop.f32.mrb[67].mxu1  ;;  %v6865_v46 = vadd.f32 %v6045_v34, %v8556_v57  ;;  %v6048_v38 = vadd.f32 %v6047_v26, %v6046_v7 }
 0x226   : > { %v8678_v1 = vadd.f32 %v6865_v46, %v2517_v13  ;;  %v6873_v27 = vadd.f32 %v6048_v38, %v8563_v63 }
 0x228   : > { %v8681_v48 = vadd.f32 %v6873_v27, %v2520_v35  ;;  %v6049_v22 = vpop.f32.mrb[100].mxu0 }
 0x229   : > { %v6689_v0 = vpop.f32.mrb[68].mxu1  ;;  %v6050_v50 = vpop.f32.mrb[101].mxu0 }
 0x22a   : > { %v2533_v55 = vpop.f32.mrb[69].mxu1  ;;  %10527 = vst [vmem:[#allocation14_spill] sm:$0xff] %v8681_v48  ;;  %v6051_v47 = vadd.f32 %v6050_v50, %v6049_v22  ;;  %v6052_v30 = vpop.f32.mrb[102].mxu0 }
 0x22b   : > { %v6690_v20 = vpop.f32.mrb[70].mxu1  ;;  %v6053_v16 = vpop.f32.mrb[103].mxu0 }
 0x22c   : > { %v2536_v45 = vpop.f32.mrb[71].mxu1  ;;  %v6861_v57 = vadd.f32 %v6051_v47, %v8552_v10  ;;  %v6054_v39 = vadd.f32 %v6053_v16, %v6052_v30 }
 0x22e   : > { %v8688_v13 = vadd.f32 %v6861_v57, %v6685_v5  ;;  %v6869_v63 = vadd.f32 %v6054_v39, %v8560_v18 }
 0x230   : > { %10528 = vst [vmem:[#allocation13_spill] sm:$0xff] %v8688_v13  ;;  %v8691_v37 = vadd.f32 %v6869_v63, %v6686_v32  ;;  %v6055_v25 = vpop.f32.mrb[104].mxu0 }
 0x231   : > { %v8683_v44 = vpop.f32.mrb[72].mxu1  ;;  %v6056_v35 = vpop.f32.mrb[105].mxu0 }
 0x232   : > { %v2549_v12 = vpop.f32.mrb[73].mxu1  ;;  %v6057_v8 = vadd.f32 %v6056_v35, %v6055_v25  ;;  %v6058_v42 = vpop.f32.mrb[106].mxu0  ;;  %v2717_v25 = vmul.f32 %v8678_v1, %v8678_v1  ;;  %v2719_v35 = vmul.f32 %v8688_v13, %v8688_v13 }
 0x233   : > { %v8686_v49 = vpop.f32.mrb[74].mxu1  ;;  %v6059_v34 = vpop.f32.mrb[107].mxu0 }
 0x234   : > { %v2552_v15 = vpop.f32.mrb[75].mxu1  ;;  %v6881_v10 = vadd.f32 %v6057_v8, %v8572_v24  ;;  %v6060_v2 = vadd.f32 %v6059_v34, %v6058_v42 }
 0x236   : > { %v8702_v46 = vadd.f32 %v6881_v10, %v2533_v55  ;;  %v6889_v18 = vadd.f32 %v6060_v2, %v8579_v9  ;;  %v2718_v55 = vmul.f32 %v8681_v48, %v8681_v48 }
 0x238   : > { %10529 = vst [vmem:[#allocation21_spill] sm:$0xff] %v8702_v46  ;;  %v8705_v32 = vadd.f32 %v6889_v18, %v2536_v45  ;;  %v6061_v38 = vpop.f32.mrb[108].mxu0  ;;  %v2749_v34 = vadd.f32 %v2718_v55, %v2717_v25 }
 0x239   : > { %v8693_v62 = vpop.f32.mrb[76].mxu1  ;;  %v6062_v27 = vpop.f32.mrb[109].mxu0 }
 0x23a   : > { %v8695_v7 = vpop.f32.mrb[77].mxu1  ;;  %10530 = vst [vmem:[#allocation17_spill] sm:$0xff] %v8705_v32  ;;  %v6063_v22 = vadd.f32 %v6062_v27, %v6061_v38  ;;  %v6064_v50 = vpop.f32.mrb[110].mxu0  ;;  %v2720_v27 = vmul.f32 %v8691_v37, %v8691_v37 }
 0x23b   : > { %v8698_v26 = vpop.f32.mrb[78].mxu1  ;;  %v6065_v30 = vpop.f32.mrb[111].mxu0 }
 0x23c   : > { %v8700_v5 = vpop.f32.mrb[79].mxu1  ;;  %v6877_v24 = vadd.f32 %v6063_v22, %v8568_v17  ;;  %v6066_v57 = vadd.f32 %v6065_v30, %v6064_v50  ;;  %v2678_v17 = vadd.f32 %v8681_v48, %v8678_v1 }
 0x23e   : > { %v8718_v45 = vadd.f32 %v6877_v24, %v6689_v0  ;;  %v6885_v63 = vadd.f32 %v6066_v57, %v8576_v31  ;;  %v2679_v2 = vadd.f32 %v8688_v13, %v2678_v17  ;;  %v2750_v31 = vadd.f32 %v2749_v34, %v2719_v35 }
 0x23f   : > { %v2721_v57 = vmul.f32 %v8702_v46, %v8702_v46 }
 0x240   : > { %10531 = vst [vmem:[#allocation19_spill] sm:$0xff] %v8718_v45  ;;  %v8727_v8 = vadd.f32 %v6885_v63, %v6690_v20  ;;  %v6067_v42 = vpop.f32.mrb[112].mxu0  ;;  %v2680_v63 = vadd.f32 %v8691_v37, %v2679_v2  ;;  %v2751_v17 = vadd.f32 %v2750_v31, %v2720_v27 }
 0x241   : > { %v8707_v47 = vpop.f32.mrb[80].mxu1  ;;  %v6068_v10 = vpop.f32.mrb[113].mxu0 }
 0x242   : > { %v8709_v16 = vpop.f32.mrb[81].mxu1  ;;  %v6069_v0 = vadd.f32 %v6068_v10, %v6067_v42  ;;  %v6070_v18 = vpop.f32.mrb[114].mxu0  ;;  %v2681_v42 = vadd.f32 %v8702_v46, %v2680_v63  ;;  %v2752_v10 = vadd.f32 %v2751_v17, %v2721_v57 }
 0x243   : > { %v8712_v39 = vpop.f32.mrb[82].mxu1  ;;  %v6071_v22 = vpop.f32.mrb[115].mxu0 }
 0x244   : > { %v8716_v9 = vpop.f32.mrb[83].mxu1  ;;  %v6897_v30 = vadd.f32 %v6069_v0, %v8588_v29  ;;  %v6072_v20 = vadd.f32 %v6071_v22, %v6070_v18  ;;  %v2722_v0 = vmul.f32 %v8705_v32, %v8705_v32  ;;  %v2682_v31 = vadd.f32 %v8705_v32, %v2681_v42 }
 0x246   : > { %v8744_v25 = vadd.f32 %v6897_v30, %v2549_v12  ;;  %v6905_v35 = vadd.f32 %v6072_v20, %v8595_v52  ;;  %v2723_v12 = vmul.f32 %v8718_v45, %v8718_v45  ;;  %v2753_v20 = vadd.f32 %v2752_v10, %v2722_v0 }
 0x247   : > { %v2683_v63 = vadd.f32 %v8718_v45, %v2682_v31  ;;  %v7371_v45 = vld [vmem:[#allocation7 + $0xc0] sm:$0xff]  }
 0x248   : > { %10532 = vst [vmem:[#allocation22_spill] sm:$0xff] %v8744_v25  ;;  %v8748_v34 = vadd.f32 %v6905_v35, %v2552_v15  ;;  %v6073_v29 = vpop.f32.mrb[116].mxu0  ;;  %6164 = vmatpush3.bf16.msra.mxu0 %v7371_v45 }
 0x249   : > { %v8730_v38 = vpop.f32.mrb[84].mxu1  ;;  %v6074_v18 = vpop.f32.mrb[117].mxu0  ;;  %v2684_v0 = vadd.f32 %v8727_v8, %v2683_v63 }
 0x24a   : > { %v8734_v50 = vpop.f32.mrb[85].mxu1  ;;  %10533 = vst [vmem:[#allocation15_spill] sm:$0xff] %v8748_v34  ;;  %v6075_v22 = vadd.f32 %v6074_v18, %v6073_v29  ;;  %v6076_v13 = vpop.f32.mrb[118].mxu0  ;;  %v2754_v29 = vadd.f32 %v2753_v20, %v2723_v12  ;;  %v2724_v18 = vmul.f32 %v8727_v8, %v8727_v8  ;;  %v2726_v63 = vmul.f32 %v8748_v34, %v8748_v34 }
 0x24b   : > { %v8737_v24 = vpop.f32.mrb[86].mxu1  ;;  %v6077_v2 = vpop.f32.mrb[119].mxu0 }
 0x24c   : > { %v8741_v55 = vpop.f32.mrb[87].mxu1  ;;  %v6893_v15 = vadd.f32 %v6075_v22, %v8584_v4  ;;  %v6078_v27 = vadd.f32 %v6077_v2, %v6076_v13  ;;  %v2725_v13 = vmul.f32 %v8744_v25, %v8744_v25  ;;  %v2755_v31 = vadd.f32 %v2754_v29, %v2724_v18 }
 0x24e   : > { %v8766_v35 = vadd.f32 %v6893_v15, %v8683_v44  ;;  %v6901_v17 = vadd.f32 %v6078_v27, %v8592_v23  ;;  %v7372_v15 = vld [vmem:[#allocation7 + $0x140] sm:$0xff]   ;;  %v2685_v27 = vadd.f32 %v8744_v25, %v2684_v0  ;;  %v2756_v32 = vadd.f32 %v2755_v31, %v2725_v13  ;;  %v7379_v25 = vld [vmem:[#allocation7 + $0xd0] sm:$0xff]  }
 0x24f   : > { %6715 = vmatprep.subr.bf16.mxu1 %v7372_v15 }
 0x250   : > { %v8772_v42 = vadd.f32 %v6901_v17, %v8686_v49  ;;  %v6079_v4 = vpop.f32.mrb[120].mxu0  ;;  %6716 = vmatpush3.bf16.msra.mxu1 %v7372_v15  ;;  %v2727_v13 = vmul.f32 %v8766_v35, %v8766_v35 }
 0x251   : > { %v8752_v48 = vpop.f32.mrb[88].mxu1  ;;  %v6080_v10 = vpop.f32.mrb[121].mxu0 }
 0x252   : > { %v8756_v52 = vpop.f32.mrb[89].mxu1  ;;  %v6081_v22 = vadd.f32 %v6080_v10, %v6079_v4  ;;  %v6082_v2 = vpop.f32.mrb[122].mxu0  ;;  %v7373_v4 = vld [vmem:[#allocation7 + $0x148] sm:$0xff]   ;;  %v2686_v10 = vadd.f32 %v8748_v34, %v2685_v27  ;;  %v7376_v27 = vld [vmem:[#allocation7 + $0x150] sm:$0xff]  }
 0x253   : > { %v8760_v30 = vpop.f32.mrb[90].mxu1  ;;  %v6083_v23 = vpop.f32.mrb[123].mxu0  ;;  %6717 = vmatprep.subr.bf16.mxu1 %v7373_v4 }
 0x254   : > { %v8762_v57 = vpop.f32.mrb[91].mxu1  ;;  %v6913_v49 = vadd.f32 %v6081_v22, %v8604_v3  ;;  %v6084_v20 = vadd.f32 %v6083_v23, %v6082_v2  ;;  %v7374_v3 = vld [vmem:[#allocation7 + $0x108] sm:$0xff]   ;;  %6718 = vmatpush3.bf16.msra.mxu1 %v7373_v4 }
 0x255   : > { %v7375_v2 = vld [vmem:[#allocation7 + $0xc8] sm:$0xff]   ;;  %6165 = vmatprep.subr.bf16.mxu0 %v7374_v3  ;;  %6719 = vmatprep.subr.bf16.mxu1 %v7376_v27 }
 0x256   : > { %v8790_v29 = vadd.f32 %v6913_v49, %v8695_v7  ;;  %v6921_v18 = vadd.f32 %v6084_v20, %v8611_v21  ;;  %v2757_v7 = vadd.f32 %v2756_v32, %v2726_v63  ;;  %v2687_v21 = vadd.f32 %v8766_v35, %v2686_v10  ;;  %6166 = vmatpush3.bf16.msra.mxu0 %v7375_v2  ;;  %v7378_v49 = vld [vmem:[#allocation7 + $0x110] sm:$0xff]   ;;  %v7377_v10 = vld [vmem:[#allocation7 + $0x158] sm:$0xff]  }
 0x257   : > { %6167 = vmatprep.subr.bf16.mxu0 %v7378_v49 }
 0x258   : > { %v8797_v0 = vadd.f32 %v6921_v18, %v8700_v5  ;;  %v6085_v22 = vpop.f32.mrb[124].mxu0  ;;  %v2758_v20 = vadd.f32 %v2757_v7, %v2727_v13  ;;  %v2728_v5 = vmul.f32 %v8772_v42, %v8772_v42  ;;  %v2688_v32 = vadd.f32 %v8772_v42, %v2687_v21  ;;  %6720 = vmatpush3.bf16.msra.mxu1 %v7376_v27  ;;  %v7382_v13 = vld [vmem:[#allocation7 + $0x118] sm:$0xff]  }
 0x259   : > { %v8777_v44 = vpop.f32.mrb[92].mxu1  ;;  %v6086_v31 = vpop.f32.mrb[125].mxu0  ;;  %v2729_v63 = vmul.f32 %v8790_v29, %v8790_v29  ;;  %v7383_v7 = vld [vmem:[#allocation7 + $0xd8] sm:$0xff]   ;;  %6721 = vmatprep.subr.bf16.mxu1 %v7377_v10 }
 0x25a   : > { %v8779_v12 = vpop.f32.mrb[93].mxu1  ;;  %v6087_v45 = vadd.f32 %v6086_v31, %v6085_v22  ;;  %v6088_v23 = vpop.f32.mrb[126].mxu0  ;;  %6168 = vmatpush3.bf16.msra.mxu0 %v7379_v25  ;;  %v2759_v22 = vadd.f32 %v2758_v20, %v2728_v5  ;;  %v7381_v5 = vld [vmem:[#allocation7 + $0x168] sm:$0xff]  }
 0x25b   : > { %v8783_v17 = vpop.f32.mrb[94].mxu1  ;;  %v6089_v15 = vpop.f32.mrb[127].mxu0  ;;  %6169 = vmatprep.subr.bf16.mxu0 %v7382_v13 }
 0x25c   : > { %v8785_v46 = vpop.f32.mrb[95].mxu1  ;;  %v6909_v18 = vadd.f32 %v6087_v45, %v8600_v51  ;;  %v6090_v34 = vadd.f32 %v6089_v15, %v6088_v23  ;;  %v2689_v51 = vadd.f32 %v8790_v29, %v2688_v32  ;;  %v2760_v45 = vadd.f32 %v2759_v22, %v2729_v63  ;;  %6722 = vmatpush3.bf16.msra.mxu1 %v7377_v10  ;;  %v7380_v23 = vld [vmem:[#allocation7 + $0x160] sm:$0xff]   ;;  %v7387_v32 = vld [vmem:[#allocation7 + $0x128] sm:$0xff]   ;;  %v7385_v22 = vld [vmem:[#allocation7 + $0x170] sm:$0xff]  }
 0x25d   : > { %v7384_v15 = vld [vmem:[#allocation7 + $0x120] sm:$0xff]   ;;  %6723 = vmatprep.subr.bf16.mxu1 %v7380_v23 }
 0x25e   : > { %v8807_v4 = vadd.f32 %v6909_v18, %v8693_v62  ;;  %v6917_v3 = vadd.f32 %v6090_v34, %v8608_v41  ;;  %v2730_v62 = vmul.f32 %v8797_v0, %v8797_v0  ;;  %6170 = vmatpush3.bf16.msra.mxu0 %v7383_v7  ;;  %v2690_v27 = vadd.f32 %v8797_v0, %v2689_v51  ;;  %v7386_v18 = vld [vmem:[#allocation7 + $0xe0] sm:$0xff]   ;;  %v7388_v51 = vld [vmem:[#allocation7 + $0xe8] sm:$0xff]  }
 0x25f   : > { %6171 = vmatprep.subr.bf16.mxu0 %v7384_v15  ;;  %v7391_v15 = vld [vmem:[#allocation7 + $0xf0] sm:$0xff]  }
 0x260   : > { %v8812_v2 = vadd.f32 %v6917_v3, %v8698_v26  ;;  %v6091_v31 = vpop.f32.mrb[128].mxu0  ;;  %v2731_v26 = vmul.f32 %v8807_v4, %v8807_v4  ;;  %v2761_v63 = vadd.f32 %v2760_v45, %v2730_v62  ;;  %v2691_v3 = vadd.f32 %v8807_v4, %v2690_v27  ;;  %6724 = vmatpush3.bf16.msra.mxu1 %v7380_v23  ;;  %v7389_v45 = vld [vmem:[#allocation7 + $0x130] sm:$0xff]   ;;  %v7390_v23 = vld [vmem:[#allocation7 + $0x178] sm:$0xff]  }
 0x261   : > { %v6092_v21 = vpop.f32.mrb[129].mxu0  ;;  %6725 = vmatprep.subr.bf16.mxu1 %v7381_v5 }
 0x262   : > { %v6093_v41 = vadd.f32 %v6092_v21, %v6091_v31  ;;  %v6094_v34 = vpop.f32.mrb[130].mxu0  ;;  %6172 = vmatpush3.bf16.msra.mxu0 %v7386_v18  ;;  %v2732_v31 = vmul.f32 %v8812_v2, %v8812_v2 }
 0x263   : > { %v6095_v25 = vpop.f32.mrb[131].mxu0  ;;  %6173 = vmatprep.subr.bf16.mxu0 %v7387_v32 }
 0x264   : > { %v6929_v49 = vadd.f32 %v6093_v41, %v8620_v60  ;;  %v6096_v20 = vadd.f32 %v6095_v25, %v6094_v34  ;;  %v2762_v60 = vadd.f32 %v2761_v63, %v2731_v26  ;;  %6726 = vmatpush3.bf16.msra.mxu1 %v7381_v5 }
 0x265   : > { %6727 = vmatprep.subr.bf16.mxu1 %v7385_v22 }
 0x266   : > { %v8822_v10 = vadd.f32 %v6929_v49, %v8709_v16  ;;  %v6937_v13 = vadd.f32 %v6096_v20, %v8627_v40  ;;  %v2692_v16 = vadd.f32 %v8812_v2, %v2691_v3  ;;  %6174 = vmatpush3.bf16.msra.mxu0 %v7388_v51  ;;  %v2763_v27 = vadd.f32 %v2762_v60, %v2732_v31  ;;  %v7392_v20 = vld [vmem:[#allocation7 + $0x138] sm:$0xff]  }
 0x267   : > { %6175 = vmatprep.subr.bf16.mxu0 %v7389_v45  ;;  %v7393_v3 = vld [vmem:[#allocation7 + $0xf8] sm:$0xff]  }
 0x268   : > { %v8828_v7 = vadd.f32 %v6937_v13, %v8716_v9  ;;  %v6097_v21 = vpop.f32.mrb[132].mxu0  ;;  %v2733_v40 = vmul.f32 %v8822_v10, %v8822_v10  ;;  %v2693_v9 = vadd.f32 %v8822_v10, %v2692_v16  ;;  %6728 = vmatpush3.bf16.msra.mxu1 %v7385_v22 }
 0x269   : > { %v6098_v62 = vpop.f32.mrb[133].mxu0  ;;  %6729 = vmatprep.subr.bf16.mxu1 %v7390_v23 }
 0x26a   : > { %v6099_v41 = vadd.f32 %v6098_v62, %v6097_v21  ;;  %v6100_v34 = vpop.f32.mrb[134].mxu0  ;;  %v2764_v18 = vadd.f32 %v2763_v27, %v2733_v40  ;;  %v2734_v32 = vmul.f32 %v8828_v7, %v8828_v7  ;;  %6176 = vmatpush3.bf16.msra.mxu0 %v7391_v15  ;;  %v2694_v13 = vadd.f32 %v8828_v7, %v2693_v9 }
 0x26b   : > { %v6101_v25 = vpop.f32.mrb[135].mxu0  ;;  %6177 = vmatprep.subr.bf16.mxu0 %v7392_v20 }
 0x26c   : > { %v6925_v26 = vadd.f32 %v6099_v41, %v8616_v11  ;;  %v6102_v49 = vadd.f32 %v6101_v25, %v6100_v34  ;;  %v2765_v21 = vadd.f32 %v2764_v18, %v2734_v32  ;;  %6730 = vmatpush3.bf16.msra.mxu1 %v7390_v23 }
 0x26e   : > { %v8838_v63 = vadd.f32 %v6925_v26, %v8707_v47  ;;  %v6933_v5 = vadd.f32 %v6102_v49, %v8624_v43  ;;  %6178 = vmatpush3.bf16.msra.mxu0 %v7393_v3 }
 0x270   : > { %v2735_v11 = vmul.f32 %v8838_v63, %v8838_v63  ;;  %v8845_v51 = vadd.f32 %v6933_v5, %v8712_v39  ;;  %v6103_v60 = vpop.f32.mrb[136].mxu0  ;;  %v2695_v47 = vadd.f32 %v8838_v63, %v2694_v13  ;;  %v8851_v39 = vld [vmem:[#allocation7 + $0x80] sm:$0xff]  }
 0x271   : > { %v6104_v31 = vpop.f32.mrb[137].mxu0  ;;  %6763 = vmatprep.subr.bf16.mxu1 %v8851_v39 }
 0x272   : > { %v6105_v45 = vadd.f32 %v6104_v31, %v6103_v60  ;;  %v6106_v43 = vpop.f32.mrb[138].mxu0  ;;  %v2766_v62 = vadd.f32 %v2765_v21, %v2735_v11  ;;  %v2736_v16 = vmul.f32 %v8845_v51, %v8845_v51  ;;  %v2696_v34 = vadd.f32 %v8845_v51, %v2695_v47 }
 0x273   : > { %v6107_v22 = vpop.f32.mrb[139].mxu0 }
 0x274   : > { %v6945_v40 = vadd.f32 %v6105_v45, %v8636_v14  ;;  %v6108_v41 = vadd.f32 %v6107_v22, %v6106_v43  ;;  %v2767_v23 = vadd.f32 %v2766_v62, %v2736_v16 }
 0x276   : > { %v8855_v25 = vadd.f32 %v6945_v40, %v8734_v50  ;;  %v6953_v15 = vadd.f32 %v6108_v41, %v8643_v33 }
 0x278   : > { %v2697_v27 = vadd.f32 %v8855_v25, %v2696_v34  ;;  %v2737_v9 = vmul.f32 %v8855_v25, %v8855_v25  ;;  %v8863_v14 = vadd.f32 %v6953_v15, %v8741_v55  ;;  %v6109_v26 = vpop.f32.mrb[140].mxu0 }
 0x279   : > { %v6110_v49 = vpop.f32.mrb[141].mxu0 }
 0x27a   : > { %v2768_v20 = vadd.f32 %v2767_v23, %v2737_v9  ;;  %v2698_v18 = vadd.f32 %v8863_v14, %v2697_v27  ;;  %v2738_v50 = vmul.f32 %v8863_v14, %v8863_v14  ;;  %v6111_v33 = vadd.f32 %v6110_v49, %v6109_v26  ;;  %v6112_v32 = vpop.f32.mrb[142].mxu0 }
 0x27b   : > { %v6113_v5 = vpop.f32.mrb[143].mxu0 }
 0x27c   : > { %v2769_v3 = vadd.f32 %v2768_v20, %v2738_v50  ;;  %v6941_v13 = vadd.f32 %v6111_v33, %v8632_v53  ;;  %v6114_v11 = vadd.f32 %v6113_v5, %v6112_v32 }
 0x27e   : > { %v8870_v60 = vadd.f32 %v6941_v13, %v8730_v38  ;;  %v6949_v55 = vadd.f32 %v6114_v11, %v8640_v36 }
 0x280   : > { %v2699_v31 = vadd.f32 %v8870_v60, %v2698_v18  ;;  %v2739_v21 = vmul.f32 %v8870_v60, %v8870_v60  ;;  %v8877_v47 = vadd.f32 %v6949_v55, %v8737_v24  ;;  %v6115_v45 = vpop.f32.mrb[144].mxu0 }
 0x281   : > { %v6116_v43 = vpop.f32.mrb[145].mxu0 }
 0x282   : > { %v2770_v22 = vadd.f32 %v2769_v3, %v2739_v21  ;;  %v2700_v62 = vadd.f32 %v8877_v47, %v2699_v31  ;;  %v2740_v53 = vmul.f32 %v8877_v47, %v8877_v47  ;;  %v6117_v38 = vadd.f32 %v6116_v43, %v6115_v45  ;;  %v6118_v16 = vpop.f32.mrb[146].mxu0 }
 0x283   : > { %v6119_v40 = vpop.f32.mrb[147].mxu0 }
 0x284   : > { %v2771_v36 = vadd.f32 %v2770_v22, %v2740_v53  ;;  %v6961_v41 = vadd.f32 %v6117_v38, %v8652_v61  ;;  %v6120_v34 = vadd.f32 %v6119_v40, %v6118_v16 }
 0x286   : > { %v8884_v15 = vadd.f32 %v6961_v41, %v8756_v52  ;;  %v6969_v24 = vadd.f32 %v6120_v34, %v8659_v54 }
 0x288   : > { %v2701_v23 = vadd.f32 %v8884_v15, %v2700_v62  ;;  %v2741_v27 = vmul.f32 %v8884_v15, %v8884_v15  ;;  %v8891_v9 = vadd.f32 %v6969_v24, %v8762_v57  ;;  %v6121_v26 = vpop.f32.mrb[148].mxu0 }
 0x289   : > { %v6122_v49 = vpop.f32.mrb[149].mxu0 }
 0x28a   : > { %v2772_v20 = vadd.f32 %v2771_v36, %v2741_v27  ;;  %v2702_v18 = vadd.f32 %v8891_v9, %v2701_v23  ;;  %v2742_v61 = vmul.f32 %v8891_v9, %v8891_v9  ;;  %v6123_v52 = vadd.f32 %v6122_v49, %v6121_v26  ;;  %v6124_v50 = vpop.f32.mrb[150].mxu0 }
 0x28b   : > { %v6125_v33 = vpop.f32.mrb[151].mxu0 }
 0x28c   : > { %v2773_v54 = vadd.f32 %v2772_v20, %v2742_v61  ;;  %v6957_v32 = vadd.f32 %v6123_v52, %v8648_v19  ;;  %v6126_v5 = vadd.f32 %v6125_v33, %v6124_v50 }
 0x28e   : > { %v8898_v3 = vadd.f32 %v6957_v32, %v8752_v48  ;;  %v6965_v57 = vadd.f32 %v6126_v5, %v8656_v28 }
 0x290   : > { %v2703_v13 = vadd.f32 %v8898_v3, %v2702_v18  ;;  %v2743_v11 = vmul.f32 %v8898_v3, %v8898_v3  ;;  %v8905_v55 = vadd.f32 %v6965_v57, %v8760_v30  ;;  %v6127_v31 = vpop.f32.mrb[152].mxu0 }
 0x291   : > { %v6128_v21 = vpop.f32.mrb[153].mxu0 }
 0x292   : > { %v2774_v45 = vadd.f32 %v2773_v54, %v2743_v11  ;;  %v2704_v43 = vadd.f32 %v8905_v55, %v2703_v13  ;;  %v2744_v19 = vmul.f32 %v8905_v55, %v8905_v55  ;;  %v6129_v48 = vadd.f32 %v6128_v21, %v6127_v31  ;;  %v6130_v22 = vpop.f32.mrb[154].mxu0 }
 0x293   : > { %v6131_v62 = vpop.f32.mrb[155].mxu0 }
 0x294   : > { %v2775_v28 = vadd.f32 %v2774_v45, %v2744_v19  ;;  %v6977_v53 = vadd.f32 %v6129_v48, %v8668_v59  ;;  %v6132_v38 = vadd.f32 %v6131_v62, %v6130_v22  ;;  %v7402_v22 = vld [vmem:[#allocation7 + $0x40] sm:$0xff]  }
 0x295   : > { %6299 = vmatprep.subr.bf16.mxu0 %v7402_v22 }
 0x296   : > { %v8912_v16 = vadd.f32 %v6977_v53, %v8779_v12  ;;  %v6985_v30 = vadd.f32 %v6132_v38, %v8675_v6 }
 0x298   : > { %v2705_v40 = vadd.f32 %v8912_v16, %v2704_v43  ;;  %v2745_v36 = vmul.f32 %v8912_v16, %v8912_v16  ;;  %v8919_v41 = vadd.f32 %v6985_v30, %v8785_v46  ;;  %v6133_v34 = vpop.f32.mrb[156].mxu0 }
 0x299   : > { %v6134_v24 = vpop.f32.mrb[157].mxu0 }
 0x29a   : > { %v2776_v23 = vadd.f32 %v2775_v28, %v2745_v36  ;;  %v2706_v27 = vadd.f32 %v8919_v41, %v2705_v40  ;;  %v2746_v59 = vmul.f32 %v8919_v41, %v8919_v41  ;;  %v6135_v12 = vadd.f32 %v6134_v24, %v6133_v34  ;;  %v6136_v26 = vpop.f32.mrb[158].mxu0 }
 0x29b   : > { %v6137_v49 = vpop.f32.mrb[159].mxu0 }
 0x29c   : > { %v2777_v6 = vadd.f32 %v2776_v23, %v2746_v59  ;;  %v6973_v20 = vadd.f32 %v6135_v12, %v8664_v58  ;;  %v6138_v18 = vadd.f32 %v6137_v49, %v6136_v26 }
 0x29e   : > { %v8926_v61 = vadd.f32 %v6973_v20, %v8777_v44  ;;  %v6981_v46 = vadd.f32 %v6138_v18, %v8672_v56  ;;  %v10538_v18 = vld [vmem:[#allocation19_spill] sm:$0xff] }
 0x2a0   : > { %v2707_v52 = vadd.f32 %v8926_v61, %v2706_v27  ;;  %v2747_v50 = vmul.f32 %v8926_v61, %v8926_v61  ;;  %v6982_v33 = vadd.f32 %v6981_v46, %v8783_v17  ;;  %v10539_v46 = vld [vmem:[#allocation22_spill] sm:$0xff] }
 0x2a2   : > { %v2778_v54 = vadd.f32 %v2777_v6, %v2747_v50  ;;  %v2708_v32 = vadd.f32 %v6982_v33, %v2707_v52  ;;  %v2748_v5 = vmul.f32 %v6982_v33, %v6982_v33  ;;  %v10540_v50 = vld [vmem:[#allocation15_spill] sm:$0xff] }
 0x2a4   : > { %v2709_v57 = vrot.slane %v2708_v32, 4  ;;  %v2779_v13 = vadd.f32 %v2778_v54, %v2748_v5 }
 0x2a6   : > { %v2710_v11 = vadd.f32 %v2709_v57, %v2708_v32  ;;  %v2780_v58 = vrot.slane %v2779_v13, 4 }
 0x2a8   : > { %v2711_v31 = vrot.slane %v2710_v11, 2  ;;  %v2781_v21 = vadd.f32 %v2780_v58, %v2779_v13 }
 0x2aa   : > { %v2712_v44 = vadd.f32 %v2711_v31, %v2710_v11  ;;  %v2782_v45 = vrot.slane %v2781_v21, 2 }
 0x2ac   : > { %v2713_v43 = vrot.slane %v2712_v44, 1  ;;  %v2783_v56 = vadd.f32 %v2782_v45, %v2781_v21 }
 0x2ae   : > { %v2714_v19 = vadd.f32 %v2713_v43, %v2712_v44  ;;  %v2784_v48 = vrot.slane %v2783_v56, 1 }
 0x2b0   : > { %v8933_v62 = vmul.f32 0.00390625, %v2714_v19  ;;  %v2785_v28 = vadd.f32 %v2784_v48, %v2783_v56 }
 0x2b2   : > { %v2786_v17 = vmul.f32 0.00390625, %v2785_v28  ;;  %v2787_v53 = vmul.f32 %v8933_v62, %v8933_v62  ;;  %v2822_v38 = vsub.f32 %v6982_v33, %v8933_v62  ;;  %v2811_v36 = vsub.f32 %v8855_v25, %v8933_v62 }
 0x2b3   : > { %v2812_v34 = vsub.f32 %v8863_v14, %v8933_v62  ;;  %v2813_v24 = vsub.f32 %v8870_v60, %v8933_v62  ;;  %v2814_v23 = vsub.f32 %v8877_v47, %v8933_v62  ;;  %v2815_v27 = vsub.f32 %v8884_v15, %v8933_v62 }
 0x2b4   : > { %v2788_v30 = vsub.f32 %v2786_v17, %v2787_v53  ;;  %v2816_v59 = vsub.f32 %v8891_v9, %v8933_v62  ;;  %v2817_v12 = vsub.f32 %v8898_v3, %v8933_v62  ;;  %v2818_v25 = vsub.f32 %v8905_v55, %v8933_v62  ;;  %v10534_v9 = vld [vmem:[#allocation14_spill] sm:$0xff]  ;;  %v10535_v3 = vld [vmem:[#allocation13_spill] sm:$0xff] }
 0x2b5   : > { %v2819_v14 = vsub.f32 %v8912_v16, %v8933_v62  ;;  %v2820_v60 = vsub.f32 %v8919_v41, %v8933_v62  ;;  %v2821_v47 = vsub.f32 %v8926_v61, %v8933_v62  ;;  %v2791_v15 = vsub.f32 %v8678_v1, %v8933_v62  ;;  %v10536_v16 = vld [vmem:[#allocation21_spill] sm:$0xff] }
 0x2b6   : > { %v2789_v40 = vadd.f32 1e-05, %v2788_v30  ;;  %v2792_v26 = vsub.f32 %v10534_v9, %v8933_v62  ;;  %v2793_v49 = vsub.f32 %v10535_v3, %v8933_v62  ;;  %v2794_v55 = vsub.f32 %v8691_v37, %v8933_v62  ;;  %v10537_v41 = vld [vmem:[#allocation17_spill] sm:$0xff] }
 0x2b7   : > { %v2795_v6 = vsub.f32 %v10536_v16, %v8933_v62  ;;  %v2796_v20 = vsub.f32 %v10537_v41, %v8933_v62  ;;  %v2797_v61 = vsub.f32 %v10538_v18, %v8933_v62  ;;  %v2798_v1 = vsub.f32 %v8727_v8, %v8933_v62 }
 0x2b8   : > { %7442 = vrsqrt.f32 %v2789_v40  ;;  %v2799_v52 = vsub.f32 %v10539_v46, %v8933_v62  ;;  %v2800_v33 = vsub.f32 %v10540_v50, %v8933_v62  ;;  %v2801_v37 = vsub.f32 %v8766_v35, %v8933_v62 }
 0x2b9   : > { %v2802_v54 = vsub.f32 %v8772_v42, %v8933_v62  ;;  %v2803_v32 = vsub.f32 %v8790_v29, %v8933_v62  ;;  %v2804_v5 = vsub.f32 %v8797_v0, %v8933_v62  ;;  %v2805_v8 = vsub.f32 %v8807_v4, %v8933_v62  ;;  %v9001_v4 = vld [vmem:[%s10443_s2] ss:$0 sm:$0xff] }
 0x2ba   : > { %v2806_v13 = vsub.f32 %v8812_v2, %v8933_v62  ;;  %v2807_v11 = vsub.f32 %v8822_v10, %v8933_v62  ;;  %v2808_v35 = vsub.f32 %v8828_v7, %v8933_v62  ;;  %v2809_v42 = vsub.f32 %v8838_v63, %v8933_v62 }
 0x2bb   : > { %v2810_v10 = vsub.f32 %v8845_v51, %v8933_v62  ;;  %v9009_v51 = vld [vmem:[%s10444_s3] ss:$0 sm:$0xff] }
 0x2c2   : > { %v7443_v57 = vpop.eup %7442 }
 0x2c3   : > { %v2854_v29 = vmul.f32 %v7443_v57, %v2822_v38  ;;  %v2823_v58 = vmul.f32 %v7443_v57, %v2791_v15  ;;  %v2824_v31 = vmul.f32 %v7443_v57, %v2792_v26  ;;  %v2825_v0 = vmul.f32 %v7443_v57, %v2793_v49 }
 0x2c4   : > { %v2826_v21 = vmul.f32 %v7443_v57, %v2794_v55  ;;  %v2827_v2 = vmul.f32 %v7443_v57, %v2795_v6  ;;  %v2828_v44 = vmul.f32 %v7443_v57, %v2796_v20  ;;  %v2829_v45 = vmul.f32 %v7443_v57, %v2797_v61 }
 0x2c5   : > { %v2830_v7 = vmul.f32 %v7443_v57, %v2798_v1  ;;  %v2831_v43 = vmul.f32 %v7443_v57, %v2799_v52  ;;  %v2832_v56 = vmul.f32 %v7443_v57, %v2800_v33  ;;  %v2833_v63 = vmul.f32 %v7443_v57, %v2801_v37 }
 0x2c6   : > { %v2834_v19 = vmul.f32 %v7443_v57, %v2802_v54  ;;  %v2835_v48 = vmul.f32 %v7443_v57, %v2803_v32  ;;  %v2836_v22 = vmul.f32 %v7443_v57, %v2804_v5  ;;  %v2892_v28 = vmul.f32 %v9001_v4, %v2854_v29 }
 0x2c7   : > { %v2837_v17 = vmul.f32 %v7443_v57, %v2805_v8  ;;  %v2838_v53 = vmul.f32 %v7443_v57, %v2806_v13  ;;  %v2839_v38 = vmul.f32 %v7443_v57, %v2807_v11  ;;  %v2840_v30 = vmul.f32 %v7443_v57, %v2808_v35 }
 0x2c8   : > { %v2841_v40 = vmul.f32 %v7443_v57, %v2809_v42  ;;  %v2842_v15 = vmul.f32 %v7443_v57, %v2810_v10  ;;  %v2843_v9 = vmul.f32 %v7443_v57, %v2811_v36  ;;  %v2844_v62 = vmul.f32 %v7443_v57, %v2812_v34 }
 0x2c9   : > { %v2845_v26 = vmul.f32 %v7443_v57, %v2813_v24  ;;  %v2846_v3 = vmul.f32 %v7443_v57, %v2814_v23  ;;  %v2847_v49 = vmul.f32 %v7443_v57, %v2815_v27  ;;  %v2848_v55 = vmul.f32 %v7443_v57, %v2816_v59 }
 0x2ca   : > { %v2849_v16 = vmul.f32 %v7443_v57, %v2817_v12  ;;  %v2850_v6 = vmul.f32 %v7443_v57, %v2818_v25  ;;  %v2851_v41 = vmul.f32 %v7443_v57, %v2819_v14  ;;  %v2852_v20 = vmul.f32 %v7443_v57, %v2820_v60 }
 0x2cb   : > { %v2853_v18 = vmul.f32 %v7443_v57, %v2821_v47  ;;  %v9012_v61 = vadd.f32 %v9009_v51, %v2892_v28  ;;  %v2861_v36 = vmul.f32 %v9001_v4, %v2823_v58  ;;  %v2862_v1 = vmul.f32 %v9001_v4, %v2824_v31 }
 0x2cc   : > { %v2863_v46 = vmul.f32 %v9001_v4, %v2825_v0  ;;  %v2864_v34 = vmul.f32 %v9001_v4, %v2826_v21  ;;  %v2865_v24 = vmul.f32 %v9001_v4, %v2827_v2  ;;  %v2866_v23 = vmul.f32 %v9001_v4, %v2828_v44 }
 0x2cd   : > { %v2867_v27 = vmul.f32 %v9001_v4, %v2829_v45  ;;  %v2868_v59 = vmul.f32 %v9001_v4, %v2830_v7  ;;  %v2869_v12 = vmul.f32 %v9001_v4, %v2831_v43  ;;  %v2870_v25 = vmul.f32 %v9001_v4, %v2832_v56 }
 0x2ce   : > { %v2871_v14 = vmul.f32 %v9001_v4, %v2833_v63  ;;  %v2872_v60 = vmul.f32 %v9001_v4, %v2834_v19  ;;  %v2873_v47 = vmul.f32 %v9001_v4, %v2835_v48  ;;  %v2874_v52 = vmul.f32 %v9001_v4, %v2836_v22 }
 0x2cf   : > { %v2875_v50 = vmul.f32 %v9001_v4, %v2837_v17  ;;  %v2876_v33 = vmul.f32 %v9001_v4, %v2838_v53  ;;  %v2877_v37 = vmul.f32 %v9001_v4, %v2839_v38  ;;  %v2878_v54 = vmul.f32 %v9001_v4, %v2840_v30 }
 0x2d0   : > { %v2879_v32 = vmul.f32 %v9001_v4, %v2841_v40  ;;  %v2880_v5 = vmul.f32 %v9001_v4, %v2842_v15  ;;  %v2881_v8 = vmul.f32 %v9001_v4, %v2843_v9  ;;  %v2882_v57 = vmul.f32 %v9001_v4, %v2844_v62 }
 0x2d1   : > { %v2883_v13 = vmul.f32 %v9001_v4, %v2845_v26  ;;  %v2884_v11 = vmul.f32 %v9001_v4, %v2846_v3  ;;  %v2885_v35 = vmul.f32 %v9001_v4, %v2847_v49  ;;  %v2886_v42 = vmul.f32 %v9001_v4, %v2848_v55 }
 0x2d2   : > { %v2887_v29 = vmul.f32 %v9001_v4, %v2849_v16  ;;  %v2888_v58 = vmul.f32 %v9001_v4, %v2850_v6  ;;  %v2889_v31 = vmul.f32 %v9001_v4, %v2851_v41  ;;  %v2890_v0 = vmul.f32 %v9001_v4, %v2852_v20 }
 0x2d3   : > { %v9045_v21 = vmul.f32 %v9001_v4, %v2853_v18  ;;  %v2899_v2 = vadd.f32 %v9009_v51, %v2861_v36  ;;  %v2900_v44 = vadd.f32 %v9009_v51, %v2862_v1  ;;  %v2901_v45 = vadd.f32 %v9009_v51, %v2863_v46 }
 0x2d4   : > { %v2902_v10 = vadd.f32 %v9009_v51, %v2864_v34  ;;  %v2903_v7 = vadd.f32 %v9009_v51, %v2865_v24  ;;  %v2904_v43 = vadd.f32 %v9009_v51, %v2866_v23  ;;  %v2905_v56 = vadd.f32 %v9009_v51, %v2867_v27 }
 0x2d5   : > { %v2906_v63 = vadd.f32 %v9009_v51, %v2868_v59  ;;  %v2907_v19 = vadd.f32 %v9009_v51, %v2869_v12  ;;  %v2908_v4 = vadd.f32 %v9009_v51, %v2870_v25  ;;  %v2909_v48 = vadd.f32 %v9009_v51, %v2871_v14 }
 0x2d6   : > { %v2910_v22 = vadd.f32 %v9009_v51, %v2872_v60  ;;  %v2911_v28 = vadd.f32 %v9009_v51, %v2873_v47  ;;  %v2912_v17 = vadd.f32 %v9009_v51, %v2874_v52  ;;  %v9062_v53 = vadd.f32 %v9009_v51, %v2875_v50 }
 0x2d7   : > { %v9065_v38 = vadd.f32 %v9009_v51, %v2876_v33  ;;  %v9068_v30 = vadd.f32 %v9009_v51, %v2877_v37  ;;  %v9071_v40 = vadd.f32 %v9009_v51, %v2878_v54  ;;  %v9074_v15 = vadd.f32 %v9009_v51, %v2879_v32 }
 0x2d8   : > { %v9077_v9 = vadd.f32 %v9009_v51, %v2880_v5  ;;  %v9080_v62 = vadd.f32 %v9009_v51, %v2881_v8  ;;  %v9083_v26 = vadd.f32 %v9009_v51, %v2882_v57  ;;  %v9086_v3 = vadd.f32 %v9009_v51, %v2883_v13  ;;  %v7403_v57 = vld [vmem:[#allocation7] sm:$0xff]  }
 0x2d9   : > { %v9089_v49 = vadd.f32 %v9009_v51, %v2884_v11  ;;  %v9092_v55 = vadd.f32 %v9009_v51, %v2885_v35  ;;  %v9095_v16 = vadd.f32 %v9009_v51, %v2886_v42  ;;  %v9098_v6 = vadd.f32 %v9009_v51, %v2887_v29 }
 0x2da   : > { %v9101_v41 = vadd.f32 %v9009_v51, %v2888_v58  ;;  %v2927_v20 = vadd.f32 %v9009_v51, %v2889_v31  ;;  %v2928_v18 = vadd.f32 %v9009_v51, %v2890_v0  ;;  %v2931_v36 = vmax.f32 %v2899_v2, 0.0 }
 0x2db   : > { %v2932_v1 = vmax.f32 %v2900_v44, 0.0  ;;  %v2933_v46 = vmax.f32 %v2901_v45, 0.0  ;;  %v2934_v34 = vmax.f32 %v2902_v10, 0.0  ;;  %v2935_v24 = vmax.f32 %v2903_v7, 0.0 }
 0x2dc   : > { %v2936_v23 = vmax.f32 %v2904_v43, 0.0  ;;  %v2937_v27 = vmax.f32 %v2905_v56, 0.0  ;;  %v2938_v59 = vmax.f32 %v2906_v63, 0.0  ;;  %v2939_v12 = vmax.f32 %v2907_v19, 0.0 }
 0x2dd   : > { %v2940_v25 = vmax.f32 %v2908_v4, 0.0  ;;  %v2941_v14 = vmax.f32 %v2909_v48, 0.0  ;;  %v2942_v60 = vmax.f32 %v2910_v22, 0.0  ;;  %v2943_v47 = vmax.f32 %v2911_v28, 0.0 }
 0x2de   : > { %v2944_v52 = vmax.f32 %v2912_v17, 0.0  ;;  %v2945_v50 = vmax.f32 %v9062_v53, 0.0  ;;  %v2946_v33 = vmax.f32 %v9065_v38, 0.0  ;;  %v2947_v37 = vmax.f32 %v9068_v30, 0.0 }
 0x2df   : > { %v2948_v54 = vmax.f32 %v9071_v40, 0.0  ;;  %v2949_v32 = vmax.f32 %v9074_v15, 0.0  ;;  %v2950_v5 = vmax.f32 %v9077_v9, 0.0  ;;  %v2951_v8 = vmax.f32 %v9080_v62, 0.0 }
 0x2e0   : > { %v2959_v29 = vmax.f32 %v2927_v20, 0.0  ;;  %v2960_v58 = vmax.f32 %v2928_v18, 0.0  ;;  %v2963_v31 = vpack.c.bf16 %v2932_v1, %v2931_v36  ;;  %v2964_v0 = vpack.c.bf16 %v2934_v34, %v2933_v46 }
 0x2e1   : > { %v2965_v2 = vpack.c.bf16 %v2936_v23, %v2935_v24  ;;  %v2966_v44 = vpack.c.bf16 %v2938_v59, %v2937_v27  ;;  %v9119_v10 = vpack.c.bf16 %v2940_v25, %v2939_v12  ;;  %v9121_v7 = vpack.c.bf16 %v2942_v60, %v2941_v14 }
 0x2e2   : > { %v9117_v45 = vpack.c.bf16 %v2960_v58, %v2959_v29  ;;  %v9123_v43 = vpack.c.bf16 %v2944_v52, %v2943_v47  ;;  %v2980_v56 = vshrl.u32 %v2963_v31, 16  ;;  %v3044_v63 = vshll.u32 %v2963_v31, 16 }
 0x2e3   : > { %v2983_v19 = vshrl.u32 %v2964_v0, 16  ;;  %v3048_v4 = vshll.u32 %v2964_v0, 16  ;;  %v2986_v48 = vshrl.u32 %v2965_v2, 16  ;;  %v3052_v22 = vshll.u32 %v2965_v2, 16 }
 0x2e4   : > { %v2989_v28 = vshrl.u32 %v2966_v44, 16  ;;  %v3056_v17 = vshll.u32 %v2966_v44, 16  ;;  %v3043_v20 = vrot.slane %v2980_v56, 7  ;;  %v3139_v18 = vrot.slane %v3044_v63, 7 }
 0x2e5   : > { %v3047_v36 = vrot.slane %v2983_v19, 7  ;;  %v3140_v1 = vrot.slane %v3048_v4, 7  ;;  %v3051_v46 = vrot.slane %v2986_v48, 7  ;;  %v3141_v34 = vrot.slane %v3052_v22, 7 }
 0x2e6   : > { %v3055_v24 = vrot.slane %v2989_v28, 7  ;;  %v3142_v23 = vrot.slane %v3056_v17, 7  ;;  %v3046_v27 = vor.u32 %v3044_v63, %v3043_v20  ;;  %v9127_v12 = vsel %vm7889_vm2, %v3043_v20, %v3139_v18 }
 0x2e7   : > { %v3050_v25 = vor.u32 %v3048_v4, %v3047_v36  ;;  %v9131_v14 = vsel %vm7889_vm2, %v3047_v36, %v3140_v1  ;;  %v3271_v60 = vshll.u32 %v9127_v12, 16  ;;  %v3054_v52 = vor.u32 %v3052_v22, %v3051_v46 }
 0x2e8   : > { %v3259_v47 = vshll.u32 %v9131_v14, 16  ;;  %v9137_v29 = vsel %vm7889_vm2, %v3051_v46, %v3141_v34  ;;  %v9141_v58 = vsel %vm7889_vm2, %v2980_v56, %v3046_v27  ;;  %v3058_v2 = vor.u32 %v3056_v17, %v3055_v24 }
 0x2e9   : > { %v9145_v31 = vsel %vm7889_vm2, %v2983_v19, %v3050_v25  ;;  %v3283_v0 = vshll.u32 %v9137_v29, 16  ;;  %v3264_v44 = vshrl.u32 %v9141_v58, 16  ;;  %v3266_v63 = vshll.u32 %v9141_v58, 16 }
 0x2ea   : > { %v3273_v4 = vrot.slane %v3271_v60, 1  ;;  %v3252_v22 = vshrl.u32 %v9145_v31, 16  ;;  %v3254_v20 = vshll.u32 %v9145_v31, 16  ;;  %v3261_v18 = vrot.slane %v3259_v47, 1 }
 0x2eb   : > { %v9154_v56 = vsel %vm7889_vm2, %v2986_v48, %v3054_v52  ;;  %v3285_v36 = vrot.slane %v3283_v0, 1  ;;  %v3268_v19 = vrot.slane %v3266_v63, 1  ;;  %v9160_v46 = vsel %vm7889_vm2, %v2989_v28, %v3058_v2 }
 0x2ec   : > { %v3276_v1 = vshrl.u32 %v9154_v56, 16  ;;  %v3278_v17 = vshll.u32 %v9154_v56, 16  ;;  %v3256_v34 = vrot.slane %v3254_v20, 1  ;;  %v9164_v27 = vsel %vm7889_vm2, %v3055_v24, %v3142_v23 }
 0x2ed   : > { %v3288_v25 = vshrl.u32 %v9160_v46, 16  ;;  %v3290_v48 = vshll.u32 %v9160_v46, 16  ;;  %v3269_v60 = vor.u32 %v3268_v19, %v3264_v44  ;;  %v3295_v52 = vshll.u32 %v9164_v27, 16 }
 0x2ee   : > { %v3280_v47 = vrot.slane %v3278_v17, 1  ;;  %v2992_v0 = vshrl.u32 %v9119_v10, 16  ;;  %v3257_v63 = vor.u32 %v3256_v34, %v3252_v22  ;;  %v3060_v28 = vshll.u32 %v9119_v10, 16  ;;  %v7395_v17 = vld [vmem:[#allocation7 + $0x88] sm:$0xff]  }
 0x2ef   : > { %v3292_v42 = vrot.slane %v3290_v48, 1  ;;  %v2995_v2 = vshrl.u32 %v9121_v7, 16  ;;  %v3274_v20 = vsel %vm842_vm3, %v3269_v60, %v3273_v4  ;;  %v3297_v23 = vrot.slane %v3295_v52, 1  ;;  %v7408_v34 = vld [vmem:[#allocation7 + $0x48] sm:$0xff]  }
 0x2f0   : > { %v3281_v24 = vor.u32 %v3280_v47, %v3276_v1  ;;  %v3059_v35 = vrot.slane %v2992_v0, 7  ;;  %3684 = vmatprep.mubr.bf16.mxu0 %v3274_v20  ;;  %v9174_v11 = vsel %vm842_vm3, %v3257_v63, %v3261_v18  ;;  %v3143_v19 = vrot.slane %v3060_v28, 7 }
 0x2f1   : > { %v3293_v44 = vor.u32 %v3292_v42, %v3288_v25  ;;  %v3063_v13 = vrot.slane %v2995_v2, 7  ;;  %6731 = vmatprep.mubr.bf16.mxu1 %v9174_v11  ;;  %3685 = vmatmul.mubr.bf16.vlgmr.msra.gmra.mrb[160].mxu0 %v9174_v11  ;;  %v3064_v22 = vshll.u32 %v9121_v7, 16  ;;  %v2998_v1 = vshrl.u32 %v9123_v43, 16 }
 0x2f2   : > { %v9179_v10 = vsel %vm842_vm3, %v3281_v24, %v3285_v36  ;;  %v3062_v4 = vor.u32 %v3060_v28, %v3059_v35  ;;  %3692 = vmatprep.mubr.bf16.mxu0 %v9174_v11  ;;  %v9190_v18 = vsel %vm7889_vm2, %v3059_v35, %v3143_v19  ;;  %v3068_v36 = vshll.u32 %v9123_v43, 16  ;;  %6300 = vmatpush3.bf16.msra.mxu0 %v7403_v57  ;;  %v7414_v28 = vld [vmem:[#allocation7 + $0x50] sm:$0xff]  }
 0x2f3   : > { %6732 = vmatmul.mubr.bf16.vlgmr.msra.gmra.mrb[96].mxu1 %v9179_v10  ;;  %v9186_v42 = vsel %vm842_vm3, %v3293_v44, %v3297_v23  ;;  %v2970_v7 = vpack.c.bf16 %v2946_v33, %v2945_v50  ;;  %v3307_v48 = vshll.u32 %v9190_v18, 16  ;;  %v3066_v60 = vor.u32 %v3064_v22, %v3063_v13  ;;  %v7396_v50 = vld [vmem:[#allocation7 + $0x90] sm:$0xff]   ;;  %v7409_v33 = vld [vmem:[#allocation7 + $0x8] sm:$0xff]   ;;  %6301 = vmatprep.subr.bf16.mxu0 %v7408_v34 }
 0x2f4   : > { %6735 = vmatprep.mubr.bf16.mxu1 %v9186_v42  ;;  %6764 = vmatpush3.bf16.msra.mxu1 %v8851_v39  ;;  %v9201_v25 = vsel %vm7889_vm2, %v2992_v0, %v3062_v4  ;;  %v3144_v35 = vrot.slane %v3064_v22, 7  ;;  %v2957_v47 = vmax.f32 %v9098_v6, 0.0  ;;  %v3067_v53 = vrot.slane %v2998_v1, 7 }
 0x2f5   : > { %v3302_v43 = vshll.u32 %v9201_v25, 16  ;;  %6765 = vmatprep.subr.bf16.mxu1 %v7395_v17  ;;  %v3145_v38 = vrot.slane %v3068_v36, 7  ;;  %v3300_v39 = vshrl.u32 %v9201_v25, 16  ;;  %v9209_v52 = vsel %vm7889_vm2, %v2995_v2, %v3066_v60 }
 0x2f6   : > { %v9213_v0 = vsel %vm7889_vm2, %v3063_v13, %v3144_v35  ;;  %v3001_v63 = vshrl.u32 %v2970_v7, 16  ;;  %v3309_v23 = vrot.slane %v3307_v48, 1  ;;  %v3314_v44 = vshll.u32 %v9209_v52, 16  ;;  %6302 = vmatpush3.bf16.msra.mxu0 %v7409_v33  ;;  %v7415_v48 = vld [vmem:[#allocation7 + $0x10] sm:$0xff]  }
 0x2f7   : > { %v3304_v24 = vrot.slane %v3302_v43, 1  ;;  %v3319_v57 = vshll.u32 %v9213_v0, 16  ;;  %v3070_v19 = vor.u32 %v3068_v36, %v3067_v53  ;;  %v9219_v4 = vsel %vm7889_vm2, %v3067_v53, %v3145_v38  ;;  %v7397_v53 = vld [vmem:[#allocation7 + $0x98] sm:$0xff]   ;;  %6303 = vmatprep.subr.bf16.mxu0 %v7414_v28 }
 0x2f8   : > { %6766 = vmatpush3.bf16.msra.mxu1 %v7395_v17  ;;  %v3071_v2 = vrot.slane %v3001_v63, 7  ;;  %v3072_v22 = vshll.u32 %v2970_v7, 16  ;;  %v3312_v13 = vshrl.u32 %v9209_v52, 16  ;;  %v3316_v35 = vrot.slane %v3314_v44, 1 }
 0x2f9   : > { %v3305_v60 = vor.u32 %v3304_v24, %v3300_v39  ;;  %v3321_v34 = vrot.slane %v3319_v57, 1  ;;  %6767 = vmatprep.subr.bf16.mxu1 %v7396_v50  ;;  %3693 = vmatmul.mubr.bf16.gmra.mrb[164].mxu0 %v3274_v20  ;;  %v9224_v43 = vsel %vm7889_vm2, %v2998_v1, %v3070_v19  ;;  %v2971_v7 = vpack.c.bf16 %v2948_v54, %v2947_v37  ;;  %v7420_v39 = vld [vmem:[#allocation7 + $0x58] sm:$0xff]  }
 0x2fa   : > { %v3074_v17 = vor.u32 %v3072_v22, %v3071_v2  ;;  %v3146_v36 = vrot.slane %v3072_v22, 7  ;;  %3700 = vmatprep.mubr.bf16.mxu0 %v9179_v10  ;;  %v3317_v33 = vor.u32 %v3316_v35, %v3312_v13  ;;  %v3326_v20 = vshll.u32 %v9224_v43, 16  ;;  %6304 = vmatpush3.bf16.msra.mxu0 %v7415_v48  ;;  %v7421_v57 = vld [vmem:[#allocation7 + $0x18] sm:$0xff]  }
 0x2fb   : > { %v9231_v38 = vsel %vm842_vm3, %v3305_v60, %v3309_v23  ;;  %v3331_v1 = vshll.u32 %v9219_v4, 16  ;;  %v3324_v30 = vshrl.u32 %v9224_v43, 16  ;;  %v3004_v54 = vshrl.u32 %v2971_v7, 16  ;;  %v7398_v60 = vld [vmem:[#allocation7 + $0xa0] sm:$0xff]   ;;  %6305 = vmatprep.subr.bf16.mxu0 %v7420_v39 }
 0x2fc   : > { %6736 = vmatmul.mubr.bf16.gmra.mrb[100].mxu1 %v9231_v38  ;;  %v9240_v40 = vsel %vm7889_vm2, %v3001_v63, %v3074_v17  ;;  %v9244_v37 = vsel %vm7889_vm2, %v3071_v2, %v3146_v36  ;;  %v9247_v28 = vsel %vm842_vm3, %v3317_v33, %v3321_v34  ;;  %v3328_v24 = vrot.slane %v3326_v20, 1 }
 0x2fd   : > { %v3336_v23 = vshrl.u32 %v9240_v40, 16  ;;  %v3338_v44 = vshll.u32 %v9240_v40, 16  ;;  %6768 = vmatpush3.bf16.msra.mxu1 %v7396_v50  ;;  %6739 = vmatprep.mubr.bf16.mxu1 %v9247_v28  ;;  %v3343_v63 = vshll.u32 %v9244_v37, 16  ;;  %v3075_v19 = vrot.slane %v3004_v54, 7 }
 0x2fe   : > { %v3076_v22 = vshll.u32 %v2971_v7, 16  ;;  %6769 = vmatprep.subr.bf16.mxu1 %v7397_v53  ;;  %v2972_v2 = vpack.c.bf16 %v2950_v5, %v2949_v32  ;;  %v3329_v13 = vor.u32 %v3328_v24, %v3324_v30  ;;  %v10542_v50 = vmax.f32 %v9083_v26, 0.0  ;;  %v7422_v7 = vld [vmem:[#allocation7 + $0x60] sm:$0xff]   ;;  %6306 = vmatpush3.bf16.msra.mxu0 %v7421_v57 }
 0x2ff   : > { %v3340_v35 = vrot.slane %v3338_v44, 1  ;;  %v10543_v48 = vmax.f32 %v9086_v3, 0.0  ;;  %v10544_v17 = vmax.f32 %v9089_v49, 0.0  ;;  %v3333_v15 = vrot.slane %v3331_v1, 1  ;;  %v7399_v1 = vld [vmem:[#allocation7 + $0xa8] sm:$0xff]   ;;  %6307 = vmatprep.subr.bf16.mxu0 %v7422_v7  ;;  %v7424_v24 = vld [vmem:[#allocation7 + $0x20] sm:$0xff]  }
 0x300   : > { %v2973_v34 = vpack.c.bf16 %v10542_v50, %v2951_v8  ;;  %v3078_v33 = vor.u32 %v3076_v22, %v3075_v19  ;;  %v3147_v9 = vrot.slane %v3076_v22, 7  ;;  %v3007_v32 = vshrl.u32 %v2972_v2, 16  ;;  %v7400_v7 = vld [vmem:[#allocation7 + $0xb0] sm:$0xff]  }
 0x301   : > { %v9265_v36 = vpack.c.bf16 %v10544_v17, %v10543_v48  ;;  %v3341_v5 = vor.u32 %v3340_v35, %v3336_v23  ;;  %v3345_v20 = vrot.slane %v3343_v63, 1  ;;  %v3080_v30 = vshll.u32 %v2972_v2, 16  ;;  %6770 = vmatpush3.bf16.msra.mxu1 %v7397_v53  ;;  %3701 = vmatmul.mubr.bf16.gmra.mrb[168].mxu0 %v9174_v11 }
 0x302   : > { %v3010_v62 = vshrl.u32 %v2973_v34, 16  ;;  %v9270_v26 = vsel %vm7889_vm2, %v3004_v54, %v3078_v33  ;;  %v9274_v3 = vsel %vm7889_vm2, %v3075_v19, %v3147_v9  ;;  %v3079_v49 = vrot.slane %v3007_v32, 7  ;;  %6771 = vmatprep.subr.bf16.mxu1 %v7398_v60  ;;  %3708 = vmatprep.mubr.bf16.mxu0 %v9186_v42  ;;  %v7426_v19 = vld [vmem:[#allocation7 + $0x68] sm:$0xff]  }
 0x303   : > { %v3084_v8 = vshll.u32 %v2973_v34, 16  ;;  %v9277_v39 = vsel %vm842_vm3, %v3329_v13, %v3333_v15  ;;  %v9281_v53 = vsel %vm842_vm3, %v3341_v5, %v3345_v20  ;;  %v3350_v11 = vshll.u32 %v9270_v26, 16  ;;  %6308 = vmatpush3.bf16.msra.mxu0 %v7424_v24  ;;  %v7427_v9 = vld [vmem:[#allocation7 + $0x28] sm:$0xff]  }
 0x304   : > { %v3355_v54 = vshll.u32 %v9274_v3, 16  ;;  %6740 = vmatmul.mubr.bf16.gmra.mrb[104].mxu1 %v9277_v39  ;;  %v3082_v23 = vor.u32 %v3080_v30, %v3079_v49  ;;  %v3148_v44 = vrot.slane %v3080_v30, 7  ;;  %v3083_v57 = vrot.slane %v3010_v62, 7  ;;  %6309 = vmatprep.subr.bf16.mxu0 %v7426_v19 }
 0x305   : > { %v3149_v63 = vrot.slane %v3084_v8, 7  ;;  %6743 = vmatprep.mubr.bf16.mxu1 %v9281_v53  ;;  %v3348_v22 = vshrl.u32 %v9270_v26, 16  ;;  %v3352_v2 = vrot.slane %v3350_v11, 1  ;;  %v3013_v13 = vshrl.u32 %v9265_v36, 16  ;;  %6772 = vmatpush3.bf16.msra.mxu1 %v7398_v60 }
 0x306   : > { %v3088_v35 = vshll.u32 %v9265_v36, 16  ;;  %v9292_v50 = vsel %vm7889_vm2, %v3007_v32, %v3082_v23  ;;  %v9296_v34 = vsel %vm7889_vm2, %v3079_v49, %v3148_v44  ;;  %v3086_v48 = vor.u32 %v3084_v8, %v3083_v57  ;;  %6773 = vmatprep.subr.bf16.mxu1 %v7399_v1  ;;  %v7428_v49 = vld [vmem:[#allocation7 + $0x70] sm:$0xff]  }
 0x307   : > { %v9300_v17 = vsel %vm7889_vm2, %v3083_v57, %v3149_v63  ;;  %v2958_v15 = vmax.f32 %v9101_v41, 0.0  ;;  %v3353_v33 = vor.u32 %v3352_v2, %v3348_v22  ;;  %v3362_v60 = vshll.u32 %v9292_v50, 16  ;;  %6310 = vmatpush3.bf16.msra.mxu0 %v7427_v9  ;;  %v7430_v22 = vld [vmem:[#allocation7 + $0x30] sm:$0xff]  }
 0x308   : > { %v3367_v36 = vshll.u32 %v9296_v34, 16  ;;  %v3357_v32 = vrot.slane %v3355_v54, 1  ;;  %v9307_v5 = vsel %vm7889_vm2, %v3010_v62, %v3086_v48  ;;  %v3087_v20 = vrot.slane %v3013_v13, 7  ;;  %6311 = vmatprep.subr.bf16.mxu0 %v7428_v49 }
 0x309   : > { %v3150_v30 = vrot.slane %v3088_v35, 7  ;;  %v9311_v8 = vadd.f32 %v9009_v51, %v9045_v21  ;;  %v3360_v41 = vshrl.u32 %v9292_v50, 16  ;;  %v3364_v11 = vrot.slane %v3362_v60, 1  ;;  %6774 = vmatpush3.bf16.msra.mxu1 %v7399_v1  ;;  %3709 = vmatmul.mubr.bf16.gmra.mrb[172].mxu0 %v9179_v10  ;;  %v7401_v51 = vld [vmem:[#allocation7 + $0xb8] sm:$0xff]  }
 0x30a   : > { %v3379_v23 = vshll.u32 %v9300_v17, 16  ;;  %v9317_v54 = vsel %vm842_vm3, %v3353_v33, %v3357_v32  ;;  %v3374_v62 = vshll.u32 %v9307_v5, 16  ;;  %v3090_v24 = vor.u32 %v3088_v35, %v3087_v20  ;;  %6775 = vmatprep.subr.bf16.mxu1 %v7400_v7  ;;  %3716 = vmatprep.mubr.bf16.mxu0 %v9231_v38  ;;  %v7404_v32 = vld [vmem:[#allocation7 + $0x1c0] sm:$0xff]  }
 0x30b   : > { %v9322_v44 = vsel %vm7889_vm2, %v3087_v20, %v3150_v30  ;;  %v3365_v21 = vor.u32 %v3364_v11, %v3360_v41  ;;  %v3369_v57 = vrot.slane %v3367_v36, 1  ;;  %v10545_v1 = vmax.f32 %v9092_v55, 0.0  ;;  %v7432_v55 = vld [vmem:[#allocation7 + $0x78] sm:$0xff]   ;;  %6312 = vmatpush3.bf16.msra.mxu0 %v7430_v22 }
 0x30c   : > { %v10546_v10 = vmax.f32 %v9095_v16, 0.0  ;;  %v2976_v19 = vpack.c.bf16 %v2958_v15, %v2957_v47  ;;  %6744 = vmatmul.mubr.bf16.gmra.mrb[108].mxu1 %v9317_v54  ;;  %v3372_v2 = vshrl.u32 %v9307_v5, 16  ;;  %v3376_v35 = vrot.slane %v3374_v62, 1  ;;  %v7433_v11 = vld [vmem:[#allocation7 + $0x38] sm:$0xff]   ;;  %6313 = vmatprep.subr.bf16.mxu0 %v7432_v55 }
 0x30d   : > { %v9335_v48 = vsel %vm7889_vm2, %v3013_v13, %v3090_v24  ;;  %v3022_v33 = vshrl.u32 %v9117_v45, 16  ;;  %v9339_v16 = vsel %vm842_vm3, %v3365_v21, %v3369_v57  ;;  %v3391_v47 = vshll.u32 %v9322_v44, 16  ;;  %6776 = vmatpush3.bf16.msra.mxu1 %v7400_v7 }
 0x30e   : > { %v2975_v63 = vpack.c.bf16 %v10546_v10, %v10545_v1  ;;  %v3386_v6 = vshll.u32 %v9335_v48, 16  ;;  %v3100_v15 = vshll.u32 %v9117_v45, 16  ;;  %6747 = vmatprep.mubr.bf16.mxu1 %v9339_v16  ;;  %v3384_v60 = vshrl.u32 %v9335_v48, 16  ;;  %6777 = vmatprep.subr.bf16.mxu1 %v7401_v51 }
 0x30f   : > { %v3019_v9 = vshrl.u32 %v2976_v19, 16  ;;  %v3377_v20 = vor.u32 %v3376_v35, %v3372_v2  ;;  %v3096_v49 = vshll.u32 %v2976_v19, 16  ;;  %v3099_v41 = vrot.slane %v3022_v33, 7  ;;  %6314 = vmatpush3.bf16.msra.mxu0 %v7433_v11 }
 0x310   : > { %v3016_v13 = vshrl.u32 %v2975_v63, 16  ;;  %v3092_v36 = vshll.u32 %v2975_v63, 16  ;;  %v3388_v30 = vrot.slane %v3386_v6, 1  ;;  %v3381_v45 = vrot.slane %v3379_v23, 1 }
 0x311   : > { %v3095_v21 = vrot.slane %v3019_v9, 7  ;;  %v3152_v57 = vrot.slane %v3096_v49, 7  ;;  %v3102_v1 = vor.u32 %v3100_v15, %v3099_v41  ;;  %6778 = vmatpush3.bf16.msra.mxu1 %v7401_v51  ;;  %3717 = vmatmul.mubr.bf16.gmra.mrb[176].mxu0 %v9186_v42  ;;  %v3393_v10 = vrot.slane %v3391_v47, 1 }
 0x312   : > { %v3091_v62 = vrot.slane %v3016_v13, 7  ;;  %v3151_v24 = vrot.slane %v3092_v36, 7  ;;  %v3389_v7 = vor.u32 %v3388_v30, %v3384_v60  ;;  %6435 = vmatprep.subr.bf16.mxu1 %v7404_v32  ;;  %v2962_v22 = vmax.f32 %v9012_v61, 0.0  ;;  %3724 = vmatprep.mubr.bf16.mxu0 %v9247_v28 }
 0x313   : > { %v3098_v19 = vor.u32 %v3096_v49, %v3095_v21  ;;  %v2961_v35 = vmax.f32 %v9311_v8, 0.0  ;;  %v9354_v23 = vsel %vm842_vm3, %v3377_v20, %v3381_v45  ;;  %v9359_v42 = vsel %vm7889_vm2, %v3095_v21, %v3152_v57 }
 0x314   : > { %v3094_v63 = vor.u32 %v3092_v36, %v3091_v62  ;;  %v9349_v2 = vsel %vm7889_vm2, %v3091_v62, %v3151_v24  ;;  %6748 = vmatmul.mubr.bf16.gmra.mrb[112].mxu1 %v9354_v23  ;;  %v9363_v51 = vsel %vm842_vm3, %v3389_v7, %v3393_v10  ;;  %v9375_v55 = vsel %vm7889_vm2, %v3022_v33, %v3102_v1 }
 0x315   : > { %v9371_v8 = vsel %vm7889_vm2, %v3019_v9, %v3098_v19  ;;  %6751 = vmatprep.mubr.bf16.mxu1 %v9363_v51  ;;  %v3403_v47 = vshll.u32 %v9349_v2, 16  ;;  %v3415_v36 = vshll.u32 %v9359_v42, 16  ;;  %v3422_v9 = vshll.u32 %v9375_v55, 16 }
 0x316   : > { %v9367_v61 = vsel %vm7889_vm2, %v3016_v13, %v3094_v63  ;;  %v3410_v60 = vshll.u32 %v9371_v8, 16  ;;  %v3153_v13 = vrot.slane %v3100_v15, 7  ;;  %v2978_v30 = vpack.c.bf16 %v2962_v22, %v2961_v35 }
 0x317   : > { %v3398_v6 = vshll.u32 %v9367_v61, 16  ;;  %v3396_v32 = vshrl.u32 %v9367_v61, 16  ;;  %v3408_v33 = vshrl.u32 %v9371_v8, 16  ;;  %v3405_v62 = vrot.slane %v3403_v47, 1 }
 0x318   : > { %v3412_v49 = vrot.slane %v3410_v60, 1  ;;  %v3025_v24 = vshrl.u32 %v2978_v30, 16  ;;  %v3104_v21 = vshll.u32 %v2978_v30, 16  ;;  %v3417_v7 = vrot.slane %v3415_v36, 1 }
 0x319   : > { %v3400_v20 = vrot.slane %v3398_v6, 1  ;;  %3725 = vmatmul.mubr.bf16.gmra.mrb[180].mxu0 %v9231_v38  ;;  %v9388_v15 = vsel %vm7889_vm2, %v3099_v41, %v3153_v13  ;;  %v3424_v1 = vrot.slane %v3422_v9, 1  ;;  %v3420_v38 = vshrl.u32 %v9375_v55, 16 }
 0x31a   : > { %v3413_v45 = vor.u32 %v3412_v49, %v3408_v33  ;;  %3732 = vmatprep.mubr.bf16.mxu0 %v9277_v39  ;;  %v3103_v10 = vrot.slane %v3025_v24, 7  ;;  %v3154_v63 = vrot.slane %v3104_v21, 7  ;;  %v3427_v41 = vshll.u32 %v9388_v15, 16  ;;  %v7406_v49 = vld [vmem:[#allocation7 + $0x1c8] sm:$0xff]  }
 0x31b   : > { %v3401_v11 = vor.u32 %v3400_v20, %v3396_v32  ;;  %v3425_v6 = vor.u32 %v3424_v1, %v3420_v38  ;;  %v7423_v1 = vld [vmem:[#allocation7 + $0x1f0] sm:$0xff]   ;;  %v7434_v38 = vld [vmem:[#allocation7 + $0x200] sm:$0xff]  }
 0x31c   : > { %v9396_v19 = vsel %vm842_vm3, %v3413_v45, %v3417_v7  ;;  %v3106_v22 = vor.u32 %v3104_v21, %v3103_v10  ;;  %v9403_v35 = vsel %vm7889_vm2, %v3103_v10, %v3154_v63  ;;  %v3429_v13 = vrot.slane %v3427_v41, 1  ;;  %v7416_v21 = vld [vmem:[#allocation7 + $0x1e0] sm:$0xff]   ;;  %v7418_v7 = vld [vmem:[#allocation7 + $0x1e8] sm:$0xff]   ;;  %v7425_v10 = vld [vmem:[#allocation7 + $0x1b0] sm:$0xff]  }
 0x31d   : > { %v9391_v57 = vsel %vm842_vm3, %v3401_v11, %v3405_v62  ;;  %v3439_v36 = vshll.u32 %v9403_v35, 16  ;;  %v7407_v11 = vld [vmem:[#allocation7 + $0x188] sm:$0xff]   ;;  %v7411_v62 = vld [vmem:[#allocation7 + $0x190] sm:$0xff]   ;;  %v7417_v45 = vld [vmem:[#allocation7 + $0x1a0] sm:$0xff]   ;;  %v4473_v41 = vrot.slane %v9131_v14, 1  ;;  %v4479_v14 = vrot.slane %v9137_v29, 1 }
 0x31e   : > { %6752 = vmatmul.mubr.bf16.gmra.mrb[116].mxu1 %v9391_v57  ;;  %v9407_v47 = vsel %vm7889_vm2, %v3025_v24, %v3106_v22  ;;  %v9414_v9 = vsel %vm842_vm3, %v3425_v6, %v3429_v13  ;;  %v7412_v24 = vld [vmem:[#allocation7 + $0x1d8] sm:$0xff]   ;;  %v7435_v22 = vld [vmem:[#allocation7 + $0x208] sm:$0xff]   ;;  %v4482_v29 = vrot.slane %v9164_v27, 1 }
 0x31f   : > { %6755 = vmatprep.mubr.bf16.mxu1 %v9396_v19  ;;  %v3434_v60 = vshll.u32 %v9407_v47, 16  ;;  %v3432_v32 = vshrl.u32 %v9407_v47, 16  ;;  %v3441_v30 = vrot.slane %v3439_v36, 1  ;;  %v7429_v63 = vld [vmem:[#allocation7 + $0x1f8] sm:$0xff]  }
 0x320   : > { %v7437_v36 = vld [vmem:[#allocation7 + $0x218] sm:$0xff]  }
 0x321   : > { %3733 = vmatmul.mubr.bf16.gmra.mrb[184].mxu0 %v9247_v28  ;;  %v3436_v20 = vrot.slane %v3434_v60, 1  ;;  %v7405_v28 = vld [vmem:[#allocation7 + $0x180] sm:$0xff]   ;;  %v4478_v60 = vrot.slane %v9154_v56, 1  ;;  %v7441_v27 = vld [vmem:[#allocation7 + $0x238] sm:$0xff]  }
 0x322   : > { %3740 = vmatprep.mubr.bf16.mxu0 %v9281_v53 }
 0x323   : > { %v3437_v59 = vor.u32 %v3436_v20, %v3432_v32  ;;  %v9470_v13 = vsel %vm2064_vm4, %v4478_v60, %v4479_v14  ;;  %v7438_v32 = vld [vmem:[#allocation7 + $0x220] sm:$0xff]   ;;  %v4481_v20 = vrot.slane %v9160_v46, 1 }
 0x325   : > { %v3442_v33 = vsel %vm842_vm3, %v3437_v59, %v3441_v30  ;;  %v7440_v59 = vld [vmem:[#allocation7 + $0x230] sm:$0xff]   ;;  %v4484_v30 = vrot.slane %v9201_v25, 1 }
 0x326   : > { %6756 = vmatmul.mubr.bf16.gmra.mrb[120].mxu1 %v9414_v9 }
 0x327   : > { %6759 = vmatprep.mubr.bf16.mxu1 %v3442_v33 }
 0x329   : > { %3741 = vmatmul.mubr.bf16.gmra.mrb[188].mxu0 %v9277_v39  ;;  %v7410_v39 = vld [vmem:[#allocation7 + $0x1d0] sm:$0xff]  }
 0x32a   : > { %3748 = vmatprep.mubr.bf16.mxu0 %v9317_v54 }
 0x32e   : > { %6760 = vmatmul.mubr.bf16.gmra.mrb[124].mxu1 %v9414_v9 }
 0x32f   : > { %6779 = vmatprep.mubr.bf16.mxu1 %v9145_v31 }
 0x331   : > { %3749 = vmatmul.mubr.bf16.gmra.mrb[192].mxu0 %v9281_v53  ;;  %v7413_v53 = vld [vmem:[#allocation7 + $0x198] sm:$0xff]  }
 0x332   : > { %3756 = vmatprep.mubr.bf16.mxu0 %v9339_v16 }
 0x336   : > { %6780 = vmatmul.mubr.bf16.vlgmr.msra.gmra.mrb[96].mxu1 %v9154_v56 }
 0x337   : > { %6783 = vmatprep.mubr.bf16.mxu1 %v9160_v46  ;;  %6436 = vmatpush3.bf16.msra.mxu1 %v7405_v28  ;;  %v4487_v28 = vrot.slane %v9209_v52, 1 }
 0x338   : > { %6437 = vmatprep.subr.bf16.mxu1 %v7406_v49  ;;  %v4490_v49 = vrot.slane %v9224_v43, 1 }
 0x339   : > { %3757 = vmatmul.mubr.bf16.gmra.mrb[196].mxu0 %v9317_v54  ;;  %v7419_v54 = vld [vmem:[#allocation7 + $0x1a8] sm:$0xff]  }
 0x33a   : > { %3764 = vmatprep.mubr.bf16.mxu0 %v9354_v23 }
 0x33b   : > { %6438 = vmatpush3.bf16.msra.mxu1 %v7407_v11  ;;  %v4491_v11 = vrot.slane %v9219_v4, 1  ;;  %v4496_v4 = vrot.slane %v9270_v26, 1 }
 0x33c   : > { %6439 = vmatprep.subr.bf16.mxu1 %v7410_v39  ;;  %v4494_v39 = vrot.slane %v9244_v37, 1  ;;  %v4499_v37 = vrot.slane %v9292_v50, 1 }
 0x33e   : > { %6784 = vmatmul.mubr.bf16.gmra.mrb[100].mxu1 %v9201_v25 }
 0x33f   : > { %6787 = vmatprep.mubr.bf16.mxu1 %v9209_v52  ;;  %6440 = vmatpush3.bf16.msra.mxu1 %v7411_v62  ;;  %v4497_v62 = vrot.slane %v9274_v3, 1  ;;  %v4502_v3 = vrot.slane %v9307_v5, 1 }
 0x340   : > { %6441 = vmatprep.subr.bf16.mxu1 %v7412_v24  ;;  %v4500_v24 = vrot.slane %v9296_v34, 1  ;;  %v4505_v34 = vrot.slane %v9335_v48, 1 }
 0x341   : > { %3765 = vmatmul.mubr.bf16.gmra.mrb[200].mxu0 %v9339_v16  ;;  %v7431_v16 = vld [vmem:[#allocation7 + $0x1b8] sm:$0xff]  }
 0x342   : > { %3772 = vmatprep.mubr.bf16.mxu0 %v9363_v51 }
 0x343   : > { %6442 = vmatpush3.bf16.msra.mxu1 %v7413_v53  ;;  %v4503_v53 = vrot.slane %v9300_v17, 1 }
 0x344   : > { %6443 = vmatprep.subr.bf16.mxu1 %v7416_v21  ;;  %v4506_v21 = vrot.slane %v9322_v44, 1  ;;  %v4509_v44 = vrot.slane %v9349_v2, 1  ;;  %v4512_v2 = vrot.slane %v9359_v42, 1  ;;  %v4515_v42 = vrot.slane %v9388_v15, 1 }
 0x345   : > { %v4518_v15 = vrot.slane %v9403_v35, 1 }
 0x346   : > { %6788 = vmatmul.mubr.bf16.gmra.mrb[104].mxu1 %v9224_v43 }
 0x347   : > { %6791 = vmatprep.mubr.bf16.mxu1 %v9240_v40  ;;  %6444 = vmatpush3.bf16.msra.mxu1 %v7417_v45 }
 0x348   : > { %6445 = vmatprep.subr.bf16.mxu1 %v7418_v7 }
 0x349   : > { %3773 = vmatmul.mubr.bf16.gmra.mrb[204].mxu0 %v9354_v23  ;;  %v4475_v23 = vrot.slane %v9141_v58, 1 }
 0x34a   : > { %3780 = vmatprep.mubr.bf16.mxu0 %v9391_v57 }
 0x34b   : > { %6446 = vmatpush3.bf16.msra.mxu1 %v7419_v54 }
 0x34c   : > { %6447 = vmatprep.subr.bf16.mxu1 %v7423_v1 }
 0x34e   : > { %6792 = vmatmul.mubr.bf16.gmra.mrb[108].mxu1 %v9270_v26 }
 0x34f   : > { %6795 = vmatprep.mubr.bf16.mxu1 %v9292_v50  ;;  %6448 = vmatpush3.bf16.msra.mxu1 %v7425_v10  ;;  %v4508_v10 = vrot.slane %v9367_v61, 1 }
 0x350   : > { %6449 = vmatprep.subr.bf16.mxu1 %v7429_v63 }
 0x351   : > { %3781 = vmatmul.mubr.bf16.gmra.mrb[208].mxu0 %v9363_v51  ;;  %v4476_v51 = vrot.slane %v9127_v12, 1  ;;  %v7436_v12 = vld [vmem:[#allocation7 + $0x210] sm:$0xff]   ;;  %v9564_v63 = vsel %vm2064_vm4, %v4508_v10, %v4509_v44 }
 0x352   : > { %3788 = vmatprep.mubr.bf16.mxu0 %v9396_v19 }
 0x353   : > { %6450 = vmatpush3.bf16.msra.mxu1 %v7431_v16 }
 0x354   : > { %6811 = vmatprep.subr.bf16.mxu1 %v7434_v38 }
 0x356   : > { %6796 = vmatmul.mubr.bf16.gmra.mrb[112].mxu1 %v9307_v5 }
 0x357   : > { %6799 = vmatprep.mubr.bf16.mxu1 %v9335_v48 }
 0x359   : > { %3789 = vmatmul.mubr.bf16.gmra.mrb[212].mxu0 %v9391_v57  ;;  %v4477_v57 = vsel %vm2064_vm4, %v4475_v23, %v4476_v51 }
 0x35a   : > { %3796 = vmatprep.mubr.bf16.mxu0 %v9414_v9 }
 0x35e   : > { %6800 = vmatmul.mubr.bf16.gmra.mrb[116].mxu1 %v9367_v61 }
 0x35f   : > { %6803 = vmatprep.mubr.bf16.mxu1 %v9371_v8 }
 0x361   : > { %3797 = vmatmul.mubr.bf16.gmra.mrb[216].mxu0 %v9396_v19  ;;  %v4472_v19 = vrot.slane %v9145_v31, 1 }
 0x362   : > { %3804 = vmatprep.mubr.bf16.mxu0 %v3442_v33 }
 0x363   : > { %v9460_v6 = vsel %vm2064_vm4, %v4472_v19, %v4473_v41  ;;  %v4511_v19 = vrot.slane %v9371_v8, 1 }
 0x365   : > { %v9577_v41 = vsel %vm2064_vm4, %v4511_v19, %v4512_v2 }
 0x366   : > { %6804 = vmatmul.mubr.bf16.gmra.mrb[120].mxu1 %v9375_v55 }
 0x367   : > { %6807 = vmatprep.mubr.bf16.mxu1 %v9407_v47 }
 0x369   : > { %3805 = vmatmul.mubr.bf16.gmra.mrb[220].mxu0 %v9414_v9  ;;  %v9479_v9 = vsel %vm2064_vm4, %v4481_v20, %v4482_v29 }
 0x36a   : > { %4150 = vmatprep.mubr.bf16.mxu0 %v9141_v58 }
 0x36e   : > { %6808 = vmatmul.mubr.bf16.gmra.mrb[124].mxu1 %v9375_v55 }
 0x36f   : > { %4761 = vmatprep.mubr.bf16.mxu1 %v4477_v57 }
 0x371   : > { %4151 = vmatmul.mubr.bf16.vlgmr.msra.gmra.mrb[224].mxu0 %v9145_v31 }
 0x372   : > { %4158 = vmatprep.mubr.bf16.mxu0 %v9145_v31 }
 0x376   : > { %4762 = vmatmul.mubr.bf16.vlgmr.msra.gmra.mrb[128].mxu1 %v9460_v6 }
 0x377   : > { %4769 = vmatprep.mubr.bf16.mxu1 %v9460_v6  ;;  %6812 = vmatpush3.bf16.msra.mxu1 %v7434_v38 }
 0x378   : > { %6813 = vmatprep.subr.bf16.mxu1 %v7435_v22 }
 0x379   : > { %4159 = vmatmul.mubr.bf16.gmra.mrb[228].mxu0 %v9141_v58  ;;  %v7439_v58 = vld [vmem:[#allocation7 + $0x228] sm:$0xff]  }
 0x37a   : > { %4166 = vmatprep.mubr.bf16.mxu0 %v9154_v56 }
 0x37b   : > { %6814 = vmatpush3.bf16.msra.mxu1 %v7435_v22 }
 0x37c   : > { %6815 = vmatprep.subr.bf16.mxu1 %v7436_v12 }
 0x37e   : > { %4770 = vmatmul.mubr.bf16.gmra.mrb[132].mxu1 %v4477_v57 }
 0x37f   : > { %4777 = vmatprep.mubr.bf16.mxu1 %v9470_v13  ;;  %6816 = vmatpush3.bf16.msra.mxu1 %v7436_v12 }
 0x380   : > { %6817 = vmatprep.subr.bf16.mxu1 %v7437_v36 }
 0x381   : > { %4167 = vmatmul.mubr.bf16.gmra.mrb[232].mxu0 %v9145_v31  ;;  %v4485_v31 = vrot.slane %v9190_v18, 1 }
 0x382   : > { %4174 = vmatprep.mubr.bf16.mxu0 %v9160_v46 }
 0x383   : > { %6818 = vmatpush3.bf16.msra.mxu1 %v7437_v36  ;;  %v9488_v33 = vsel %vm2064_vm4, %v4484_v30, %v4485_v31 }
 0x384   : > { %6819 = vmatprep.subr.bf16.mxu1 %v7438_v32 }
 0x386   : > { %4778 = vmatmul.mubr.bf16.gmra.mrb[136].mxu1 %v9460_v6 }
 0x387   : > { %4785 = vmatprep.mubr.bf16.mxu1 %v9479_v9  ;;  %6820 = vmatpush3.bf16.msra.mxu1 %v7438_v32  ;;  %v4514_v32 = vrot.slane %v9375_v55, 1 }
 0x388   : > { %6821 = vmatprep.subr.bf16.mxu1 %v7439_v58 }
 0x389   : > { %4175 = vmatmul.mubr.bf16.gmra.mrb[236].mxu0 %v9154_v56  ;;  %v4488_v56 = vrot.slane %v9213_v0, 1  ;;  %v4493_v0 = vrot.slane %v9240_v40, 1  ;;  %v9590_v20 = vsel %vm2064_vm4, %v4514_v32, %v4515_v42 }
 0x38a   : > { %4182 = vmatprep.mubr.bf16.mxu0 %v9201_v25 }
 0x38b   : > { %6822 = vmatpush3.bf16.msra.mxu1 %v7439_v58  ;;  %v9497_v18 = vsel %vm2064_vm4, %v4487_v28, %v4488_v56 }
 0x38c   : > { %6823 = vmatprep.subr.bf16.mxu1 %v7440_v59 }
 0x38e   : > { %4786 = vmatmul.mubr.bf16.gmra.mrb[140].mxu1 %v9470_v13 }
 0x38f   : > { %4793 = vmatprep.mubr.bf16.mxu1 %v9488_v33  ;;  %6824 = vmatpush3.bf16.msra.mxu1 %v7440_v59 }
 0x390   : > { %6825 = vmatprep.subr.bf16.mxu1 %v7441_v27 }
 0x391   : > { %4183 = vmatmul.mubr.bf16.gmra.mrb[240].mxu0 %v9160_v46  ;;  %v9506_v46 = vsel %vm2064_vm4, %v4490_v49, %v4491_v11 }
 0x392   : > { %4190 = vmatprep.mubr.bf16.mxu0 %v9209_v52 }
 0x393   : > { %6826 = vmatpush3.bf16.msra.mxu1 %v7441_v27  ;;  %v4517_v27 = vrot.slane %v9407_v47, 1 }
 0x395   : > { %v9603_v28 = vsel %vm2064_vm4, %v4517_v27, %v4518_v15 }
 0x396   : > { %4794 = vmatmul.mubr.bf16.gmra.mrb[144].mxu1 %v9479_v9 }
 0x397   : > { %4801 = vmatprep.mubr.bf16.mxu1 %v9497_v18 }
 0x399   : > { %4191 = vmatmul.mubr.bf16.gmra.mrb[244].mxu0 %v9201_v25  ;;  %v9515_v25 = vsel %vm2064_vm4, %v4493_v0, %v4494_v39 }
 0x39a   : > { %4198 = vmatprep.mubr.bf16.mxu0 %v9224_v43 }
 0x39e   : > { %4802 = vmatmul.mubr.bf16.gmra.mrb[148].mxu1 %v9488_v33 }
 0x39f   : > { %4809 = vmatprep.mubr.bf16.mxu1 %v9506_v46 }
 0x3a1   : > { %4199 = vmatmul.mubr.bf16.gmra.mrb[248].mxu0 %v9209_v52  ;;  %v9524_v52 = vsel %vm2064_vm4, %v4496_v4, %v4497_v62 }
 0x3a2   : > { %4206 = vmatprep.mubr.bf16.mxu0 %v9240_v40 }
 0x3a6   : > { %4810 = vmatmul.mubr.bf16.gmra.mrb[152].mxu1 %v9497_v18 }
 0x3a7   : > { %4817 = vmatprep.mubr.bf16.mxu1 %v9515_v25 }
 0x3a9   : > { %4207 = vmatmul.mubr.bf16.gmra.mrb[252].mxu0 %v9224_v43  ;;  %v9533_v43 = vsel %vm2064_vm4, %v4499_v37, %v4500_v24 }
 0x3aa   : > { %4214 = vmatprep.mubr.bf16.mxu0 %v9270_v26 }
 0x3ae   : > { %4818 = vmatmul.mubr.bf16.gmra.mrb[156].mxu1 %v9506_v46 }
 0x3af   : > { %4825 = vmatprep.mubr.bf16.mxu1 %v9524_v52 }
 0x3b1   : > { %4215 = vmatmul.mubr.bf16.gmra.mrb[0].mxu0 %v9240_v40  ;;  %v9542_v40 = vsel %vm2064_vm4, %v4502_v3, %v4503_v53 }
 0x3b2   : > { %4222 = vmatprep.mubr.bf16.mxu0 %v9292_v50 }
 0x3b6   : > { %4826 = vmatmul.mubr.bf16.gmra.mrb[160].mxu1 %v9515_v25 }
 0x3b7   : > { %4833 = vmatprep.mubr.bf16.mxu1 %v9533_v43 }
 0x3b9   : > { %4223 = vmatmul.mubr.bf16.gmra.mrb[4].mxu0 %v9270_v26  ;;  %v9551_v26 = vsel %vm2064_vm4, %v4505_v34, %v4506_v21 }
 0x3ba   : > { %4230 = vmatprep.mubr.bf16.mxu0 %v9307_v5 }
 0x3be   : > { %4834 = vmatmul.mubr.bf16.gmra.mrb[164].mxu1 %v9524_v52 }
 0x3bf   : > { %4841 = vmatprep.mubr.bf16.mxu1 %v9542_v40 }
 0x3c1   : > { %4231 = vmatmul.mubr.bf16.gmra.mrb[8].mxu0 %v9292_v50 }
 0x3c2   : > { %4238 = vmatprep.mubr.bf16.mxu0 %v9335_v48 }
 0x3c4   : > { %v6179_v17 = vpop.f32.mrb[160].mxu0 }
 0x3c5   : > { %v6180_v45 = vpop.f32.mrb[161].mxu0 }
 0x3c6   : > { %4842 = vmatmul.mubr.bf16.gmra.mrb[168].mxu1 %v9533_v43  ;;  %v9554_v7 = vadd.f32 %v6180_v45, %v6179_v17  ;;  %v6182_v54 = vpop.f32.mrb[162].mxu0 }
 0x3c7   : > { %4849 = vmatprep.mubr.bf16.mxu1 %v9551_v26  ;;  %v6183_v1 = vpop.f32.mrb[163].mxu0 }
 0x3c8   : > { %v9557_v50 = vadd.f32 %v6183_v1, %v6182_v54 }
 0x3c9   : > { %4239 = vmatmul.mubr.bf16.gmra.mrb[12].mxu0 %v9307_v5 }
 0x3ca   : > { %4246 = vmatprep.mubr.bf16.mxu0 %v9367_v61 }
 0x3cc   : > { %v6185_v16 = vpop.f32.mrb[164].mxu0 }
 0x3cd   : > { %v6186_v38 = vpop.f32.mrb[165].mxu0 }
 0x3ce   : > { %4850 = vmatmul.mubr.bf16.gmra.mrb[172].mxu1 %v9542_v40  ;;  %v9567_v23 = vadd.f32 %v6186_v38, %v6185_v16  ;;  %v6188_v51 = vpop.f32.mrb[166].mxu0 }
 0x3cf   : > { %4857 = vmatprep.mubr.bf16.mxu1 %v9564_v63  ;;  %v6189_v57 = vpop.f32.mrb[167].mxu0 }
 0x3d0   : > { %v9570_v5 = vadd.f32 %v6189_v57, %v6188_v51 }
 0x3d1   : > { %4247 = vmatmul.mubr.bf16.gmra.mrb[16].mxu0 %v9335_v48 }
 0x3d2   : > { %4254 = vmatprep.mubr.bf16.mxu0 %v9371_v8 }
 0x3d4   : > { %v6191_v22 = vpop.f32.mrb[168].mxu0 }
 0x3d5   : > { %v6192_v12 = vpop.f32.mrb[169].mxu0 }
 0x3d6   : > { %4858 = vmatmul.mubr.bf16.gmra.mrb[176].mxu1 %v9551_v26  ;;  %v9580_v60 = vadd.f32 %v6192_v12, %v6191_v22  ;;  %v6194_v14 = vpop.f32.mrb[170].mxu0 }
 0x3d7   : > { %4865 = vmatprep.mubr.bf16.mxu1 %v9577_v41  ;;  %v6195_v36 = vpop.f32.mrb[171].mxu0 }
 0x3d8   : > { %v9583_v48 = vadd.f32 %v6195_v36, %v6194_v14 }
 0x3d9   : > { %4255 = vmatmul.mubr.bf16.gmra.mrb[20].mxu0 %v9367_v61 }
 0x3da   : > { %4262 = vmatprep.mubr.bf16.mxu0 %v9375_v55 }
 0x3dc   : > { %v6197_v29 = vpop.f32.mrb[172].mxu0 }
 0x3dd   : > { %v6198_v58 = vpop.f32.mrb[173].mxu0 }
 0x3de   : > { %4866 = vmatmul.mubr.bf16.gmra.mrb[180].mxu1 %v9564_v63  ;;  %v9593_v59 = vadd.f32 %v6198_v58, %v6197_v29  ;;  %v6200_v30 = vpop.f32.mrb[174].mxu0 }
 0x3df   : > { %4873 = vmatprep.mubr.bf16.mxu1 %v9590_v20  ;;  %v6201_v31 = vpop.f32.mrb[175].mxu0 }
 0x3e0   : > { %v9596_v61 = vadd.f32 %v6201_v31, %v6200_v30 }
 0x3e1   : > { %4263 = vmatmul.mubr.bf16.gmra.mrb[24].mxu0 %v9371_v8 }
 0x3e2   : > { %4270 = vmatprep.mubr.bf16.mxu0 %v9407_v47 }
 0x3e4   : > { %v6203_v56 = vpop.f32.mrb[176].mxu0 }
 0x3e5   : > { %v6204_v49 = vpop.f32.mrb[177].mxu0 }
 0x3e6   : > { %4874 = vmatmul.mubr.bf16.gmra.mrb[184].mxu1 %v9577_v41  ;;  %v9606_v11 = vadd.f32 %v6204_v49, %v6203_v56  ;;  %v6206_v0 = vpop.f32.mrb[178].mxu0 }
 0x3e7   : > { %4881 = vmatprep.mubr.bf16.mxu1 %v9603_v28  ;;  %v6207_v39 = vpop.f32.mrb[179].mxu0 }
 0x3e8   : > { %v9608_v4 = vadd.f32 %v6207_v39, %v6206_v0 }
 0x3e9   : > { %4271 = vmatmul.mubr.bf16.gmra.mrb[28].mxu0 %v9375_v55 }
 0x3ec   : > { %v6209_v8 = vpop.f32.mrb[180].mxu0 }
 0x3ed   : > { %v6210_v35 = vpop.f32.mrb[181].mxu0 }
 0x3ee   : > { %4882 = vmatmul.mubr.bf16.gmra.mrb[188].mxu1 %v9590_v20  ;;  %v9613_v47 = vadd.f32 %v6210_v35, %v6209_v8  ;;  %v6212_v62 = vpop.f32.mrb[182].mxu0 }
 0x3ef   : > { %6827 = vmatprep.mubr.bf16.mxu1 %v9460_v6  ;;  %v6213_v37 = vpop.f32.mrb[183].mxu0 }
 0x3f0   : > { %v9615_v24 = vadd.f32 %v6213_v37, %v6212_v62 }
 0x3f4   : > { %v6215_v3 = vpop.f32.mrb[184].mxu0 }
 0x3f5   : > { %v6216_v53 = vpop.f32.mrb[185].mxu0 }
 0x3f6   : > { %6828 = vmatmul.mubr.bf16.vlgmr.msra.gmra.mrb[96].mxu1 %v9470_v13  ;;  %v9619_v34 = vadd.f32 %v6216_v53, %v6215_v3  ;;  %v6218_v55 = vpop.f32.mrb[186].mxu0 }
 0x3f7   : > { %6831 = vmatprep.mubr.bf16.mxu1 %v9479_v9  ;;  %v6219_v21 = vpop.f32.mrb[187].mxu0 }
 0x3f8   : > { %v9621_v17 = vadd.f32 %v6219_v21, %v6218_v55 }
 0x3fc   : > { %v6221_v6 = vpop.f32.mrb[188].mxu0 }
 0x3fd   : > { %v6222_v45 = vpop.f32.mrb[189].mxu0 }
 0x3fe   : > { %6832 = vmatmul.mubr.bf16.gmra.mrb[100].mxu1 %v9488_v33  ;;  %v9625_v54 = vadd.f32 %v6222_v45, %v6221_v6  ;;  %v6224_v1 = vpop.f32.mrb[190].mxu0 }
 0x3ff   : > { %6835 = vmatprep.mubr.bf16.mxu1 %v9497_v18  ;;  %v6225_v13 = vpop.f32.mrb[191].mxu0 }
 0x400   : > { %v9627_v10 = vadd.f32 %v6225_v13, %v6224_v1 }
 0x404   : > { %v6227_v9 = vpop.f32.mrb[192].mxu0 }
 0x405   : > { %v6228_v44 = vpop.f32.mrb[193].mxu0 }
 0x406   : > { %6836 = vmatmul.mubr.bf16.gmra.mrb[104].mxu1 %v9506_v46  ;;  %v9631_v16 = vadd.f32 %v6228_v44, %v6227_v9  ;;  %v6230_v38 = vpop.f32.mrb[194].mxu0 }
 0x407   : > { %6839 = vmatprep.mubr.bf16.mxu1 %v9515_v25  ;;  %v6231_v33 = vpop.f32.mrb[195].mxu0 }
 0x408   : > { %v9633_v51 = vadd.f32 %v6231_v33, %v6230_v38 }
 0x40c   : > { %v6233_v18 = vpop.f32.mrb[196].mxu0 }
 0x40d   : > { %v6234_v57 = vpop.f32.mrb[197].mxu0 }
 0x40e   : > { %6840 = vmatmul.mubr.bf16.gmra.mrb[108].mxu1 %v9524_v52  ;;  %v9637_v19 = vadd.f32 %v6234_v57, %v6233_v18  ;;  %v6236_v2 = vpop.f32.mrb[198].mxu0 }
 0x40f   : > { %6843 = vmatprep.mubr.bf16.mxu1 %v9533_v43  ;;  %v6237_v46 = vpop.f32.mrb[199].mxu0 }
 0x410   : > { %v9639_v22 = vadd.f32 %v6237_v46, %v6236_v2 }
 0x414   : > { %v6239_v25 = vpop.f32.mrb[200].mxu0 }
 0x415   : > { %v6240_v12 = vpop.f32.mrb[201].mxu0 }
 0x416   : > { %6844 = vmatmul.mubr.bf16.gmra.mrb[112].mxu1 %v9542_v40  ;;  %v9643_v14 = vadd.f32 %v6240_v12, %v6239_v25  ;;  %v6242_v36 = vpop.f32.mrb[202].mxu0 }
 0x417   : > { %6847 = vmatprep.mubr.bf16.mxu1 %v9551_v26  ;;  %v6243_v52 = vpop.f32.mrb[203].mxu0 }
 0x418   : > { %v9645_v32 = vadd.f32 %v6243_v52, %v6242_v36 }
 0x41c   : > { %v6245_v43 = vpop.f32.mrb[204].mxu0 }
 0x41d   : > { %v6246_v42 = vpop.f32.mrb[205].mxu0 }
 0x41e   : > { %6848 = vmatmul.mubr.bf16.gmra.mrb[116].mxu1 %v9564_v63  ;;  %v9649_v29 = vadd.f32 %v6246_v42, %v6245_v43  ;;  %v6248_v58 = vpop.f32.mrb[206].mxu0 }
 0x41f   : > { %6851 = vmatprep.mubr.bf16.mxu1 %v9577_v41  ;;  %v6249_v40 = vpop.f32.mrb[207].mxu0 }
 0x420   : > { %v9651_v30 = vadd.f32 %v6249_v40, %v6248_v58 }
 0x424   : > { %v6251_v26 = vpop.f32.mrb[208].mxu0 }
 0x425   : > { %v6252_v31 = vpop.f32.mrb[209].mxu0 }
 0x426   : > { %6852 = vmatmul.mubr.bf16.gmra.mrb[120].mxu1 %v9590_v20  ;;  %v9655_v27 = vadd.f32 %v6252_v31, %v6251_v26  ;;  %v6254_v15 = vpop.f32.mrb[210].mxu0 }
 0x427   : > { %6855 = vmatprep.mubr.bf16.mxu1 %v9603_v28  ;;  %v6255_v63 = vpop.f32.mrb[211].mxu0 }
 0x428   : > { %v9657_v56 = vadd.f32 %v6255_v63, %v6254_v15 }
 0x42c   : > { %v6257_v41 = vpop.f32.mrb[212].mxu0 }
 0x42d   : > { %v6258_v49 = vpop.f32.mrb[213].mxu0 }
 0x42e   : > { %6856 = vmatmul.mubr.bf16.gmra.mrb[124].mxu1 %v9590_v20  ;;  %v9660_v0 = vadd.f32 %v6258_v49, %v6257_v41  ;;  %v6260_v39 = vpop.f32.mrb[214].mxu0 }
 0x42f   : > { %v6261_v8 = vpop.f32.mrb[215].mxu0 }
 0x430   : > { %v9662_v35 = vadd.f32 %v6261_v8, %v6260_v39 }
 0x434   : > { %v6263_v62 = vpop.f32.mrb[216].mxu0 }
 0x435   : > { %v6264_v28 = vpop.f32.mrb[217].mxu0 }
 0x436   : > { %v9664_v37 = vadd.f32 %v6264_v28, %v6263_v62  ;;  %v6266_v3 = vpop.f32.mrb[218].mxu0 }
 0x437   : > { %v6267_v53 = vpop.f32.mrb[219].mxu0 }
 0x438   : > { %v9666_v55 = vadd.f32 %v6267_v53, %v6266_v3 }
 0x43c   : > { %v6269_v21 = vpop.f32.mrb[220].mxu0 }
 0x43d   : > { %v6270_v6 = vpop.f32.mrb[221].mxu0 }
 0x43e   : > { %v9668_v45 = vadd.f32 %v6270_v6, %v6269_v21  ;;  %v6272_v20 = vpop.f32.mrb[222].mxu0 }
 0x43f   : > { %v6273_v1 = vpop.f32.mrb[223].mxu0 }
 0x440   : > { %v9670_v13 = vadd.f32 %v6273_v1, %v6272_v20 }
 0x444   : > { %v6315_v9 = vpop.f32.mrb[224].mxu0 }
 0x445   : > { %v6316_v44 = vpop.f32.mrb[225].mxu0 }
 0x446   : > { %v6317_v33 = vadd.f32 %v6316_v44, %v6315_v9  ;;  %v6318_v18 = vpop.f32.mrb[226].mxu0 }
 0x447   : > { %v6319_v2 = vpop.f32.mrb[227].mxu0 }
 0x448   : > { %v6990_v46 = vadd.f32 %v6317_v33, %v9554_v7  ;;  %v6320_v36 = vadd.f32 %v6319_v2, %v6318_v18 }
 0x449   : > { %v6451_v38 = vpop.f32.mrb[128].mxu1 }
 0x44a   : > { %v6452_v57 = vpop.f32.mrb[129].mxu1  ;;  %v6996_v43 = vadd.f32 %v6320_v36, %v9557_v50 }
 0x44b   : > { %v6453_v25 = vadd.f32 %v6452_v57, %v6451_v38  ;;  %v6454_v12 = vpop.f32.mrb[130].mxu1 }
 0x44c   : > { %v6455_v52 = vpop.f32.mrb[131].mxu1  ;;  %v6321_v40 = vpop.f32.mrb[228].mxu0 }
 0x44d   : > { %v6456_v42 = vadd.f32 %v6455_v52, %v6454_v12  ;;  %v9674_v58 = vadd.f32 %v6990_v46, %v6453_v25  ;;  %v6322_v31 = vpop.f32.mrb[229].mxu0 }
 0x44e   : > { %v6323_v63 = vadd.f32 %v6322_v31, %v6321_v40  ;;  %v6324_v41 = vpop.f32.mrb[230].mxu0 }
 0x44f   : > { %v9676_v26 = vadd.f32 %v6996_v43, %v6456_v42  ;;  %v6325_v39 = vpop.f32.mrb[231].mxu0 }
 0x450   : > { %v6987_v7 = vadd.f32 %v6323_v63, %v9567_v23  ;;  %v6326_v28 = vadd.f32 %v6325_v39, %v6324_v41 }
 0x451   : > { %v6457_v15 = vpop.f32.mrb[132].mxu1 }
 0x452   : > { %v6458_v49 = vpop.f32.mrb[133].mxu1  ;;  %v6993_v50 = vadd.f32 %v6326_v28, %v9570_v5 }
 0x453   : > { %v6459_v8 = vadd.f32 %v6458_v49, %v6457_v15  ;;  %v6460_v62 = vpop.f32.mrb[134].mxu1 }
 0x454   : > { %v6461_v3 = vpop.f32.mrb[135].mxu1  ;;  %v6327_v6 = vpop.f32.mrb[232].mxu0 }
 0x455   : > { %v6462_v53 = vadd.f32 %v6461_v3, %v6460_v62  ;;  %v9680_v21 = vadd.f32 %v6987_v7, %v6459_v8  ;;  %v6328_v1 = vpop.f32.mrb[233].mxu0 }
 0x456   : > { %v6329_v44 = vadd.f32 %v6328_v1, %v6327_v6  ;;  %v6330_v38 = vpop.f32.mrb[234].mxu0 }
 0x457   : > { %v9682_v20 = vadd.f32 %v6993_v50, %v6462_v53  ;;  %v6331_v18 = vpop.f32.mrb[235].mxu0 }
 0x458   : > { %v7002_v23 = vadd.f32 %v6329_v44, %v9580_v60  ;;  %v6332_v46 = vadd.f32 %v6331_v18, %v6330_v38 }
 0x459   : > { %v6463_v9 = vpop.f32.mrb[136].mxu1 }
 0x45a   : > { %v6464_v33 = vpop.f32.mrb[137].mxu1  ;;  %v7008_v5 = vadd.f32 %v6332_v46, %v9583_v48 }
 0x45b   : > { %v6465_v57 = vadd.f32 %v6464_v33, %v6463_v9  ;;  %v6466_v2 = vpop.f32.mrb[138].mxu1 }
 0x45c   : > { %v6467_v25 = vpop.f32.mrb[139].mxu1  ;;  %v6333_v52 = vpop.f32.mrb[236].mxu0 }
 0x45d   : > { %v6468_v12 = vadd.f32 %v6467_v25, %v6466_v2  ;;  %v9686_v36 = vadd.f32 %v7002_v23, %v6465_v57  ;;  %v6334_v42 = vpop.f32.mrb[237].mxu0 }
 0x45e   : > { %v6335_v31 = vadd.f32 %v6334_v42, %v6333_v52  ;;  %v6336_v15 = vpop.f32.mrb[238].mxu0 }
 0x45f   : > { %v9688_v43 = vadd.f32 %v7008_v5, %v6468_v12  ;;  %v6337_v41 = vpop.f32.mrb[239].mxu0 }
 0x460   : > { %v6999_v60 = vadd.f32 %v6335_v31, %v9593_v59  ;;  %v6338_v7 = vadd.f32 %v6337_v41, %v6336_v15 }
 0x461   : > { %v6469_v40 = vpop.f32.mrb[140].mxu1 }
 0x462   : > { %v6470_v63 = vpop.f32.mrb[141].mxu1  ;;  %v7005_v48 = vadd.f32 %v6338_v7, %v9596_v61 }
 0x463   : > { %v6471_v49 = vadd.f32 %v6470_v63, %v6469_v40  ;;  %v6472_v39 = vpop.f32.mrb[142].mxu1 }
 0x464   : > { %v6473_v8 = vpop.f32.mrb[143].mxu1  ;;  %v6339_v3 = vpop.f32.mrb[240].mxu0 }
 0x465   : > { %v6474_v62 = vadd.f32 %v6473_v8, %v6472_v39  ;;  %v9692_v28 = vadd.f32 %v6999_v60, %v6471_v49  ;;  %v6340_v53 = vpop.f32.mrb[241].mxu0 }
 0x466   : > { %v6341_v1 = vadd.f32 %v6340_v53, %v6339_v3  ;;  %v6342_v9 = vpop.f32.mrb[242].mxu0 }
 0x467   : > { %v9694_v50 = vadd.f32 %v7005_v48, %v6474_v62  ;;  %v6343_v38 = vpop.f32.mrb[243].mxu0 }
 0x468   : > { %v7014_v59 = vadd.f32 %v6341_v1, %v9606_v11  ;;  %v6344_v23 = vadd.f32 %v6343_v38, %v6342_v9 }
 0x469   : > { %v6475_v6 = vpop.f32.mrb[144].mxu1 }
 0x46a   : > { %v6476_v44 = vpop.f32.mrb[145].mxu1  ;;  %v7020_v61 = vadd.f32 %v6344_v23, %v9608_v4 }
 0x46b   : > { %v6477_v33 = vadd.f32 %v6476_v44, %v6475_v6  ;;  %v6478_v18 = vpop.f32.mrb[146].mxu1 }
 0x46c   : > { %v6479_v57 = vpop.f32.mrb[147].mxu1  ;;  %v6345_v25 = vpop.f32.mrb[244].mxu0 }
 0x46d   : > { %v6480_v2 = vadd.f32 %v6479_v57, %v6478_v18  ;;  %v9698_v46 = vadd.f32 %v7014_v59, %v6477_v33  ;;  %v6346_v12 = vpop.f32.mrb[245].mxu0 }
 0x46e   : > { %v6347_v42 = vadd.f32 %v6346_v12, %v6345_v25  ;;  %v6348_v40 = vpop.f32.mrb[246].mxu0 }
 0x46f   : > { %v9700_v5 = vadd.f32 %v7020_v61, %v6480_v2  ;;  %v6349_v15 = vpop.f32.mrb[247].mxu0 }
 0x470   : > { %v7011_v11 = vadd.f32 %v6347_v42, %v9613_v47  ;;  %v6350_v60 = vadd.f32 %v6349_v15, %v6348_v40 }
 0x471   : > { %v6481_v52 = vpop.f32.mrb[148].mxu1 }
 0x472   : > { %v6482_v31 = vpop.f32.mrb[149].mxu1  ;;  %v7017_v4 = vadd.f32 %v6350_v60, %v9615_v24 }
 0x473   : > { %v6483_v63 = vadd.f32 %v6482_v31, %v6481_v52  ;;  %v6484_v41 = vpop.f32.mrb[150].mxu1 }
 0x474   : > { %v6485_v49 = vpop.f32.mrb[151].mxu1  ;;  %v6351_v8 = vpop.f32.mrb[248].mxu0 }
 0x475   : > { %v6486_v39 = vadd.f32 %v6485_v49, %v6484_v41  ;;  %v9704_v7 = vadd.f32 %v7011_v11, %v6483_v63  ;;  %v6352_v62 = vpop.f32.mrb[249].mxu0 }
 0x476   : > { %v6353_v53 = vadd.f32 %v6352_v62, %v6351_v8  ;;  %v6354_v6 = vpop.f32.mrb[250].mxu0 }
 0x477   : > { %v9706_v48 = vadd.f32 %v7017_v4, %v6486_v39  ;;  %v6355_v9 = vpop.f32.mrb[251].mxu0 }
 0x478   : > { %v7026_v47 = vadd.f32 %v6353_v53, %v9619_v34  ;;  %v6356_v59 = vadd.f32 %v6355_v9, %v6354_v6 }
 0x479   : > { %v6487_v3 = vpop.f32.mrb[152].mxu1 }
 0x47a   : > { %v6488_v1 = vpop.f32.mrb[153].mxu1  ;;  %v7032_v24 = vadd.f32 %v6356_v59, %v9621_v17 }
 0x47b   : > { %v6489_v44 = vadd.f32 %v6488_v1, %v6487_v3  ;;  %v6490_v38 = vpop.f32.mrb[154].mxu1 }
 0x47c   : > { %v6491_v33 = vpop.f32.mrb[155].mxu1  ;;  %v6357_v57 = vpop.f32.mrb[252].mxu0 }
 0x47d   : > { %v6492_v18 = vadd.f32 %v6491_v33, %v6490_v38  ;;  %v9710_v23 = vadd.f32 %v7026_v47, %v6489_v44  ;;  %v6358_v2 = vpop.f32.mrb[253].mxu0 }
 0x47e   : > { %v6359_v12 = vadd.f32 %v6358_v2, %v6357_v57  ;;  %v6360_v52 = vpop.f32.mrb[254].mxu0 }
 0x47f   : > { %v9712_v61 = vadd.f32 %v7032_v24, %v6492_v18  ;;  %v6361_v40 = vpop.f32.mrb[255].mxu0 }
 0x480   : > { %v7023_v34 = vadd.f32 %v6359_v12, %v9625_v54  ;;  %v6362_v11 = vadd.f32 %v6361_v40, %v6360_v52 }
 0x481   : > { %v6493_v25 = vpop.f32.mrb[156].mxu1 }
 0x482   : > { %v6494_v42 = vpop.f32.mrb[157].mxu1  ;;  %v7029_v17 = vadd.f32 %v6362_v11, %v9627_v10 }
 0x483   : > { %v6495_v31 = vadd.f32 %v6494_v42, %v6493_v25  ;;  %v6496_v15 = vpop.f32.mrb[158].mxu1 }
 0x484   : > { %v6497_v63 = vpop.f32.mrb[159].mxu1  ;;  %v6363_v49 = vpop.f32.mrb[0].mxu0 }
 0x485   : > { %v6498_v41 = vadd.f32 %v6497_v63, %v6496_v15  ;;  %v9716_v60 = vadd.f32 %v7023_v34, %v6495_v31  ;;  %v6364_v39 = vpop.f32.mrb[1].mxu0 }
 0x486   : > { %v6365_v62 = vadd.f32 %v6364_v39, %v6363_v49  ;;  %v6366_v3 = vpop.f32.mrb[2].mxu0 }
 0x487   : > { %v9718_v4 = vadd.f32 %v7029_v17, %v6498_v41  ;;  %v6367_v6 = vpop.f32.mrb[3].mxu0 }
 0x488   : > { %v7038_v54 = vadd.f32 %v6365_v62, %v9631_v16  ;;  %v6368_v47 = vadd.f32 %v6367_v6, %v6366_v3 }
 0x489   : > { %v6499_v8 = vpop.f32.mrb[160].mxu1 }
 0x48a   : > { %v6500_v53 = vpop.f32.mrb[161].mxu1  ;;  %v7044_v10 = vadd.f32 %v6368_v47, %v9633_v51 }
 0x48b   : > { %v6501_v1 = vadd.f32 %v6500_v53, %v6499_v8  ;;  %v6502_v9 = vpop.f32.mrb[162].mxu1 }
 0x48c   : > { %v6503_v44 = vpop.f32.mrb[163].mxu1  ;;  %v6369_v33 = vpop.f32.mrb[4].mxu0 }
 0x48d   : > { %v6504_v38 = vadd.f32 %v6503_v44, %v6502_v9  ;;  %v9722_v59 = vadd.f32 %v7038_v54, %v6501_v1  ;;  %v6370_v18 = vpop.f32.mrb[5].mxu0 }
 0x48e   : > { %v6371_v2 = vadd.f32 %v6370_v18, %v6369_v33  ;;  %v6372_v25 = vpop.f32.mrb[6].mxu0 }
 0x48f   : > { %v9724_v24 = vadd.f32 %v7044_v10, %v6504_v38  ;;  %v6373_v52 = vpop.f32.mrb[7].mxu0 }
 0x490   : > { %v7035_v16 = vadd.f32 %v6371_v2, %v9637_v19  ;;  %v6374_v34 = vadd.f32 %v6373_v52, %v6372_v25 }
 0x491   : > { %v6505_v57 = vpop.f32.mrb[164].mxu1 }
 0x492   : > { %v6506_v12 = vpop.f32.mrb[165].mxu1  ;;  %v7041_v51 = vadd.f32 %v6374_v34, %v9639_v22 }
 0x493   : > { %v6507_v42 = vadd.f32 %v6506_v12, %v6505_v57  ;;  %v6508_v40 = vpop.f32.mrb[166].mxu1 }
 0x494   : > { %v6509_v31 = vpop.f32.mrb[167].mxu1  ;;  %v6375_v63 = vpop.f32.mrb[8].mxu0 }
 0x495   : > { %v6510_v15 = vadd.f32 %v6509_v31, %v6508_v40  ;;  %v9728_v11 = vadd.f32 %v7035_v16, %v6507_v42  ;;  %v6376_v41 = vpop.f32.mrb[9].mxu0 }
 0x496   : > { %v6377_v39 = vadd.f32 %v6376_v41, %v6375_v63  ;;  %v6378_v8 = vpop.f32.mrb[10].mxu0 }
 0x497   : > { %v9730_v17 = vadd.f32 %v7041_v51, %v6510_v15  ;;  %v6379_v3 = vpop.f32.mrb[11].mxu0 }
 0x498   : > { %v7050_v19 = vadd.f32 %v6377_v39, %v9643_v14  ;;  %v6380_v54 = vadd.f32 %v6379_v3, %v6378_v8 }
 0x499   : > { %v6511_v49 = vpop.f32.mrb[168].mxu1 }
 0x49a   : > { %v6512_v62 = vpop.f32.mrb[169].mxu1  ;;  %v7056_v22 = vadd.f32 %v6380_v54, %v9645_v32 }
 0x49b   : > { %v6513_v53 = vadd.f32 %v6512_v62, %v6511_v49  ;;  %v6514_v6 = vpop.f32.mrb[170].mxu1 }
 0x49c   : > { %v6515_v1 = vpop.f32.mrb[171].mxu1  ;;  %v6381_v44 = vpop.f32.mrb[12].mxu0 }
 0x49d   : > { %v6516_v9 = vadd.f32 %v6515_v1, %v6514_v6  ;;  %v9734_v47 = vadd.f32 %v7050_v19, %v6513_v53  ;;  %v6382_v38 = vpop.f32.mrb[13].mxu0 }
 0x49e   : > { %v6383_v18 = vadd.f32 %v6382_v38, %v6381_v44  ;;  %v6384_v57 = vpop.f32.mrb[14].mxu0 }
 0x49f   : > { %v9736_v10 = vadd.f32 %v7056_v22, %v6516_v9  ;;  %v6385_v25 = vpop.f32.mrb[15].mxu0 }
 0x4a0   : > { %v7047_v14 = vadd.f32 %v6383_v18, %v9649_v29  ;;  %v6386_v16 = vadd.f32 %v6385_v25, %v6384_v57 }
 0x4a1   : > { %v6517_v33 = vpop.f32.mrb[172].mxu1 }
 0x4a2   : > { %v6518_v2 = vpop.f32.mrb[173].mxu1  ;;  %v7053_v32 = vadd.f32 %v6386_v16, %v9651_v30 }
 0x4a3   : > { %v6519_v12 = vadd.f32 %v6518_v2, %v6517_v33  ;;  %v6520_v52 = vpop.f32.mrb[174].mxu1 }
 0x4a4   : > { %v6521_v42 = vpop.f32.mrb[175].mxu1  ;;  %v6387_v31 = vpop.f32.mrb[16].mxu0 }
 0x4a5   : > { %v6522_v40 = vadd.f32 %v6521_v42, %v6520_v52  ;;  %v9740_v34 = vadd.f32 %v7047_v14, %v6519_v12  ;;  %v6388_v15 = vpop.f32.mrb[17].mxu0 }
 0x4a6   : > { %v6389_v41 = vadd.f32 %v6388_v15, %v6387_v31  ;;  %v6390_v49 = vpop.f32.mrb[18].mxu0 }
 0x4a7   : > { %v9742_v51 = vadd.f32 %v7053_v32, %v6522_v40  ;;  %v6391_v8 = vpop.f32.mrb[19].mxu0 }
 0x4a8   : > { %v7062_v29 = vadd.f32 %v6389_v41, %v9655_v27  ;;  %v6392_v19 = vadd.f32 %v6391_v8, %v6390_v49 }
 0x4a9   : > { %v6523_v63 = vpop.f32.mrb[176].mxu1 }
 0x4aa   : > { %v6524_v39 = vpop.f32.mrb[177].mxu1  ;;  %v7068_v30 = vadd.f32 %v6392_v19, %v9657_v56 }
 0x4ab   : > { %v6525_v62 = vadd.f32 %v6524_v39, %v6523_v63  ;;  %v6526_v3 = vpop.f32.mrb[178].mxu1 }
 0x4ac   : > { %v6527_v53 = vpop.f32.mrb[179].mxu1  ;;  %v6393_v1 = vpop.f32.mrb[20].mxu0 }
 0x4ad   : > { %v6528_v6 = vadd.f32 %v6527_v53, %v6526_v3  ;;  %v9746_v54 = vadd.f32 %v7062_v29, %v6525_v62  ;;  %v6394_v9 = vpop.f32.mrb[21].mxu0 }
 0x4ae   : > { %v6395_v38 = vadd.f32 %v6394_v9, %v6393_v1  ;;  %v6396_v33 = vpop.f32.mrb[22].mxu0 }
 0x4af   : > { %v9748_v22 = vadd.f32 %v7068_v30, %v6528_v6  ;;  %v6397_v57 = vpop.f32.mrb[23].mxu0 }
 0x4b0   : > { %v7059_v27 = vadd.f32 %v6395_v38, %v9660_v0  ;;  %v6398_v14 = vadd.f32 %v6397_v57, %v6396_v33 }
 0x4b1   : > { %v6529_v44 = vpop.f32.mrb[180].mxu1 }
 0x4b2   : > { %v6530_v18 = vpop.f32.mrb[181].mxu1  ;;  %v7065_v56 = vadd.f32 %v6398_v14, %v9662_v35 }
 0x4b3   : > { %v6531_v2 = vadd.f32 %v6530_v18, %v6529_v44  ;;  %v6532_v25 = vpop.f32.mrb[182].mxu1 }
 0x4b4   : > { %v6533_v12 = vpop.f32.mrb[183].mxu1  ;;  %v6399_v42 = vpop.f32.mrb[24].mxu0 }
 0x4b5   : > { %v6534_v52 = vadd.f32 %v6533_v12, %v6532_v25  ;;  %v9752_v16 = vadd.f32 %v7059_v27, %v6531_v2  ;;  %v6400_v40 = vpop.f32.mrb[25].mxu0 }
 0x4b6   : > { %v6401_v15 = vadd.f32 %v6400_v40, %v6399_v42  ;;  %v6402_v63 = vpop.f32.mrb[26].mxu0 }
 0x4b7   : > { %v9754_v32 = vadd.f32 %v7065_v56, %v6534_v52  ;;  %v6403_v49 = vpop.f32.mrb[27].mxu0 }
 0x4b8   : > { %v7074_v0 = vadd.f32 %v6401_v15, %v9664_v37  ;;  %v6404_v29 = vadd.f32 %v6403_v49, %v6402_v63 }
 0x4b9   : > { %v6535_v31 = vpop.f32.mrb[184].mxu1 }
 0x4ba   : > { %v6536_v41 = vpop.f32.mrb[185].mxu1  ;;  %v7080_v35 = vadd.f32 %v6404_v29, %v9666_v55 }
 0x4bb   : > { %v6537_v39 = vadd.f32 %v6536_v41, %v6535_v31  ;;  %v6538_v8 = vpop.f32.mrb[186].mxu1 }
 0x4bc   : > { %v6539_v62 = vpop.f32.mrb[187].mxu1  ;;  %v6405_v53 = vpop.f32.mrb[28].mxu0 }
 0x4bd   : > { %v6540_v3 = vadd.f32 %v6539_v62, %v6538_v8  ;;  %v9758_v19 = vadd.f32 %v7074_v0, %v6537_v39  ;;  %v6406_v6 = vpop.f32.mrb[29].mxu0 }
 0x4be   : > { %v6407_v9 = vadd.f32 %v6406_v6, %v6405_v53  ;;  %v6408_v44 = vpop.f32.mrb[30].mxu0 }
 0x4bf   : > { %v9760_v30 = vadd.f32 %v7080_v35, %v6540_v3  ;;  %v6409_v33 = vpop.f32.mrb[31].mxu0 }
 0x4c0   : > { %v7071_v37 = vadd.f32 %v6407_v9, %v9668_v45  ;;  %v6410_v27 = vadd.f32 %v6409_v33, %v6408_v44 }
 0x4c1   : > { %v6541_v1 = vpop.f32.mrb[188].mxu1 }
 0x4c2   : > { %v6542_v38 = vpop.f32.mrb[189].mxu1  ;;  %v7077_v55 = vadd.f32 %v6410_v27, %v9670_v13 }
 0x4c3   : > { %v6543_v18 = vadd.f32 %v6542_v38, %v6541_v1  ;;  %v6544_v57 = vpop.f32.mrb[190].mxu1 }
 0x4c4   : > { %v6545_v2 = vpop.f32.mrb[191].mxu1 }
 0x4c5   : > { %v6546_v25 = vadd.f32 %v6545_v2, %v6544_v57  ;;  %v9764_v14 = vadd.f32 %v7071_v37, %v6543_v18 }
 0x4c7   : > { %v9766_v12 = vadd.f32 %v7077_v55, %v6546_v25 }
 0x4c9   : > { %v6829_v56 = vpop.f32.mrb[96].mxu1 }
 0x4ca   : > { %v9769_v52 = vadd.f32 %v9680_v21, %v6829_v56  ;;  %v4924_v42 = vpop.f32.mrb[97].mxu1 }
 0x4cb   : > { %v9772_v40 = vadd.f32 %v9674_v58, %v4924_v42  ;;  %v6830_v45 = vpop.f32.mrb[98].mxu1 }
 0x4cc   : > { %v9775_v31 = vadd.f32 %v9682_v20, %v6830_v45  ;;  %v4927_v15 = vpop.f32.mrb[99].mxu1  ;;  %v5125_v58 = vmul.f32 %v9769_v52, %v9769_v52 }
 0x4cd   : > { %v9778_v13 = vadd.f32 %v9676_v26, %v4927_v15  ;;  %v5123_v63 = vmul.f32 %v9772_v40, %v9772_v40 }
 0x4ce   : > { %v5126_v8 = vmul.f32 %v9775_v31, %v9775_v31 }
 0x4cf   : > { %v5085_v41 = vadd.f32 %v9778_v13, %v9772_v40  ;;  %v5124_v21 = vmul.f32 %v9778_v13, %v9778_v13 }
 0x4d1   : > { %v5086_v49 = vadd.f32 %v9769_v52, %v5085_v41  ;;  %v5155_v20 = vadd.f32 %v5124_v21, %v5123_v63  ;;  %v6833_v0 = vpop.f32.mrb[100].mxu1 }
 0x4d2   : > { %v9790_v39 = vadd.f32 %v9692_v28, %v6833_v0  ;;  %v4940_v26 = vpop.f32.mrb[101].mxu1 }
 0x4d3   : > { %v5156_v29 = vadd.f32 %v5155_v20, %v5125_v58  ;;  %v9795_v62 = vadd.f32 %v9686_v36, %v4940_v26  ;;  %v5087_v35 = vadd.f32 %v9775_v31, %v5086_v49  ;;  %v6834_v3 = vpop.f32.mrb[102].mxu1 }
 0x4d4   : > { %v9799_v53 = vadd.f32 %v9694_v50, %v6834_v3  ;;  %v4943_v6 = vpop.f32.mrb[103].mxu1  ;;  %v5129_v50 = vmul.f32 %v9790_v39, %v9790_v39 }
 0x4d5   : > { %v5088_v1 = vadd.f32 %v9795_v62, %v5087_v35  ;;  %v5127_v28 = vmul.f32 %v9795_v62, %v9795_v62  ;;  %v5157_v9 = vadd.f32 %v5156_v29, %v5126_v8  ;;  %v9805_v44 = vadd.f32 %v9688_v43, %v4943_v6 }
 0x4d6   : > { %v5130_v43 = vmul.f32 %v9799_v53, %v9799_v53 }
 0x4d7   : > { %v5158_v38 = vadd.f32 %v5157_v9, %v5127_v28  ;;  %v5089_v36 = vadd.f32 %v9805_v44, %v5088_v1  ;;  %v5128_v33 = vmul.f32 %v9805_v44, %v9805_v44 }
 0x4d9   : > { %v5090_v37 = vadd.f32 %v9790_v39, %v5089_v36  ;;  %v5159_v18 = vadd.f32 %v5158_v38, %v5128_v33  ;;  %v6837_v57 = vpop.f32.mrb[104].mxu1 }
 0x4da   : > { %v9814_v27 = vadd.f32 %v9704_v7, %v6837_v57  ;;  %v4956_v2 = vpop.f32.mrb[105].mxu1 }
 0x4db   : > { %v5160_v55 = vadd.f32 %v5159_v18, %v5129_v50  ;;  %v9819_v25 = vadd.f32 %v9698_v46, %v4956_v2  ;;  %v5091_v56 = vadd.f32 %v9799_v53, %v5090_v37  ;;  %v6838_v42 = vpop.f32.mrb[106].mxu1 }
 0x4dc   : > { %v9823_v45 = vadd.f32 %v9706_v48, %v6838_v42  ;;  %v4959_v15 = vpop.f32.mrb[107].mxu1  ;;  %v5133_v48 = vmul.f32 %v9814_v27, %v9814_v27 }
 0x4dd   : > { %v5092_v63 = vadd.f32 %v9819_v25, %v5091_v56  ;;  %v5131_v7 = vmul.f32 %v9819_v25, %v9819_v25  ;;  %v5161_v41 = vadd.f32 %v5160_v55, %v5130_v43  ;;  %v9829_v21 = vadd.f32 %v9700_v5, %v4959_v15 }
 0x4de   : > { %v5134_v5 = vmul.f32 %v9823_v45, %v9823_v45 }
 0x4df   : > { %v5162_v58 = vadd.f32 %v5161_v41, %v5131_v7  ;;  %v5093_v46 = vadd.f32 %v9829_v21, %v5092_v63  ;;  %v5132_v49 = vmul.f32 %v9829_v21, %v9829_v21 }
 0x4e1   : > { %v5094_v20 = vadd.f32 %v9814_v27, %v5093_v46  ;;  %v5163_v0 = vadd.f32 %v5162_v58, %v5132_v49  ;;  %v6841_v26 = vpop.f32.mrb[108].mxu1 }
 0x4e2   : > { %v9838_v8 = vadd.f32 %v9716_v60, %v6841_v26  ;;  %v4972_v29 = vpop.f32.mrb[109].mxu1 }
 0x4e3   : > { %v5164_v35 = vadd.f32 %v5163_v0, %v5133_v48  ;;  %v9843_v3 = vadd.f32 %v9710_v23, %v4972_v29  ;;  %v5095_v6 = vadd.f32 %v9823_v45, %v5094_v20  ;;  %v6842_v1 = vpop.f32.mrb[110].mxu1 }
 0x4e4   : > { %v9847_v28 = vadd.f32 %v9718_v4, %v6842_v1  ;;  %v4975_v9 = vpop.f32.mrb[111].mxu1  ;;  %v5137_v4 = vmul.f32 %v9838_v8, %v9838_v8 }
 0x4e5   : > { %v5096_v38 = vadd.f32 %v9843_v3, %v5095_v6  ;;  %v5135_v60 = vmul.f32 %v9843_v3, %v9843_v3  ;;  %v5165_v36 = vadd.f32 %v5164_v35, %v5134_v5  ;;  %v9853_v33 = vadd.f32 %v9712_v61, %v4975_v9 }
 0x4e6   : > { %v5138_v61 = vmul.f32 %v9847_v28, %v9847_v28 }
 0x4e7   : > { %v5166_v50 = vadd.f32 %v5165_v36, %v5135_v60  ;;  %v5097_v23 = vadd.f32 %v9853_v33, %v5096_v38  ;;  %v5136_v37 = vmul.f32 %v9853_v33, %v9853_v33 }
 0x4e9   : > { %v5098_v18 = vadd.f32 %v9838_v8, %v5097_v23  ;;  %v5167_v57 = vadd.f32 %v5166_v50, %v5136_v37  ;;  %v6845_v2 = vpop.f32.mrb[112].mxu1 }
 0x4ea   : > { %v9862_v43 = vadd.f32 %v9728_v11, %v6845_v2  ;;  %v4988_v55 = vpop.f32.mrb[113].mxu1 }
 0x4eb   : > { %v5168_v56 = vadd.f32 %v5167_v57, %v5137_v4  ;;  %v9867_v42 = vadd.f32 %v9722_v59, %v4988_v55  ;;  %v5099_v15 = vadd.f32 %v9847_v28, %v5098_v18  ;;  %v6846_v63 = vpop.f32.mrb[114].mxu1 }
 0x4ec   : > { %v9871_v7 = vadd.f32 %v9730_v17, %v6846_v63  ;;  %v4991_v41 = vpop.f32.mrb[115].mxu1  ;;  %v5141_v17 = vmul.f32 %v9862_v43, %v9862_v43 }
 0x4ed   : > { %v5100_v58 = vadd.f32 %v9867_v42, %v5099_v15  ;;  %v5139_v11 = vmul.f32 %v9867_v42, %v9867_v42  ;;  %v5169_v46 = vadd.f32 %v5168_v56, %v5138_v61  ;;  %v9877_v49 = vadd.f32 %v9724_v24, %v4991_v41 }
 0x4ee   : > { %v5142_v24 = vmul.f32 %v9871_v7, %v9871_v7 }
 0x4ef   : > { %v5170_v48 = vadd.f32 %v5169_v46, %v5139_v11  ;;  %v5101_v59 = vadd.f32 %v9877_v49, %v5100_v58  ;;  %v5140_v20 = vmul.f32 %v9877_v49, %v9877_v49 }
 0x4f1   : > { %v5102_v0 = vadd.f32 %v9862_v43, %v5101_v59  ;;  %v5171_v26 = vadd.f32 %v5170_v48, %v5140_v20  ;;  %v6849_v29 = vpop.f32.mrb[116].mxu1 }
 0x4f2   : > { %v9886_v5 = vadd.f32 %v9740_v34, %v6849_v29  ;;  %v5004_v35 = vpop.f32.mrb[117].mxu1 }
 0x4f3   : > { %v5172_v6 = vadd.f32 %v5171_v26, %v5141_v17  ;;  %v9891_v1 = vadd.f32 %v9734_v47, %v5004_v35  ;;  %v5103_v9 = vadd.f32 %v9871_v7, %v5102_v0  ;;  %v6850_v38 = vpop.f32.mrb[118].mxu1 }
 0x4f4   : > { %v9895_v60 = vadd.f32 %v9742_v51, %v6850_v38  ;;  %v5007_v36 = vpop.f32.mrb[119].mxu1  ;;  %v5145_v51 = vmul.f32 %v9886_v5, %v9886_v5 }
 0x4f5   : > { %v5104_v50 = vadd.f32 %v9891_v1, %v5103_v9  ;;  %v5143_v34 = vmul.f32 %v9891_v1, %v9891_v1  ;;  %v5173_v23 = vadd.f32 %v5172_v6, %v5142_v24  ;;  %v9901_v37 = vadd.f32 %v9736_v10, %v5007_v36 }
 0x4f6   : > { %v5146_v10 = vmul.f32 %v9895_v60, %v9895_v60 }
 0x4f7   : > { %v5174_v4 = vadd.f32 %v5173_v23, %v5143_v34  ;;  %v5105_v47 = vadd.f32 %v9901_v37, %v5104_v50  ;;  %v5144_v18 = vmul.f32 %v9901_v37, %v9901_v37 }
 0x4f9   : > { %v5106_v57 = vadd.f32 %v9886_v5, %v5105_v47  ;;  %v5175_v2 = vadd.f32 %v5174_v4, %v5144_v18  ;;  %v6853_v55 = vpop.f32.mrb[120].mxu1 }
 0x4fa   : > { %v9910_v61 = vadd.f32 %v9752_v16, %v6853_v55  ;;  %v5020_v56 = vpop.f32.mrb[121].mxu1 }
 0x4fb   : > { %v5176_v15 = vadd.f32 %v5175_v2, %v5145_v51  ;;  %v9915_v63 = vadd.f32 %v9746_v54, %v5020_v56  ;;  %v5107_v41 = vadd.f32 %v9895_v60, %v5106_v57  ;;  %v6854_v58 = vpop.f32.mrb[122].mxu1 }
 0x4fc   : > { %v9919_v11 = vadd.f32 %v9754_v32, %v6854_v58  ;;  %v5023_v46 = vpop.f32.mrb[123].mxu1  ;;  %v5149_v32 = vmul.f32 %v9910_v61, %v9910_v61 }
 0x4fd   : > { %v5108_v48 = vadd.f32 %v9915_v63, %v5107_v41  ;;  %v5147_v16 = vmul.f32 %v9915_v63, %v9915_v63  ;;  %v5177_v59 = vadd.f32 %v5176_v15, %v5146_v10  ;;  %v9925_v20 = vadd.f32 %v9748_v22, %v5023_v46 }
 0x4fe   : > { %v5150_v22 = vmul.f32 %v9919_v11, %v9919_v11 }
 0x4ff   : > { %v5178_v17 = vadd.f32 %v5177_v59, %v5147_v16  ;;  %v5109_v54 = vadd.f32 %v9925_v20, %v5108_v48  ;;  %v5148_v0 = vmul.f32 %v9925_v20, %v9925_v20 }
 0x501   : > { %v5110_v26 = vadd.f32 %v9910_v61, %v5109_v54  ;;  %v5179_v29 = vadd.f32 %v5178_v17, %v5148_v0  ;;  %v6857_v35 = vpop.f32.mrb[124].mxu1 }
 0x502   : > { %v9934_v24 = vadd.f32 %v9764_v14, %v6857_v35  ;;  %v5036_v6 = vpop.f32.mrb[125].mxu1 }
 0x503   : > { %v5180_v9 = vadd.f32 %v5179_v29, %v5149_v32  ;;  %v9939_v38 = vadd.f32 %v9758_v19, %v5036_v6  ;;  %v5111_v36 = vadd.f32 %v9919_v11, %v5110_v26  ;;  %v6858_v50 = vpop.f32.mrb[126].mxu1  ;;  %v9963_v6 = vld [vmem:[%s7869_s19 + $0x8] sm:$0xf] }
 0x504   : > { %v9943_v34 = vadd.f32 %v9766_v12, %v6858_v50  ;;  %v5039_v23 = vpop.f32.mrb[127].mxu1  ;;  %v5153_v12 = vmul.f32 %v9934_v24, %v9934_v24 }
 0x505   : > { %v5112_v4 = vadd.f32 %v9939_v38, %v5111_v36  ;;  %v5151_v14 = vmul.f32 %v9939_v38, %v9939_v38  ;;  %v5181_v47 = vadd.f32 %v5180_v9, %v5150_v22  ;;  %v9949_v18 = vadd.f32 %v9760_v30, %v5039_v23  ;;  %v9967_v9 = vld [vmem:[%s7869_s19] sm:$0xf]  ;;  %v10073_v22 = vld [vmem:[%s7869_s19 + $0x48] sm:$0xf] }
 0x506   : > { %v5154_v56 = vmul.f32 %v9943_v34, %v9943_v34  ;;  %10548 = vst [vmem:[#allocation20_spill] sm:$0xff] %v10073_v22 }
 0x507   : > { %v5182_v51 = vadd.f32 %v5181_v47, %v5151_v14  ;;  %v5113_v19 = vadd.f32 %v9949_v18, %v5112_v4  ;;  %v5152_v57 = vmul.f32 %v9949_v18, %v9949_v18  ;;  %v9975_v14 = vld [vmem:[%s7869_s19 + $0xc] sm:$0xf]  ;;  %v10055_v47 = vld [vmem:[%s7869_s19 + $0x38] sm:$0xf] }
 0x509   : > { %v5114_v2 = vadd.f32 %v9934_v24, %v5113_v19  ;;  %v5183_v55 = vadd.f32 %v5182_v51, %v5152_v57  ;;  %v9979_v51 = vld [vmem:[%s7869_s19 + $0x4] sm:$0xf]  ;;  %v9983_v57 = vld [vmem:[%s7869_s19 + $0x18] sm:$0xf]  ;;  %v10077_v19 = vld [vmem:[%s7869_s19 + $0x40] sm:$0xf] }
 0x50a   : > { %10549 = vst [vmem:[#allocation16_spill] sm:$0xff] %v10077_v19 }
 0x50b   : > { %v5115_v10 = vadd.f32 %v9943_v34, %v5114_v2  ;;  %v5184_v30 = vadd.f32 %v5183_v55, %v5153_v12  ;;  %v9987_v2 = vld [vmem:[%s7869_s19 + $0x10] sm:$0xf]  ;;  %v10065_v55 = vld [vmem:[%s7869_s19 + $0x3c] sm:$0xf] }
 0x50c   : > { %v10059_v12 = vld [vmem:[%s7869_s19 + $0x30] sm:$0xf]  ;;  %10547 = vst [vmem:[#allocation18_spill] sm:$0xff] %v10065_v55 }
 0x50d   : > { %v5116_v15 = vrot.slane %v5115_v10, 4  ;;  %v5185_v41 = vadd.f32 %v5184_v30, %v5154_v56  ;;  %v9991_v56 = vld [vmem:[%s7869_s19 + $0x1c] sm:$0xf]  ;;  %v9995_v30 = vld [vmem:[%s7869_s19 + $0x14] sm:$0xf] }
 0x50f   : > { %v5117_v58 = vadd.f32 %v5116_v15, %v5115_v10  ;;  %v5186_v46 = vrot.slane %v5185_v41, 4  ;;  %v10051_v15 = vld [vmem:[%s7869_s19 + $0x24] sm:$0xf] }
 0x511   : > { %v5118_v48 = vrot.slane %v5117_v58, 2  ;;  %v5187_v16 = vadd.f32 %v5186_v46, %v5185_v41  ;;  %v9999_v41 = vld [vmem:[%s7869_s19 + $0x28] sm:$0xf] }
 0x513   : > { %v5119_v59 = vadd.f32 %v5118_v48, %v5117_v58  ;;  %v5188_v17 = vrot.slane %v5187_v16, 2  ;;  %v10003_v48 = vld [vmem:[%s7869_s19 + $0x20] sm:$0xf]  ;;  %v10081_v58 = vld [vmem:[%s7869_s19 + $0x4c] sm:$0xf] }
 0x514   : > { %10550 = vst [vmem:[#allocation25_spill] sm:$0xff] %v10081_v58 }
 0x515   : > { %v5120_v54 = vrot.slane %v5119_v59, 1  ;;  %v5189_v0 = vadd.f32 %v5188_v17, %v5187_v16  ;;  %v10085_v17 = vld [vmem:[%s7869_s19 + $0x44] sm:$0xf] }
 0x516   : > { %10551 = vst [vmem:[#allocation23_spill] sm:$0xff] %v10085_v17 }
 0x517   : > { %v5121_v32 = vadd.f32 %v5120_v54, %v5119_v59  ;;  %v5190_v26 = vrot.slane %v5189_v0, 1  ;;  %v10007_v59 = vld [vmem:[%s7869_s19 + $0x2c] sm:$0xf] }
 0x519   : > { %v9960_v29 = vmul.f32 0.00390625, %v5121_v32  ;;  %v5191_v35 = vadd.f32 %v5190_v26, %v5189_v0  ;;  %v10101_v26 = vld [vmem:[%s7869_s19 + $0x54] sm:$0xf]  ;;  %v10105_v0 = vld [vmem:[%s7869_s19 + $0x68] sm:$0xf] }
 0x51a   : > { %10555 = vst [vmem:[#allocation21_spill] sm:$0xff] %v10101_v26  ;;  %10556 = vst [vmem:[#allocation17_spill] sm:$0xff] %v10105_v0  ;;  %v10125_v26 = vld [vmem:[%s7869_s19 + $0x70] sm:$0xf]  ;;  %v10129_v0 = vld [vmem:[%s7869_s19 + $0x7c] sm:$0xf] }
 0x51b   : > { %v5192_v50 = vmul.f32 0.00390625, %v5191_v35  ;;  %v5193_v23 = vmul.f32 %v9960_v29, %v9960_v29  ;;  %v10097_v35 = vld [vmem:[%s7869_s19 + $0x5c] sm:$0xf]  ;;  %10561 = vst [vmem:[#allocation26_spill] sm:$0xff] %v10125_v26  ;;  %10562 = vst [vmem:[#allocation27_spill] sm:$0xff] %v10129_v0  ;;  %v5197_v36 = vsub.f32 %v9772_v40, %v9960_v29  ;;  %v5198_v10 = vsub.f32 %v9778_v13, %v9960_v29 }
 0x51c   : > { %10554 = vst [vmem:[#allocation13_spill] sm:$0xff] %v10097_v35  ;;  %v10121_v35 = vld [vmem:[%s7869_s19 + $0x78] sm:$0xf]  ;;  %v5200_v16 = vsub.f32 %v9775_v31, %v9960_v29  ;;  %v5201_v54 = vsub.f32 %v9795_v62, %v9960_v29  ;;  %v5202_v4 = vsub.f32 %v9805_v44, %v9960_v29  ;;  %v10148_v40 = vld [vmem:[%s10446_s5] ss:$0 sm:$0xff]  ;;  %v5203_v13 = vsub.f32 %v9790_v39, %v9960_v29 }
 0x51d   : > { %v5194_v46 = vsub.f32 %v5192_v50, %v5193_v23  ;;  %v10089_v23 = vld [vmem:[%s7869_s19 + $0x58] sm:$0xf]  ;;  %v10093_v50 = vld [vmem:[%s7869_s19 + $0x50] sm:$0xf]  ;;  %10560 = vst [vmem:[#allocation12_spill] sm:$0xff] %v10121_v35  ;;  %v5205_v31 = vsub.f32 %v9819_v25, %v9960_v29  ;;  %v5207_v62 = vsub.f32 %v9814_v27, %v9960_v29  ;;  %v10563_v44 = vsub.f32 %v9949_v18, %v9960_v29 }
 0x51e   : > { %10552 = vst [vmem:[#allocation24_spill] sm:$0xff] %v10089_v23  ;;  %10553 = vst [vmem:[#allocation14_spill] sm:$0xff] %v10093_v50  ;;  %v10113_v23 = vld [vmem:[%s7869_s19 + $0x6c] sm:$0xf]  ;;  %v10117_v50 = vld [vmem:[%s7869_s19 + $0x64] sm:$0xf]  ;;  %v10564_v18 = vsub.f32 %v9829_v21, %v9960_v29 }
 0x51f   : > { %v5195_v32 = vadd.f32 1e-05, %v5194_v46  ;;  %v10109_v46 = vld [vmem:[%s7869_s19 + $0x60] sm:$0xf]  ;;  %10558 = vst [vmem:[#allocation22_spill] sm:$0xff] %v10113_v23  ;;  %10559 = vst [vmem:[#allocation15_spill] sm:$0xff] %v10117_v50  ;;  %v5199_v23 = vsub.f32 %v9769_v52, %v9960_v29  ;;  %v5204_v52 = vsub.f32 %v9799_v53, %v9960_v29 }
 0x520   : > { %10557 = vst [vmem:[#allocation19_spill] sm:$0xff] %v10109_v46  ;;  %v7477_v46 = vld [vmem:[%s7869_s19 + $0x74] sm:$0xf]  ;;  %v10164_v39 = vld [vmem:[%s10447_s6] ss:$0 sm:$0xff] }
 0x521   : > { %7444 = vrsqrt.f32 %v5195_v32  ;;  %v10069_v32 = vld [vmem:[%s7869_s19 + $0x34] sm:$0xf]  ;;  %v5366_v58 = vunpack.c.l.bf16 %v7477_v46 }
 0x52b   : > { %v7445_v46 = vpop.eup %7444 }
 0x52c   : > { %v5258_v0 = vmul.f32 %v7445_v46, %v10563_v44  ;;  %v5229_v35 = vmul.f32 %v7445_v46, %v5197_v36  ;;  %v5230_v26 = vmul.f32 %v7445_v46, %v5198_v10  ;;  %v5231_v50 = vmul.f32 %v7445_v46, %v5199_v23 }
 0x52d   : > { %v5232_v22 = vmul.f32 %v7445_v46, %v5200_v16  ;;  %v5233_v53 = vmul.f32 %v7445_v46, %v5201_v54  ;;  %v5234_v17 = vmul.f32 %v7445_v46, %v5202_v4  ;;  %v5235_v19 = vmul.f32 %v7445_v46, %v5203_v13 }
 0x52e   : > { %v5296_v25 = vmul.f32 %v10148_v40, %v5258_v0  ;;  %v5236_v27 = vmul.f32 %v7445_v46, %v5204_v52  ;;  %v5237_v55 = vmul.f32 %v7445_v46, %v5205_v31  ;;  %v5238_v36 = vmul.f32 %v7445_v46, %v10564_v18 }
 0x52f   : > { %v5239_v10 = vmul.f32 %v7445_v46, %v5207_v62  ;;  %v10565_v23 = vsub.f32 %v9823_v45, %v9960_v29  ;;  %v10566_v16 = vsub.f32 %v9843_v3, %v9960_v29  ;;  %v10567_v4 = vsub.f32 %v9853_v33, %v9960_v29 }
 0x530   : > { %v5334_v0 = vadd.f32 %v10164_v39, %v5296_v25  ;;  %v10568_v52 = vsub.f32 %v9838_v8, %v9960_v29  ;;  %v10569_v31 = vsub.f32 %v9847_v28, %v9960_v29  ;;  %v10570_v45 = vsub.f32 %v9867_v42, %v9960_v29 }
 0x531   : > { %v5240_v44 = vmul.f32 %v7445_v46, %v10565_v23  ;;  %v5241_v54 = vmul.f32 %v7445_v46, %v10566_v16  ;;  %v5242_v13 = vmul.f32 %v7445_v46, %v10567_v4  ;;  %v10571_v3 = vsub.f32 %v9877_v49, %v9960_v29 }
 0x532   : > { %v5243_v21 = vmul.f32 %v7445_v46, %v10568_v52  ;;  %v5244_v62 = vmul.f32 %v7445_v46, %v10569_v31  ;;  %v5245_v18 = vmul.f32 %v7445_v46, %v10570_v45  ;;  %v10572_v33 = vsub.f32 %v9862_v43, %v9960_v29 }
 0x533   : > { %v5246_v23 = vmul.f32 %v7445_v46, %v10571_v3  ;;  %v10573_v8 = vsub.f32 %v9871_v7, %v9960_v29  ;;  %v10574_v28 = vsub.f32 %v9891_v1, %v9960_v29  ;;  %v5398_v52 = vadd.f32 %v5366_v58, %v5334_v0 }
 0x534   : > { %v5247_v25 = vmul.f32 %v7445_v46, %v10572_v33  ;;  %v10575_v42 = vsub.f32 %v9901_v37, %v9960_v29  ;;  %v10576_v49 = vsub.f32 %v9886_v5, %v9960_v29  ;;  %v10577_v43 = vsub.f32 %v9895_v60, %v9960_v29 }
 0x535   : > { %v5248_v16 = vmul.f32 %v7445_v46, %v10573_v8  ;;  %v5249_v4 = vmul.f32 %v7445_v46, %v10574_v28  ;;  %v10578_v7 = vsub.f32 %v9915_v63, %v9960_v29  ;;  %v10579_v1 = vsub.f32 %v9925_v20, %v9960_v29  ;;  %5430 = vst [vmem:[%s10223_s23 + $0xe8] sm:$0xff] %v5398_v52 }
 0x536   : > { %v5250_v31 = vmul.f32 %v7445_v46, %v10575_v42  ;;  %v5251_v45 = vmul.f32 %v7445_v46, %v10576_v49  ;;  %v5252_v3 = vmul.f32 %v7445_v46, %v10577_v43  ;;  %v10580_v37 = vsub.f32 %v9910_v61, %v9960_v29 }
 0x537   : > { %v5253_v33 = vmul.f32 %v7445_v46, %v10578_v7  ;;  %v5254_v58 = vmul.f32 %v7445_v46, %v10579_v1  ;;  %v10581_v5 = vsub.f32 %v9919_v11, %v9960_v29  ;;  %v10582_v60 = vsub.f32 %v9939_v38, %v9960_v29 }
 0x538   : > { %v5255_v0 = vmul.f32 %v7445_v46, %v10580_v37  ;;  %v10583_v20 = vsub.f32 %v9934_v24, %v9960_v29  ;;  %v10584_v61 = vsub.f32 %v9943_v34, %v9960_v29  ;;  %v5267_v49 = vmul.f32 %v10148_v40, %v5229_v35 }
 0x539   : > { %v5256_v8 = vmul.f32 %v7445_v46, %v10581_v5  ;;  %v5257_v63 = vmul.f32 %v7445_v46, %v10582_v60  ;;  %v5268_v11 = vmul.f32 %v10148_v40, %v5230_v26  ;;  %v5269_v43 = vmul.f32 %v10148_v40, %v5231_v50 }
 0x53a   : > { %v5259_v28 = vmul.f32 %v7445_v46, %v10583_v20  ;;  %v5260_v42 = vmul.f32 %v7445_v46, %v10584_v61  ;;  %v5270_v52 = vmul.f32 %v10148_v40, %v5232_v22  ;;  %v5271_v7 = vmul.f32 %v10148_v40, %v5233_v53 }
 0x53b   : > { %v5272_v38 = vmul.f32 %v10148_v40, %v5234_v17  ;;  %v5273_v1 = vmul.f32 %v10148_v40, %v5235_v19  ;;  %v5274_v24 = vmul.f32 %v10148_v40, %v5236_v27  ;;  %v5275_v37 = vmul.f32 %v10148_v40, %v5237_v55 }
 0x53c   : > { %v5276_v34 = vmul.f32 %v10148_v40, %v5238_v36  ;;  %v5277_v29 = vmul.f32 %v10148_v40, %v5239_v10  ;;  %v5278_v26 = vmul.f32 %v10148_v40, %v5240_v44  ;;  %v5279_v35 = vmul.f32 %v10148_v40, %v5241_v54 }
 0x53d   : > { %v5280_v22 = vmul.f32 %v10148_v40, %v5242_v13  ;;  %v5281_v50 = vmul.f32 %v10148_v40, %v5243_v21  ;;  %v5282_v17 = vmul.f32 %v10148_v40, %v5244_v62  ;;  %v5283_v19 = vmul.f32 %v10148_v40, %v5245_v18 }
 0x53e   : > { %v5284_v46 = vmul.f32 %v10148_v40, %v5246_v23  ;;  %v5285_v55 = vmul.f32 %v10148_v40, %v5247_v25  ;;  %v5286_v53 = vmul.f32 %v10148_v40, %v5248_v16  ;;  %v5287_v27 = vmul.f32 %v10148_v40, %v5249_v4 }
 0x53f   : > { %v5288_v36 = vmul.f32 %v10148_v40, %v5250_v31  ;;  %v5289_v10 = vmul.f32 %v10148_v40, %v5251_v45  ;;  %v5290_v44 = vmul.f32 %v10148_v40, %v5252_v3  ;;  %v5291_v54 = vmul.f32 %v10148_v40, %v5253_v33 }
 0x540   : > { %v5292_v13 = vmul.f32 %v10148_v40, %v5254_v58  ;;  %v5293_v21 = vmul.f32 %v10148_v40, %v5255_v0  ;;  %v5294_v62 = vmul.f32 %v10148_v40, %v5256_v8  ;;  %v5295_v18 = vmul.f32 %v10148_v40, %v5257_v63 }
 0x541   : > { %v5297_v23 = vmul.f32 %v10148_v40, %v5259_v28  ;;  %v5298_v25 = vmul.f32 %v10148_v40, %v5260_v42  ;;  %v5305_v16 = vadd.f32 %v10164_v39, %v5267_v49  ;;  %v5306_v4 = vadd.f32 %v10164_v39, %v5268_v11 }
 0x542   : > { %v5307_v31 = vadd.f32 %v10164_v39, %v5269_v43  ;;  %v5308_v45 = vadd.f32 %v10164_v39, %v5270_v52  ;;  %v5309_v3 = vadd.f32 %v10164_v39, %v5271_v7  ;;  %v5310_v33 = vadd.f32 %v10164_v39, %v5272_v38 }
 0x543   : > { %v5311_v58 = vadd.f32 %v10164_v39, %v5273_v1  ;;  %v5312_v0 = vadd.f32 %v10164_v39, %v5274_v24  ;;  %v5313_v5 = vadd.f32 %v10164_v39, %v5275_v37  ;;  %v5314_v40 = vadd.f32 %v10164_v39, %v5276_v34 }
 0x544   : > { %v5315_v8 = vadd.f32 %v10164_v39, %v5277_v29  ;;  %v5316_v60 = vadd.f32 %v10164_v39, %v5278_v26  ;;  %v5317_v63 = vadd.f32 %v10164_v39, %v5279_v35  ;;  %v5318_v20 = vadd.f32 %v10164_v39, %v5280_v22 }
 0x545   : > { %v5319_v28 = vadd.f32 %v10164_v39, %v5281_v50  ;;  %v5320_v61 = vadd.f32 %v10164_v39, %v5282_v17  ;;  %v5321_v42 = vadd.f32 %v10164_v39, %v5283_v19  ;;  %v5322_v49 = vadd.f32 %v10164_v39, %v5284_v46 }
 0x546   : > { %v5323_v11 = vadd.f32 %v10164_v39, %v5285_v55  ;;  %v5324_v43 = vadd.f32 %v10164_v39, %v5286_v53  ;;  %v5325_v52 = vadd.f32 %v10164_v39, %v5287_v27  ;;  %v5326_v7 = vadd.f32 %v10164_v39, %v5288_v36 }
 0x547   : > { %v5327_v38 = vadd.f32 %v10164_v39, %v5289_v10  ;;  %v5328_v1 = vadd.f32 %v10164_v39, %v5290_v44  ;;  %v5329_v24 = vadd.f32 %v10164_v39, %v5291_v54  ;;  %v5330_v37 = vadd.f32 %v10164_v39, %v5292_v13 }
 0x548   : > { %v5331_v34 = vadd.f32 %v10164_v39, %v5293_v21  ;;  %v5332_v29 = vadd.f32 %v10164_v39, %v5294_v62  ;;  %v5333_v26 = vadd.f32 %v10164_v39, %v5295_v18  ;;  %v5335_v35 = vadd.f32 %v10164_v39, %v5297_v23 }
 0x549   : > { %v5336_v22 = vadd.f32 %v10164_v39, %v5298_v25  ;;  %v10585_v50 = vunpack.c.l.bf16 %v9967_v9  ;;  %v10586_v19 = vunpack.c.l.bf16 %v9979_v51  ;;  %v10587_v55 = vunpack.c.l.bf16 %v9963_v6 }
 0x54a   : > { %v10588_v27 = vunpack.c.l.bf16 %v9975_v14  ;;  %v10589_v10 = vunpack.c.l.bf16 %v9987_v2  ;;  %v10590_v54 = vunpack.c.l.bf16 %v9995_v30  ;;  %v10591_v9 = vunpack.c.l.bf16 %v9983_v57 }
 0x54b   : > { %v5369_v17 = vadd.f32 %v10585_v50, %v5305_v16  ;;  %v5370_v46 = vadd.f32 %v10586_v19, %v5306_v4  ;;  %v5371_v53 = vadd.f32 %v10587_v55, %v5307_v31  ;;  %v10592_v13 = vunpack.c.l.bf16 %v9991_v56  ;;  %v10602_v31 = vld [vmem:[#allocation16_spill] sm:$0xff]  ;;  %v10616_v19 = vld [vmem:[#allocation13_spill] sm:$0xff] }
 0x54c   : > { %v5372_v36 = vadd.f32 %v10588_v27, %v5308_v45  ;;  %v5373_v44 = vadd.f32 %v10589_v10, %v5309_v3  ;;  %v5374_v39 = vadd.f32 %v10590_v54, %v5310_v33  ;;  %v5375_v51 = vadd.f32 %v10591_v9, %v5311_v58  ;;  %v10604_v3 = vld [vmem:[#allocation23_spill] sm:$0xff]  ;;  %v10606_v58 = vld [vmem:[#allocation20_spill] sm:$0xff]  ;;  %v10622_v10 = vld [vmem:[#allocation17_spill] sm:$0xff] }
 0x54d   : > { %v5376_v6 = vadd.f32 %v10592_v13, %v5312_v0  ;;  %v10593_v14 = vunpack.c.l.bf16 %v10003_v48  ;;  %v10594_v2 = vunpack.c.l.bf16 %v10051_v15  ;;  %v10595_v18 = vunpack.c.l.bf16 %v9999_v41  ;;  %5401 = vst [vmem:[%s10223_s23] sm:$0xff] %v5369_v17  ;;  %5402 = vst [vmem:[%s10223_s23 + $0x8] sm:$0xff] %v5370_v46  ;;  %v10614_v50 = vld [vmem:[#allocation24_spill] sm:$0xff] }
 0x54e   : > { %5403 = vst [vmem:[%s10223_s23 + $0x10] sm:$0xff] %v5371_v53  ;;  %v10596_v57 = vunpack.c.l.bf16 %v10007_v59  ;;  %v10597_v23 = vunpack.c.l.bf16 %v10059_v12  ;;  %v10598_v25 = vunpack.c.l.bf16 %v10069_v32  ;;  %v10599_v16 = vunpack.c.l.bf16 %v10055_v47  ;;  %5404 = vst [vmem:[%s10223_s23 + $0x18] sm:$0xff] %v5372_v36  ;;  %v10600_v59 = vld [vmem:[#allocation18_spill] sm:$0xff]  ;;  %v10618_v53 = vld [vmem:[#allocation19_spill] sm:$0xff] }
 0x54f   : > { %v5377_v21 = vadd.f32 %v10593_v14, %v5313_v5  ;;  %v5378_v62 = vadd.f32 %v10594_v2, %v5314_v40  ;;  %v5379_v30 = vadd.f32 %v10595_v18, %v5315_v8  ;;  %5405 = vst [vmem:[%s10223_s23 + $0x20] sm:$0xff] %v5373_v44  ;;  %5406 = vst [vmem:[%s10223_s23 + $0x28] sm:$0xff] %v5374_v39  ;;  %v10601_v12 = vunpack.c.l.bf16 %v10600_v59  ;;  %v10608_v40 = vld [vmem:[#allocation25_spill] sm:$0xff]  ;;  %v10628_v9 = vld [vmem:[#allocation12_spill] sm:$0xff] }
 0x550   : > { %v5380_v56 = vadd.f32 %v10596_v57, %v5316_v60  ;;  %v5381_v48 = vadd.f32 %v10597_v23, %v5317_v63  ;;  %v5382_v15 = vadd.f32 %v10598_v25, %v5318_v20  ;;  %v5383_v41 = vadd.f32 %v10599_v16, %v5319_v28  ;;  %5407 = vst [vmem:[%s10223_s23 + $0x30] sm:$0xff] %v5375_v51  ;;  %v10610_v63 = vld [vmem:[#allocation14_spill] sm:$0xff] }
 0x551   : > { %v5384_v4 = vadd.f32 %v10601_v12, %v5320_v61  ;;  %v10603_v32 = vunpack.c.l.bf16 %v10602_v31  ;;  %v10605_v33 = vunpack.c.l.bf16 %v10604_v3  ;;  %v10607_v0 = vunpack.c.l.bf16 %v10606_v58  ;;  %5408 = vst [vmem:[%s10223_s23 + $0x38] sm:$0xff] %v5376_v6  ;;  %5409 = vst [vmem:[%s10223_s23 + $0x40] sm:$0xff] %v5377_v21  ;;  %v10612_v61 = vld [vmem:[#allocation21_spill] sm:$0xff]  ;;  %v10630_v6 = vld [vmem:[#allocation27_spill] sm:$0xff] }
 0x552   : > { %5410 = vst [vmem:[%s10223_s23 + $0x48] sm:$0xff] %v5378_v62  ;;  %5411 = vst [vmem:[%s10223_s23 + $0x50] sm:$0xff] %v5379_v30  ;;  %v10609_v8 = vunpack.c.l.bf16 %v10608_v40  ;;  %v10611_v20 = vunpack.c.l.bf16 %v10610_v63  ;;  %v10615_v17 = vunpack.c.l.bf16 %v10614_v50  ;;  %v10617_v46 = vunpack.c.l.bf16 %v10616_v19 }
 0x553   : > { %v5385_v45 = vadd.f32 %v10603_v32, %v5321_v42  ;;  %v5386_v47 = vadd.f32 %v10605_v33, %v5322_v49  ;;  %v5387_v5 = vadd.f32 %v10607_v0, %v5323_v11  ;;  %v10613_v42 = vunpack.c.l.bf16 %v10612_v61  ;;  %5412 = vst [vmem:[%s10223_s23 + $0x58] sm:$0xff] %v5380_v56  ;;  %5413 = vst [vmem:[%s10223_s23 + $0x60] sm:$0xff] %v5381_v48 }
 0x554   : > { %v5388_v60 = vadd.f32 %v10609_v8, %v5324_v43  ;;  %v5389_v28 = vadd.f32 %v10611_v20, %v5325_v52  ;;  %v5391_v11 = vadd.f32 %v10615_v17, %v5327_v38  ;;  %5414 = vst [vmem:[%s10223_s23 + $0x68] sm:$0xff] %v5382_v15  ;;  %5415 = vst [vmem:[%s10223_s23 + $0x70] sm:$0xff] %v5383_v41  ;;  %v10619_v43 = vunpack.c.l.bf16 %v10618_v53  ;;  %v10620_v52 = vld [vmem:[#allocation15_spill] sm:$0xff] }
 0x555   : > { %v5390_v49 = vadd.f32 %v10613_v42, %v5326_v7  ;;  %v5392_v55 = vadd.f32 %v10617_v46, %v5328_v1  ;;  %v10621_v36 = vunpack.c.l.bf16 %v10620_v52  ;;  %v10623_v44 = vunpack.c.l.bf16 %v10622_v10  ;;  %5416 = vst [vmem:[%s10223_s23 + $0x78] sm:$0xff] %v5384_v4  ;;  %5417 = vst [vmem:[%s10223_s23 + $0x80] sm:$0xff] %v5385_v45  ;;  %v10624_v1 = vld [vmem:[#allocation22_spill] sm:$0xff] }
 0x556   : > { %v5393_v27 = vadd.f32 %v10619_v43, %v5329_v24  ;;  %5418 = vst [vmem:[%s10223_s23 + $0x88] sm:$0xff] %v5386_v47  ;;  %5419 = vst [vmem:[%s10223_s23 + $0x90] sm:$0xff] %v5387_v5  ;;  %v10625_v24 = vunpack.c.l.bf16 %v10624_v1  ;;  %v10629_v51 = vunpack.c.l.bf16 %v10628_v9  ;;  %v10631_v14 = vunpack.c.l.bf16 %v10630_v6 }
 0x557   : > { %v5394_v7 = vadd.f32 %v10621_v36, %v5330_v37  ;;  %v5395_v38 = vadd.f32 %v10623_v44, %v5331_v34  ;;  %v10626_v34 = vld [vmem:[#allocation26_spill] sm:$0xff]  ;;  %5420 = vst [vmem:[%s10223_s23 + $0x98] sm:$0xff] %v5388_v60  ;;  %5421 = vst [vmem:[%s10223_s23 + $0xa0] sm:$0xff] %v5389_v28 }
 0x558   : > { %v5396_v37 = vadd.f32 %v10625_v24, %v5332_v29  ;;  %v10627_v54 = vunpack.c.l.bf16 %v10626_v34  ;;  %v5399_v13 = vadd.f32 %v10629_v51, %v5335_v35  ;;  %v5400_v21 = vadd.f32 %v10631_v14, %v5336_v22  ;;  %5422 = vst [vmem:[%s10223_s23 + $0xa8] sm:$0xff] %v5390_v49  ;;  %5423 = vst [vmem:[%s10223_s23 + $0xb0] sm:$0xff] %v5391_v11 }
 0x559   : > { %5424 = vst [vmem:[%s10223_s23 + $0xb8] sm:$0xff] %v5392_v55  ;;  %5425 = vst [vmem:[%s10223_s23 + $0xc0] sm:$0xff] %v5393_v27 }
 0x55a   : > { %v5397_v39 = vadd.f32 %v10627_v54, %v5333_v26  ;;  %5426 = vst [vmem:[%s10223_s23 + $0xc8] sm:$0xff] %v5394_v7  ;;  %5427 = vst [vmem:[%s10223_s23 + $0xd0] sm:$0xff] %v5395_v38 }
 0x55b   : > { %5428 = vst [vmem:[%s10223_s23 + $0xd8] sm:$0xff] %v5396_v37  ;;  %5431 = vst [vmem:[%s10223_s23 + $0xf0] sm:$0xff] %v5399_v13 }
 0x55c   : > { %5429 = vst [vmem:[%s10223_s23 + $0xe0] sm:$0xff] %v5397_v39  ;;  %5432 = vst [vmem:[%s10223_s23 + $0xf8] sm:$0xff] %v5400_v21 }
 0x55d   : > { %7577 = shalt.err (!%p7574_p1)
}
 0x55e   : > { %s7578_s15 = scalar_lea.hbm %s10375_s30, 4096  ;;  %s7582_s23 = scalar_lea.hbm %s10448_s7, 8192 }
 0x55f   : > { %p7579_p13 = scmp.ne.s32.totalorder %s10375_s30, %s7578_s15  ;;  %p7583_p4 = scmp.lt.u32.totalorder %s10375_s30, %s10448_s7 }
 0x560   : > { %p7584_p5 = scmp.lt.u32.totalorder %s7582_s23, %s7578_s15  ;;  %p7586_p11 = scmp.lt.u32.totalorder %s7578_s15, %s10375_s30 }
 0x561   : > { %p7580_p6 = pnand %p7579_p13, %p10632_p0 }
 0x562   : > { %p7585_p8 = por %p7584_p5, %p7583_p4 }
 0x563   : > { %p7581_p10 = pneg %p7580_p6 }
 0x564   : > { %p7587_p2 = por %p7586_p11, %p7585_p8 }
 0x566   : > { %p7588_p3 = pnand %p7587_p2, %p7581_p10 }
 0x568   : > { %7591 = shalt.err (!%p7588_p3)
}
 0x569   : > { %s7642_s19 = smov 128   ;;  %s7643_s29 = smov 8  }
 0x56a   : > { %7189 = dma.vmem_to_hbm [thread:$0]  (%p10632_p0), %s10377_s18, 4096, %s10375_s30, %s5434_s9, %s7642_s19, %s7642_s19, %s7643_s29  }
 0x56b PF: > { %s5462_s11 = sand.u32 1, %s7622_s24   ;;  %p10633_p7 = scmp.ne.s32.totalorder %s10482_s8, 0 }
 0x56c   : > { %p10634_p9 = scmp.ge.s32.totalorder %s7634_s27, 2  ;;  %s5463_s10 = scalar_lea.sflag [#allocation4], %s5462_s11 }
 0x56e   : > { %p7203_p12 = pnand %p10634_p9, %p10633_p7 }
 0x570   : > { %7617 = dma.done.wait (!%p7203_p12), %s5463_s10, 4096  }
 0x571   : > { %7619 = vsyncadd (!%p7203_p12), %s5463_s10, 4294963200  ;;  %p21_p1 = scmp.ge.s32.totalorder %s7800_s12, 4   ;;  %s10635_s24 = smov %s7626_s25 }
 0x572   : > { %s10636_s25 = smov %s7630_s26  ;;  %s10637_s26 = smov %s7816_s17 }
 0x573   : > { %s10638_s27 = smov %s7800_s12  ;;  %23 = sbr.rel (!%p21_p1) target bundleno = 6 (0x6), region = 105 }
 0x57a   :  { %5468 = vsyncpa [#allocation3], 1 }
 0x57b   :  { %5470 = vsyncpa [#allocation3 + $0x1], 1 }
 0x57c   :  { %5471 = vsyncpa [#allocation6], 1 }
 0x57d   :  { %5472 = vsyncpa [#allocation4], 1 }
 0x57e   :  { %5474 = vsyncpa [#allocation4 + $0x1], 1 }

</bundles_post_ra>
